<compile_context>
chip_gen: v7x
topology: tpu7x:2x2x1
jax: 0.10.0
libtpu: 0.0.40
codegen_flags: <defaults>
</compile_context>

<pallas_src>
import jax
import jax.numpy as jnp
import numpy as np
from jax.experimental import pallas as pl
from jax.experimental.pallas import tpu as pltpu

# ----- dimensions implied by the module -----
N_IN_CH, N_OUT_CH = 3, 4
K, STRIDE = 3, 3
H_IN = W_IN = 224
H_CONV = W_CONV = (H_IN - K) // STRIDE + 1          # 74
H_POOL = W_POOL = (H_CONV - 2) // 3 + 1             # 25
FLAT = N_OUT_CH * H_POOL * W_POOL                   # 2500
HID = 256
BN_EPS = 1e-5

# ----- fused-kernel layout constants -----
ROW_BLK = 32                                        # 25 pooled rows padded to 32 (per dh)
COL_BLK = 128                                       # 100 = oc*25+pw padded to 128 (per dw)
SEL_ROWS = K * 2 * ROW_BLK                          # 192 : (kh, dh, ph)
CONV_COLS = 2 * COL_BLK                             # 256 : (dw, oc*25+pw)
Q = N_OUT_CH * W_POOL                               # 100 valid pooled columns


def _selection_constants():
    # L[kh*64 + dh*32 + ph, 9*ph + 3*dh + kh] = 1   (row gather done on the MXU)
    l_np = np.zeros((SEL_ROWS, H_IN), np.float32)
    for kh in range(K):
        for dh in range(2):
            for ph in range(H_POOL):
                l_np[kh * 2 * ROW_BLK + dh * ROW_BLK + ph, 9 * ph + 3 * dh + kh] = 1.0
    # S[dw, kw, 9*pw + 3*dw + kw, pw] = 1           (column gather, folded into R)
    s_np = np.zeros((2, K, W_IN, W_POOL), np.float32)
    for dw in range(2):
        for kw in range(K):
            for pw in range(W_POOL):
                s_np[dw, kw, 9 * pw + 3 * dw + kw, pw] = 1.0
    return l_np, s_np


_L_NP, _S_NP = _selection_constants()


# --------------------------- fused forward kernel ---------------------------
def _fused_kernel(x_ref, l_ref, r_ref, shift_ref, w1_ref, b1_ref, w2_ref, b2_ref,
                  o_ref):
    # ---- conv(3->4,k=3,s=3) + BN + ReLU + maxpool(k=2,s=3), all in VMEM ----
    v = jnp.zeros((2 * ROW_BLK, CONV_COLS), jnp.float32)
    for c in range(N_IN_CH):
        xc = x_ref[0, c, :, :].astype(jnp.bfloat16)                       # (224, 224)
        # lx[kh*64 + dh*32 + ph, col] = x[c, 9*ph + 3*dh + kh, col]  (exact selection)
        lx = jnp.dot(l_ref[...], xc, preferred_element_type=jnp.float32)  # (192, 224)
        for kh in range(K):
            lhs = lx[kh * 2 * ROW_BLK:(kh + 1) * 2 * ROW_BLK, :].astype(jnp.bfloat16)
            v = v + jnp.dot(lhs, r_ref[c * K + kh],
                            preferred_element_type=jnp.float32)           # (64, 256)
    # v[dh*32+ph, dw*128 + oc*25 + pw] = bn_scale[oc] * conv_nobias(oc, 3ph+dh, 3pw+dw)
    a = jnp.maximum(v + shift_ref[...], 0.0)                              # BN shift + ReLU
    # MaxPool(k=2, s=3): max of the four (dh, dw) shifted variants (aligned quadrants).
    p = jnp.maximum(jnp.maximum(a[:ROW_BLK, :COL_BLK], a[:ROW_BLK, COL_BLK:]),
                    jnp.maximum(a[ROW_BLK:, :COL_BLK], a[ROW_BLK:, COL_BLK:]))
    # p[ph, oc*25 + pw] = pooled activation (rows >= 25 / cols >= 100 are unused pads)

    # ---- Linear(2500,256) -> (Dropout = identity) -> Linear(256,1) -> Sigmoid ----
    # TODO(synk): Dropout(0.3) is identity at inference time (no torch RNG replicated).
    h = b1_ref[...]                                                        # (1, 256) f32
    for ph in range(H_POOL):
        row = p[ph:ph + 1, :Q].astype(jnp.bfloat16)                        # (1, 100)
        h = h + jnp.dot(row, w1_ref[ph], preferred_element_type=jnp.float32)
    z = jnp.sum(h * w2_ref[...], axis=1, keepdims=True) + b2_ref[...]      # (1, 1)
    o_ref[0] = 1.0 / (1.0 + jnp.exp(-z))


def _forward_impl(x, l_mat, r_mat, shift_vec, w1r, b1, w2, b2):
    n = x.shape[0]
    out = pl.pallas_call(
        _fused_kernel,
        out_shape=jax.ShapeDtypeStruct((n, 1, 1), jnp.float32),
        grid_spec=pltpu.PrefetchScalarGridSpec(
            num_scalar_prefetch=0,
            grid=(n,),
            in_specs=[
                pl.BlockSpec((1, N_IN_CH, H_IN, W_IN), lambda i: (i, 0, 0, 0)),  # x
                pl.BlockSpec((SEL_ROWS, H_IN), lambda i: (0, 0)),                # L
                pl.BlockSpec((N_IN_CH * K, W_IN, CONV_COLS), lambda i: (0, 0, 0)),  # R
                pl.BlockSpec((1, CONV_COLS), lambda i: (0, 0)),                  # bn shift
                pl.BlockSpec((H_POOL, Q, HID), lambda i: (0, 0, 0)),             # fc1 w (bf16)
                pl.BlockSpec((1, HID), lambda i: (0, 0)),                        # fc1 b
                pl.BlockSpec((1, HID), lambda i: (0, 0)),                        # fc2 w
                pl.BlockSpec((1, 1), lambda i: (0, 0)),                          # fc2 b
            ],
            out_specs=pl.BlockSpec((1, 1, 1), lambda i: (i, 0, 0)),
        ),
        compiler_params=pltpu.CompilerParams(
            dimension_semantics=("parallel",)),
    )(x, l_mat, r_mat, shift_vec, w1r, b1, w2, b2)
    return out.reshape(n, 1)


# ------------------------------- forward -------------------------------
def forward(x, params):
    # Fold conv bias + eval-mode BatchNorm into one per-channel scale/shift.
    inv_std = 1.0 / jnp.sqrt(params["bn_var"] + BN_EPS)
    scale = params["bn_gamma"] * inv_std                                    # (4,)
    shift = params["bn_beta"] + (params["conv_b"] - params["bn_mean"]) * scale

    l_mat = jnp.asarray(_L_NP, dtype=jnp.bfloat16)                          # (192, 224)

    # R[c*3+kh, r, dw*128 + oc*25 + pw] = scale[oc]*w[oc,c,kh,kw] with r = 9*pw+3*dw+kw
    wscaled = params["conv_w"] * scale[:, None, None, None]                 # (oc,c,kh,kw)
    r6 = jnp.einsum("dwrp,ochw->chrdop", jnp.asarray(_S_NP), wscaled)       # (3,3,224,2,4,25)
    r6 = r6.reshape(K, K, W_IN, 2, Q)
    r6 = jnp.pad(r6, ((0, 0), (0, 0), (0, 0), (0, 0), (0, COL_BLK - Q)))
    r_mat = r6.reshape(N_IN_CH * K, W_IN, CONV_COLS).astype(jnp.bfloat16)

    shift_vec = jnp.tile(jnp.pad(jnp.repeat(shift, W_POOL), (0, COL_BLK - Q)), 2)
    shift_vec = shift_vec.reshape(1, CONV_COLS).astype(jnp.float32)

    # FC1 weights permuted so that row index matches the kernel's pooled layout
    # (ph, q=oc*25+pw); torch flatten order is oc*625 + ph*25 + pw.
    w1r = params["fc1_w"].reshape(HID, N_OUT_CH, H_POOL, W_POOL)
    w1r = w1r.transpose(2, 1, 3, 0).reshape(H_POOL, Q, HID).astype(jnp.bfloat16)
    b1 = params["fc1_b"].reshape(1, HID).astype(jnp.float32)
    w2 = params["fc2_w"].reshape(1, HID).astype(jnp.float32)
    b2 = params["fc2_b"].reshape(1, 1).astype(jnp.float32)

    return _forward_impl(x, l_mat, r_mat, shift_vec, w1r, b1, w2, b2)


# --------------------------- reference (pure JAX) ---------------------------
def reference_forward(x, params):
    scale = params["bn_gamma"] / jnp.sqrt(params["bn_var"] + BN_EPS)
    y = jax.lax.conv_general_dilated(
        x, params["conv_w"], window_strides=(STRIDE, STRIDE), padding="VALID",
        dimension_numbers=("NCHW", "OIHW", "NCHW"))
    y = y + params["conv_b"].reshape(1, -1, 1, 1)
    y = (y - params["bn_mean"].reshape(1, -1, 1, 1)) * scale.reshape(1, -1, 1, 1) \
        + params["bn_beta"].reshape(1, -1, 1, 1)
    y = jnp.maximum(y, 0.0)
    y = jax.lax.reduce_window(y, -jnp.inf, jax.lax.max,
                              window_dimensions=(1, 1, 2, 2),
                              window_strides=(1, 1, 3, 3), padding="VALID")
    flat = y.reshape(x.shape[0], -1)
    h = flat @ params["fc1_w"].T + params["fc1_b"]
    z = h @ params["fc2_w"].T + params["fc2_b"]
    return jax.nn.sigmoid(z)


def init_params(key):
    ks = jax.random.split(key, 6)
    return {
        "conv_w": jax.random.normal(ks[0], (N_OUT_CH, N_IN_CH, K, K), jnp.float32) * 0.1,
        "conv_b": jax.random.normal(ks[1], (N_OUT_CH,), jnp.float32) * 0.1,
        "bn_gamma": jnp.ones((N_OUT_CH,), jnp.float32),
        "bn_beta": jnp.zeros((N_OUT_CH,), jnp.float32),
        "bn_mean": jnp.zeros((N_OUT_CH,), jnp.float32),
        "bn_var": jnp.ones((N_OUT_CH,), jnp.float32),
        "fc1_w": jax.random.normal(ks[2], (HID, FLAT), jnp.float32) * 0.02,  # torch (out,in)
        "fc1_b": jax.random.normal(ks[3], (HID,), jnp.float32) * 0.02,
        "fc2_w": jax.random.normal(ks[4], (1, HID), jnp.float32) * 0.02,
        "fc2_b": jax.random.normal(ks[5], (1,), jnp.float32) * 0.02,
    }


if __name__ == "__main__":
    key = jax.random.PRNGKey(0)
    k_param, k_x = jax.random.split(key)
    params = init_params(k_param)
    x = jax.random.normal(k_x, (2, N_IN_CH, H_IN, W_IN), jnp.float32)  # (2,3,224,224) NCHW

    out = jax.jit(forward)(x, params)
    out = jax.block_until_ready(out)

    assert out.shape == (2, 1), out.shape
    assert bool(jnp.all(jnp.isfinite(out)))
    assert bool(jnp.all((out >= 0.0) & (out <= 1.0)))  # sigmoid range

    ref = reference_forward(x, params)
    err = float(jnp.max(jnp.abs(out - ref)))
    assert err < 2e-2, f"mismatch vs reference: max abs err = {err}"
    print("KERNEL_OK")
</pallas_src>

<mosaic_0001>
module attributes {stable_mosaic.version = 11 : i64} {
  func.func @_fused_kernel(%arg0: i32, %arg1: memref<1x3x224x224xf32, #tpu.memory_space<vmem>>, %arg2: memref<192x224xbf16, #tpu.memory_space<vmem>>, %arg3: memref<9x224x256xbf16, #tpu.memory_space<vmem>>, %arg4: memref<1x256xf32, #tpu.memory_space<vmem>>, %arg5: memref<25x100x256xbf16, #tpu.memory_space<vmem>>, %arg6: memref<1x256xf32, #tpu.memory_space<vmem>>, %arg7: memref<1x256xf32, #tpu.memory_space<vmem>>, %arg8: memref<1x1xf32, #tpu.memory_space<vmem>>, %arg9: memref<1x1x1xf32, #tpu.memory_space<vmem>>) attributes {dimension_semantics = [#tpu.dimension_semantics<parallel>], iteration_bounds = array<i64: 2>, scalar_prefetch = 0 : i64, scratch_operands = 0 : i64, tpu.core_type = #tpu.core_type<tc>, window_params = [{transform_indices = @transform_0, window_bounds = array<i64: 1, 3, 224, 224>}, {pipeline_mode = #tpu.pipeline_mode<synchronous>, transform_indices = @transform_1, window_bounds = array<i64: 192, 224>}, {pipeline_mode = #tpu.pipeline_mode<synchronous>, transform_indices = @transform_2, window_bounds = array<i64: 9, 224, 256>}, {pipeline_mode = #tpu.pipeline_mode<synchronous>, transform_indices = @transform_3, window_bounds = array<i64: 1, 256>}, {pipeline_mode = #tpu.pipeline_mode<synchronous>, transform_indices = @transform_4, window_bounds = array<i64: 25, 100, 256>}, {pipeline_mode = #tpu.pipeline_mode<synchronous>, transform_indices = @transform_5, window_bounds = array<i64: 1, 256>}, {pipeline_mode = #tpu.pipeline_mode<synchronous>, transform_indices = @transform_6, window_bounds = array<i64: 1, 256>}, {pipeline_mode = #tpu.pipeline_mode<synchronous>, transform_indices = @transform_7, window_bounds = array<i64: 1, 1>}, {transform_indices = @transform_8, window_bounds = array<i64: 1, 1, 1>}]} {
    %cst = arith.constant 0.000000e+00 : f32
    %0 = vector.broadcast %cst : f32 to vector<64x256xf32>
    %c0 = arith.constant 0 : index
    %c0_0 = arith.constant 0 : index
    %c0_1 = arith.constant 0 : index
    %c0_2 = arith.constant 0 : index
    %1 = vector.load %arg1[%c0, %c0_0, %c0_1, %c0_2] : memref<1x3x224x224xf32, #tpu.memory_space<vmem>>, vector<1x1x224x224xf32>
    %2 = vector.shape_cast %1 : vector<1x1x224x224xf32> to vector<224x224xf32>
    %3 = arith.truncf %2 : vector<224x224xf32> to vector<224x224xbf16>
    %c0_3 = arith.constant 0 : index
    %c0_4 = arith.constant 0 : index
    %4 = vector.load %arg2[%c0_3, %c0_4] : memref<192x224xbf16, #tpu.memory_space<vmem>>, vector<192x224xbf16>
    %cst_5 = arith.constant dense<0.000000e+00> : vector<192x224xf32>
    %5 = tpu.matmul %4, %3, %cst_5 {dimension_numbers = #tpu.dot_dimension_numbers<[1], [0], [0], [1], [0, 0, 1, 1], [], []>} : vector<192x224xbf16>, vector<224x224xbf16>, vector<192x224xf32> -> vector<192x224xf32>
    %6 = vector.extract_strided_slice %5 {offsets = [0, 0], sizes = [64, 224], strides = [1, 1]} : vector<192x224xf32> to vector<64x224xf32>
    %7 = arith.truncf %6 : vector<64x224xf32> to vector<64x224xbf16>
    %c0_6 = arith.constant 0 : index
    %c0_7 = arith.constant 0 : index
    %c0_8 = arith.constant 0 : index
    %8 = vector.load %arg3[%c0_6, %c0_7, %c0_8] : memref<9x224x256xbf16, #tpu.memory_space<vmem>>, vector<1x224x256xbf16>
    %9 = vector.shape_cast %8 : vector<1x224x256xbf16> to vector<224x256xbf16>
    %cst_9 = arith.constant dense<0.000000e+00> : vector<64x256xf32>
    %10 = tpu.matmul %7, %9, %cst_9 {dimension_numbers = #tpu.dot_dimension_numbers<[1], [0], [0], [1], [0, 0, 1, 1], [], []>} : vector<64x224xbf16>, vector<224x256xbf16>, vector<64x256xf32> -> vector<64x256xf32>
    %11 = arith.addf %0, %10 : vector<64x256xf32>
    %12 = vector.extract_strided_slice %5 {offsets = [64, 0], sizes = [64, 224], strides = [1, 1]} : vector<192x224xf32> to vector<64x224xf32>
    %13 = arith.truncf %12 : vector<64x224xf32> to vector<64x224xbf16>
    %c1 = arith.constant 1 : index
    %c0_10 = arith.constant 0 : index
    %c0_11 = arith.constant 0 : index
    %14 = vector.load %arg3[%c1, %c0_10, %c0_11] : memref<9x224x256xbf16, #tpu.memory_space<vmem>>, vector<1x224x256xbf16>
    %15 = vector.shape_cast %14 : vector<1x224x256xbf16> to vector<224x256xbf16>
    %cst_12 = arith.constant dense<0.000000e+00> : vector<64x256xf32>
    %16 = tpu.matmul %13, %15, %cst_12 {dimension_numbers = #tpu.dot_dimension_numbers<[1], [0], [0], [1], [0, 0, 1, 1], [], []>} : vector<64x224xbf16>, vector<224x256xbf16>, vector<64x256xf32> -> vector<64x256xf32>
    %17 = arith.addf %11, %16 : vector<64x256xf32>
    %18 = vector.extract_strided_slice %5 {offsets = [128, 0], sizes = [64, 224], strides = [1, 1]} : vector<192x224xf32> to vector<64x224xf32>
    %19 = arith.truncf %18 : vector<64x224xf32> to vector<64x224xbf16>
    %c2 = arith.constant 2 : index
    %c0_13 = arith.constant 0 : index
    %c0_14 = arith.constant 0 : index
    %20 = vector.load %arg3[%c2, %c0_13, %c0_14] : memref<9x224x256xbf16, #tpu.memory_space<vmem>>, vector<1x224x256xbf16>
    %21 = vector.shape_cast %20 : vector<1x224x256xbf16> to vector<224x256xbf16>
    %cst_15 = arith.constant dense<0.000000e+00> : vector<64x256xf32>
    %22 = tpu.matmul %19, %21, %cst_15 {dimension_numbers = #tpu.dot_dimension_numbers<[1], [0], [0], [1], [0, 0, 1, 1], [], []>} : vector<64x224xbf16>, vector<224x256xbf16>, vector<64x256xf32> -> vector<64x256xf32>
    %23 = arith.addf %17, %22 : vector<64x256xf32>
    %c0_16 = arith.constant 0 : index
    %c1_17 = arith.constant 1 : index
    %c0_18 = arith.constant 0 : index
    %c0_19 = arith.constant 0 : index
    %24 = vector.load %arg1[%c0_16, %c1_17, %c0_18, %c0_19] : memref<1x3x224x224xf32, #tpu.memory_space<vmem>>, vector<1x1x224x224xf32>
    %25 = vector.shape_cast %24 : vector<1x1x224x224xf32> to vector<224x224xf32>
    %26 = arith.truncf %25 : vector<224x224xf32> to vector<224x224xbf16>
    %c0_20 = arith.constant 0 : index
    %c0_21 = arith.constant 0 : index
    %27 = vector.load %arg2[%c0_20, %c0_21] : memref<192x224xbf16, #tpu.memory_space<vmem>>, vector<192x224xbf16>
    %cst_22 = arith.constant dense<0.000000e+00> : vector<192x224xf32>
    %28 = tpu.matmul %27, %26, %cst_22 {dimension_numbers = #tpu.dot_dimension_numbers<[1], [0], [0], [1], [0, 0, 1, 1], [], []>} : vector<192x224xbf16>, vector<224x224xbf16>, vector<192x224xf32> -> vector<192x224xf32>
    %29 = vector.extract_strided_slice %28 {offsets = [0, 0], sizes = [64, 224], strides = [1, 1]} : vector<192x224xf32> to vector<64x224xf32>
    %30 = arith.truncf %29 : vector<64x224xf32> to vector<64x224xbf16>
    %c3 = arith.constant 3 : index
    %c0_23 = arith.constant 0 : index
    %c0_24 = arith.constant 0 : index
    %31 = vector.load %arg3[%c3, %c0_23, %c0_24] : memref<9x224x256xbf16, #tpu.memory_space<vmem>>, vector<1x224x256xbf16>
    %32 = vector.shape_cast %31 : vector<1x224x256xbf16> to vector<224x256xbf16>
    %cst_25 = arith.constant dense<0.000000e+00> : vector<64x256xf32>
    %33 = tpu.matmul %30, %32, %cst_25 {dimension_numbers = #tpu.dot_dimension_numbers<[1], [0], [0], [1], [0, 0, 1, 1], [], []>} : vector<64x224xbf16>, vector<224x256xbf16>, vector<64x256xf32> -> vector<64x256xf32>
    %34 = arith.addf %23, %33 : vector<64x256xf32>
    %35 = vector.extract_strided_slice %28 {offsets = [64, 0], sizes = [64, 224], strides = [1, 1]} : vector<192x224xf32> to vector<64x224xf32>
    %36 = arith.truncf %35 : vector<64x224xf32> to vector<64x224xbf16>
    %c4 = arith.constant 4 : index
    %c0_26 = arith.constant 0 : index
    %c0_27 = arith.constant 0 : index
    %37 = vector.load %arg3[%c4, %c0_26, %c0_27] : memref<9x224x256xbf16, #tpu.memory_space<vmem>>, vector<1x224x256xbf16>
    %38 = vector.shape_cast %37 : vector<1x224x256xbf16> to vector<224x256xbf16>
    %cst_28 = arith.constant dense<0.000000e+00> : vector<64x256xf32>
    %39 = tpu.matmul %36, %38, %cst_28 {dimension_numbers = #tpu.dot_dimension_numbers<[1], [0], [0], [1], [0, 0, 1, 1], [], []>} : vector<64x224xbf16>, vector<224x256xbf16>, vector<64x256xf32> -> vector<64x256xf32>
    %40 = arith.addf %34, %39 : vector<64x256xf32>
    %41 = vector.extract_strided_slice %28 {offsets = [128, 0], sizes = [64, 224], strides = [1, 1]} : vector<192x224xf32> to vector<64x224xf32>
    %42 = arith.truncf %41 : vector<64x224xf32> to vector<64x224xbf16>
    %c5 = arith.constant 5 : index
    %c0_29 = arith.constant 0 : index
    %c0_30 = arith.constant 0 : index
    %43 = vector.load %arg3[%c5, %c0_29, %c0_30] : memref<9x224x256xbf16, #tpu.memory_space<vmem>>, vector<1x224x256xbf16>
    %44 = vector.shape_cast %43 : vector<1x224x256xbf16> to vector<224x256xbf16>
    %cst_31 = arith.constant dense<0.000000e+00> : vector<64x256xf32>
    %45 = tpu.matmul %42, %44, %cst_31 {dimension_numbers = #tpu.dot_dimension_numbers<[1], [0], [0], [1], [0, 0, 1, 1], [], []>} : vector<64x224xbf16>, vector<224x256xbf16>, vector<64x256xf32> -> vector<64x256xf32>
    %46 = arith.addf %40, %45 : vector<64x256xf32>
    %c0_32 = arith.constant 0 : index
    %c2_33 = arith.constant 2 : index
    %c0_34 = arith.constant 0 : index
    %c0_35 = arith.constant 0 : index
    %47 = vector.load %arg1[%c0_32, %c2_33, %c0_34, %c0_35] : memref<1x3x224x224xf32, #tpu.memory_space<vmem>>, vector<1x1x224x224xf32>
    %48 = vector.shape_cast %47 : vector<1x1x224x224xf32> to vector<224x224xf32>
    %49 = arith.truncf %48 : vector<224x224xf32> to vector<224x224xbf16>
    %c0_36 = arith.constant 0 : index
    %c0_37 = arith.constant 0 : index
    %50 = vector.load %arg2[%c0_36, %c0_37] : memref<192x224xbf16, #tpu.memory_space<vmem>>, vector<192x224xbf16>
    %cst_38 = arith.constant dense<0.000000e+00> : vector<192x224xf32>
    %51 = tpu.matmul %50, %49, %cst_38 {dimension_numbers = #tpu.dot_dimension_numbers<[1], [0], [0], [1], [0, 0, 1, 1], [], []>} : vector<192x224xbf16>, vector<224x224xbf16>, vector<192x224xf32> -> vector<192x224xf32>
    %52 = vector.extract_strided_slice %51 {offsets = [0, 0], sizes = [64, 224], strides = [1, 1]} : vector<192x224xf32> to vector<64x224xf32>
    %53 = arith.truncf %52 : vector<64x224xf32> to vector<64x224xbf16>
    %c6 = arith.constant 6 : index
    %c0_39 = arith.constant 0 : index
    %c0_40 = arith.constant 0 : index
    %54 = vector.load %arg3[%c6, %c0_39, %c0_40] : memref<9x224x256xbf16, #tpu.memory_space<vmem>>, vector<1x224x256xbf16>
    %55 = vector.shape_cast %54 : vector<1x224x256xbf16> to vector<224x256xbf16>
    %cst_41 = arith.constant dense<0.000000e+00> : vector<64x256xf32>
    %56 = tpu.matmul %53, %55, %cst_41 {dimension_numbers = #tpu.dot_dimension_numbers<[1], [0], [0], [1], [0, 0, 1, 1], [], []>} : vector<64x224xbf16>, vector<224x256xbf16>, vector<64x256xf32> -> vector<64x256xf32>
    %57 = arith.addf %46, %56 : vector<64x256xf32>
    %58 = vector.extract_strided_slice %51 {offsets = [64, 0], sizes = [64, 224], strides = [1, 1]} : vector<192x224xf32> to vector<64x224xf32>
    %59 = arith.truncf %58 : vector<64x224xf32> to vector<64x224xbf16>
    %c7 = arith.constant 7 : index
    %c0_42 = arith.constant 0 : index
    %c0_43 = arith.constant 0 : index
    %60 = vector.load %arg3[%c7, %c0_42, %c0_43] : memref<9x224x256xbf16, #tpu.memory_space<vmem>>, vector<1x224x256xbf16>
    %61 = vector.shape_cast %60 : vector<1x224x256xbf16> to vector<224x256xbf16>
    %cst_44 = arith.constant dense<0.000000e+00> : vector<64x256xf32>
    %62 = tpu.matmul %59, %61, %cst_44 {dimension_numbers = #tpu.dot_dimension_numbers<[1], [0], [0], [1], [0, 0, 1, 1], [], []>} : vector<64x224xbf16>, vector<224x256xbf16>, vector<64x256xf32> -> vector<64x256xf32>
    %63 = arith.addf %57, %62 : vector<64x256xf32>
    %64 = vector.extract_strided_slice %51 {offsets = [128, 0], sizes = [64, 224], strides = [1, 1]} : vector<192x224xf32> to vector<64x224xf32>
    %65 = arith.truncf %64 : vector<64x224xf32> to vector<64x224xbf16>
    %c8 = arith.constant 8 : index
    %c0_45 = arith.constant 0 : index
    %c0_46 = arith.constant 0 : index
    %66 = vector.load %arg3[%c8, %c0_45, %c0_46] : memref<9x224x256xbf16, #tpu.memory_space<vmem>>, vector<1x224x256xbf16>
    %67 = vector.shape_cast %66 : vector<1x224x256xbf16> to vector<224x256xbf16>
    %cst_47 = arith.constant dense<0.000000e+00> : vector<64x256xf32>
    %68 = tpu.matmul %65, %67, %cst_47 {dimension_numbers = #tpu.dot_dimension_numbers<[1], [0], [0], [1], [0, 0, 1, 1], [], []>} : vector<64x224xbf16>, vector<224x256xbf16>, vector<64x256xf32> -> vector<64x256xf32>
    %69 = arith.addf %63, %68 : vector<64x256xf32>
    %c0_48 = arith.constant 0 : index
    %c0_49 = arith.constant 0 : index
    %70 = vector.load %arg4[%c0_48, %c0_49] : memref<1x256xf32, #tpu.memory_space<vmem>>, vector<1x256xf32>
    %71 = vector.broadcast %70 : vector<1x256xf32> to vector<64x256xf32>
    %72 = arith.addf %69, %71 : vector<64x256xf32>
    %cst_50 = arith.constant 0.000000e+00 : f32
    %73 = vector.broadcast %cst_50 : f32 to vector<64x256xf32>
    %74 = arith.maximumf %72, %73 : vector<64x256xf32>
    %75 = vector.extract_strided_slice %74 {offsets = [0, 0], sizes = [32, 128], strides = [1, 1]} : vector<64x256xf32> to vector<32x128xf32>
    %76 = vector.extract_strided_slice %74 {offsets = [0, 128], sizes = [32, 128], strides = [1, 1]} : vector<64x256xf32> to vector<32x128xf32>
    %77 = arith.maximumf %75, %76 : vector<32x128xf32>
    %78 = vector.extract_strided_slice %74 {offsets = [32, 0], sizes = [32, 128], strides = [1, 1]} : vector<64x256xf32> to vector<32x128xf32>
    %79 = vector.extract_strided_slice %74 {offsets = [32, 128], sizes = [32, 128], strides = [1, 1]} : vector<64x256xf32> to vector<32x128xf32>
    %80 = arith.maximumf %78, %79 : vector<32x128xf32>
    %81 = arith.maximumf %77, %80 : vector<32x128xf32>
    %c0_51 = arith.constant 0 : index
    %c0_52 = arith.constant 0 : index
    %82 = vector.load %arg6[%c0_51, %c0_52] : memref<1x256xf32, #tpu.memory_space<vmem>>, vector<1x256xf32>
    %83 = vector.extract_strided_slice %81 {offsets = [0, 0], sizes = [1, 100], strides = [1, 1]} : vector<32x128xf32> to vector<1x100xf32>
    %84 = arith.truncf %83 : vector<1x100xf32> to vector<1x100xbf16>
    %c0_53 = arith.constant 0 : index
    %c0_54 = arith.constant 0 : index
    %c0_55 = arith.constant 0 : index
    %85 = vector.load %arg5[%c0_53, %c0_54, %c0_55] : memref<25x100x256xbf16, #tpu.memory_space<vmem>>, vector<1x100x256xbf16>
    %86 = vector.shape_cast %85 : vector<1x100x256xbf16> to vector<100x256xbf16>
    %cst_56 = arith.constant dense<0.000000e+00> : vector<1x256xf32>
    %87 = tpu.matmul %84, %86, %cst_56 {dimension_numbers = #tpu.dot_dimension_numbers<[1], [0], [0], [1], [0, 0, 1, 1], [], []>} : vector<1x100xbf16>, vector<100x256xbf16>, vector<1x256xf32> -> vector<1x256xf32>
    %88 = arith.addf %82, %87 : vector<1x256xf32>
    %89 = vector.extract_strided_slice %81 {offsets = [1, 0], sizes = [1, 100], strides = [1, 1]} : vector<32x128xf32> to vector<1x100xf32>
    %90 = arith.truncf %89 : vector<1x100xf32> to vector<1x100xbf16>
    %c1_57 = arith.constant 1 : index
    %c0_58 = arith.constant 0 : index
    %c0_59 = arith.constant 0 : index
    %91 = vector.load %arg5[%c1_57, %c0_58, %c0_59] : memref<25x100x256xbf16, #tpu.memory_space<vmem>>, vector<1x100x256xbf16>
    %92 = vector.shape_cast %91 : vector<1x100x256xbf16> to vector<100x256xbf16>
    %cst_60 = arith.constant dense<0.000000e+00> : vector<1x256xf32>
    %93 = tpu.matmul %90, %92, %cst_60 {dimension_numbers = #tpu.dot_dimension_numbers<[1], [0], [0], [1], [0, 0, 1, 1], [], []>} : vector<1x100xbf16>, vector<100x256xbf16>, vector<1x256xf32> -> vector<1x256xf32>
    %94 = arith.addf %88, %93 : vector<1x256xf32>
    %95 = vector.extract_strided_slice %81 {offsets = [2, 0], sizes = [1, 100], strides = [1, 1]} : vector<32x128xf32> to vector<1x100xf32>
    %96 = arith.truncf %95 : vector<1x100xf32> to vector<1x100xbf16>
    %c2_61 = arith.constant 2 : index
    %c0_62 = arith.constant 0 : index
    %c0_63 = arith.constant 0 : index
    %97 = vector.load %arg5[%c2_61, %c0_62, %c0_63] : memref<25x100x256xbf16, #tpu.memory_space<vmem>>, vector<1x100x256xbf16>
    %98 = vector.shape_cast %97 : vector<1x100x256xbf16> to vector<100x256xbf16>
    %cst_64 = arith.constant dense<0.000000e+00> : vector<1x256xf32>
    %99 = tpu.matmul %96, %98, %cst_64 {dimension_numbers = #tpu.dot_dimension_numbers<[1], [0], [0], [1], [0, 0, 1, 1], [], []>} : vector<1x100xbf16>, vector<100x256xbf16>, vector<1x256xf32> -> vector<1x256xf32>
    %100 = arith.addf %94, %99 : vector<1x256xf32>
    %101 = vector.extract_strided_slice %81 {offsets = [3, 0], sizes = [1, 100], strides = [1, 1]} : vector<32x128xf32> to vector<1x100xf32>
    %102 = arith.truncf %101 : vector<1x100xf32> to vector<1x100xbf16>
    %c3_65 = arith.constant 3 : index
    %c0_66 = arith.constant 0 : index
    %c0_67 = arith.constant 0 : index
    %103 = vector.load %arg5[%c3_65, %c0_66, %c0_67] : memref<25x100x256xbf16, #tpu.memory_space<vmem>>, vector<1x100x256xbf16>
    %104 = vector.shape_cast %103 : vector<1x100x256xbf16> to vector<100x256xbf16>
    %cst_68 = arith.constant dense<0.000000e+00> : vector<1x256xf32>
    %105 = tpu.matmul %102, %104, %cst_68 {dimension_numbers = #tpu.dot_dimension_numbers<[1], [0], [0], [1], [0, 0, 1, 1], [], []>} : vector<1x100xbf16>, vector<100x256xbf16>, vector<1x256xf32> -> vector<1x256xf32>
    %106 = arith.addf %100, %105 : vector<1x256xf32>
    %107 = vector.extract_strided_slice %81 {offsets = [4, 0], sizes = [1, 100], strides = [1, 1]} : vector<32x128xf32> to vector<1x100xf32>
    %108 = arith.truncf %107 : vector<1x100xf32> to vector<1x100xbf16>
    %c4_69 = arith.constant 4 : index
    %c0_70 = arith.constant 0 : index
    %c0_71 = arith.constant 0 : index
    %109 = vector.load %arg5[%c4_69, %c0_70, %c0_71] : memref<25x100x256xbf16, #tpu.memory_space<vmem>>, vector<1x100x256xbf16>
    %110 = vector.shape_cast %109 : vector<1x100x256xbf16> to vector<100x256xbf16>
    %cst_72 = arith.constant dense<0.000000e+00> : vector<1x256xf32>
    %111 = tpu.matmul %108, %110, %cst_72 {dimension_numbers = #tpu.dot_dimension_numbers<[1], [0], [0], [1], [0, 0, 1, 1], [], []>} : vector<1x100xbf16>, vector<100x256xbf16>, vector<1x256xf32> -> vector<1x256xf32>
    %112 = arith.addf %106, %111 : vector<1x256xf32>
    %113 = vector.extract_strided_slice %81 {offsets = [5, 0], sizes = [1, 100], strides = [1, 1]} : vector<32x128xf32> to vector<1x100xf32>
    %114 = arith.truncf %113 : vector<1x100xf32> to vector<1x100xbf16>
    %c5_73 = arith.constant 5 : index
    %c0_74 = arith.constant 0 : index
    %c0_75 = arith.constant 0 : index
    %115 = vector.load %arg5[%c5_73, %c0_74, %c0_75] : memref<25x100x256xbf16, #tpu.memory_space<vmem>>, vector<1x100x256xbf16>
    %116 = vector.shape_cast %115 : vector<1x100x256xbf16> to vector<100x256xbf16>
    %cst_76 = arith.constant dense<0.000000e+00> : vector<1x256xf32>
    %117 = tpu.matmul %114, %116, %cst_76 {dimension_numbers = #tpu.dot_dimension_numbers<[1], [0], [0], [1], [0, 0, 1, 1], [], []>} : vector<1x100xbf16>, vector<100x256xbf16>, vector<1x256xf32> -> vector<1x256xf32>
    %118 = arith.addf %112, %117 : vector<1x256xf32>
    %119 = vector.extract_strided_slice %81 {offsets = [6, 0], sizes = [1, 100], strides = [1, 1]} : vector<32x128xf32> to vector<1x100xf32>
    %120 = arith.truncf %119 : vector<1x100xf32> to vector<1x100xbf16>
    %c6_77 = arith.constant 6 : index
    %c0_78 = arith.constant 0 : index
    %c0_79 = arith.constant 0 : index
    %121 = vector.load %arg5[%c6_77, %c0_78, %c0_79] : memref<25x100x256xbf16, #tpu.memory_space<vmem>>, vector<1x100x256xbf16>
    %122 = vector.shape_cast %121 : vector<1x100x256xbf16> to vector<100x256xbf16>
    %cst_80 = arith.constant dense<0.000000e+00> : vector<1x256xf32>
    %123 = tpu.matmul %120, %122, %cst_80 {dimension_numbers = #tpu.dot_dimension_numbers<[1], [0], [0], [1], [0, 0, 1, 1], [], []>} : vector<1x100xbf16>, vector<100x256xbf16>, vector<1x256xf32> -> vector<1x256xf32>
    %124 = arith.addf %118, %123 : vector<1x256xf32>
    %125 = vector.extract_strided_slice %81 {offsets = [7, 0], sizes = [1, 100], strides = [1, 1]} : vector<32x128xf32> to vector<1x100xf32>
    %126 = arith.truncf %125 : vector<1x100xf32> to vector<1x100xbf16>
    %c7_81 = arith.constant 7 : index
    %c0_82 = arith.constant 0 : index
    %c0_83 = arith.constant 0 : index
    %127 = vector.load %arg5[%c7_81, %c0_82, %c0_83] : memref<25x100x256xbf16, #tpu.memory_space<vmem>>, vector<1x100x256xbf16>
    %128 = vector.shape_cast %127 : vector<1x100x256xbf16> to vector<100x256xbf16>
    %cst_84 = arith.constant dense<0.000000e+00> : vector<1x256xf32>
    %129 = tpu.matmul %126, %128, %cst_84 {dimension_numbers = #tpu.dot_dimension_numbers<[1], [0], [0], [1], [0, 0, 1, 1], [], []>} : vector<1x100xbf16>, vector<100x256xbf16>, vector<1x256xf32> -> vector<1x256xf32>
    %130 = arith.addf %124, %129 : vector<1x256xf32>
    %131 = vector.extract_strided_slice %81 {offsets = [8, 0], sizes = [1, 100], strides = [1, 1]} : vector<32x128xf32> to vector<1x100xf32>
    %132 = arith.truncf %131 : vector<1x100xf32> to vector<1x100xbf16>
    %c8_85 = arith.constant 8 : index
    %c0_86 = arith.constant 0 : index
    %c0_87 = arith.constant 0 : index
    %133 = vector.load %arg5[%c8_85, %c0_86, %c0_87] : memref<25x100x256xbf16, #tpu.memory_space<vmem>>, vector<1x100x256xbf16>
    %134 = vector.shape_cast %133 : vector<1x100x256xbf16> to vector<100x256xbf16>
    %cst_88 = arith.constant dense<0.000000e+00> : vector<1x256xf32>
    %135 = tpu.matmul %132, %134, %cst_88 {dimension_numbers = #tpu.dot_dimension_numbers<[1], [0], [0], [1], [0, 0, 1, 1], [], []>} : vector<1x100xbf16>, vector<100x256xbf16>, vector<1x256xf32> -> vector<1x256xf32>
    %136 = arith.addf %130, %135 : vector<1x256xf32>
    %137 = vector.extract_strided_slice %81 {offsets = [9, 0], sizes = [1, 100], strides = [1, 1]} : vector<32x128xf32> to vector<1x100xf32>
    %138 = arith.truncf %137 : vector<1x100xf32> to vector<1x100xbf16>
    %c9 = arith.constant 9 : index
    %c0_89 = arith.constant 0 : index
    %c0_90 = arith.constant 0 : index
    %139 = vector.load %arg5[%c9, %c0_89, %c0_90] : memref<25x100x256xbf16, #tpu.memory_space<vmem>>, vector<1x100x256xbf16>
    %140 = vector.shape_cast %139 : vector<1x100x256xbf16> to vector<100x256xbf16>
    %cst_91 = arith.constant dense<0.000000e+00> : vector<1x256xf32>
    %141 = tpu.matmul %138, %140, %cst_91 {dimension_numbers = #tpu.dot_dimension_numbers<[1], [0], [0], [1], [0, 0, 1, 1], [], []>} : vector<1x100xbf16>, vector<100x256xbf16>, vector<1x256xf32> -> vector<1x256xf32>
    %142 = arith.addf %136, %141 : vector<1x256xf32>
    %143 = vector.extract_strided_slice %81 {offsets = [10, 0], sizes = [1, 100], strides = [1, 1]} : vector<32x128xf32> to vector<1x100xf32>
    %144 = arith.truncf %143 : vector<1x100xf32> to vector<1x100xbf16>
    %c10 = arith.constant 10 : index
    %c0_92 = arith.constant 0 : index
    %c0_93 = arith.constant 0 : index
    %145 = vector.load %arg5[%c10, %c0_92, %c0_93] : memref<25x100x256xbf16, #tpu.memory_space<vmem>>, vector<1x100x256xbf16>
    %146 = vector.shape_cast %145 : vector<1x100x256xbf16> to vector<100x256xbf16>
    %cst_94 = arith.constant dense<0.000000e+00> : vector<1x256xf32>
    %147 = tpu.matmul %144, %146, %cst_94 {dimension_numbers = #tpu.dot_dimension_numbers<[1], [0], [0], [1], [0, 0, 1, 1], [], []>} : vector<1x100xbf16>, vector<100x256xbf16>, vector<1x256xf32> -> vector<1x256xf32>
    %148 = arith.addf %142, %147 : vector<1x256xf32>
    %149 = vector.extract_strided_slice %81 {offsets = [11, 0], sizes = [1, 100], strides = [1, 1]} : vector<32x128xf32> to vector<1x100xf32>
    %150 = arith.truncf %149 : vector<1x100xf32> to vector<1x100xbf16>
    %c11 = arith.constant 11 : index
    %c0_95 = arith.constant 0 : index
    %c0_96 = arith.constant 0 : index
    %151 = vector.load %arg5[%c11, %c0_95, %c0_96] : memref<25x100x256xbf16, #tpu.memory_space<vmem>>, vector<1x100x256xbf16>
    %152 = vector.shape_cast %151 : vector<1x100x256xbf16> to vector<100x256xbf16>
    %cst_97 = arith.constant dense<0.000000e+00> : vector<1x256xf32>
    %153 = tpu.matmul %150, %152, %cst_97 {dimension_numbers = #tpu.dot_dimension_numbers<[1], [0], [0], [1], [0, 0, 1, 1], [], []>} : vector<1x100xbf16>, vector<100x256xbf16>, vector<1x256xf32> -> vector<1x256xf32>
    %154 = arith.addf %148, %153 : vector<1x256xf32>
    %155 = vector.extract_strided_slice %81 {offsets = [12, 0], sizes = [1, 100], strides = [1, 1]} : vector<32x128xf32> to vector<1x100xf32>
    %156 = arith.truncf %155 : vector<1x100xf32> to vector<1x100xbf16>
    %c12 = arith.constant 12 : index
    %c0_98 = arith.constant 0 : index
    %c0_99 = arith.constant 0 : index
    %157 = vector.load %arg5[%c12, %c0_98, %c0_99] : memref<25x100x256xbf16, #tpu.memory_space<vmem>>, vector<1x100x256xbf16>
    %158 = vector.shape_cast %157 : vector<1x100x256xbf16> to vector<100x256xbf16>
    %cst_100 = arith.constant dense<0.000000e+00> : vector<1x256xf32>
    %159 = tpu.matmul %156, %158, %cst_100 {dimension_numbers = #tpu.dot_dimension_numbers<[1], [0], [0], [1], [0, 0, 1, 1], [], []>} : vector<1x100xbf16>, vector<100x256xbf16>, vector<1x256xf32> -> vector<1x256xf32>
    %160 = arith.addf %154, %159 : vector<1x256xf32>
    %161 = vector.extract_strided_slice %81 {offsets = [13, 0], sizes = [1, 100], strides = [1, 1]} : vector<32x128xf32> to vector<1x100xf32>
    %162 = arith.truncf %161 : vector<1x100xf32> to vector<1x100xbf16>
    %c13 = arith.constant 13 : index
    %c0_101 = arith.constant 0 : index
    %c0_102 = arith.constant 0 : index
    %163 = vector.load %arg5[%c13, %c0_101, %c0_102] : memref<25x100x256xbf16, #tpu.memory_space<vmem>>, vector<1x100x256xbf16>
    %164 = vector.shape_cast %163 : vector<1x100x256xbf16> to vector<100x256xbf16>
    %cst_103 = arith.constant dense<0.000000e+00> : vector<1x256xf32>
    %165 = tpu.matmul %162, %164, %cst_103 {dimension_numbers = #tpu.dot_dimension_numbers<[1], [0], [0], [1], [0, 0, 1, 1], [], []>} : vector<1x100xbf16>, vector<100x256xbf16>, vector<1x256xf32> -> vector<1x256xf32>
    %166 = arith.addf %160, %165 : vector<1x256xf32>
    %167 = vector.extract_strided_slice %81 {offsets = [14, 0], sizes = [1, 100], strides = [1, 1]} : vector<32x128xf32> to vector<1x100xf32>
    %168 = arith.truncf %167 : vector<1x100xf32> to vector<1x100xbf16>
    %c14 = arith.constant 14 : index
    %c0_104 = arith.constant 0 : index
    %c0_105 = arith.constant 0 : index
    %169 = vector.load %arg5[%c14, %c0_104, %c0_105] : memref<25x100x256xbf16, #tpu.memory_space<vmem>>, vector<1x100x256xbf16>
    %170 = vector.shape_cast %169 : vector<1x100x256xbf16> to vector<100x256xbf16>
    %cst_106 = arith.constant dense<0.000000e+00> : vector<1x256xf32>
    %171 = tpu.matmul %168, %170, %cst_106 {dimension_numbers = #tpu.dot_dimension_numbers<[1], [0], [0], [1], [0, 0, 1, 1], [], []>} : vector<1x100xbf16>, vector<100x256xbf16>, vector<1x256xf32> -> vector<1x256xf32>
    %172 = arith.addf %166, %171 : vector<1x256xf32>
    %173 = vector.extract_strided_slice %81 {offsets = [15, 0], sizes = [1, 100], strides = [1, 1]} : vector<32x128xf32> to vector<1x100xf32>
    %174 = arith.truncf %173 : vector<1x100xf32> to vector<1x100xbf16>
    %c15 = arith.constant 15 : index
    %c0_107 = arith.constant 0 : index
    %c0_108 = arith.constant 0 : index
    %175 = vector.load %arg5[%c15, %c0_107, %c0_108] : memref<25x100x256xbf16, #tpu.memory_space<vmem>>, vector<1x100x256xbf16>
    %176 = vector.shape_cast %175 : vector<1x100x256xbf16> to vector<100x256xbf16>
    %cst_109 = arith.constant dense<0.000000e+00> : vector<1x256xf32>
    %177 = tpu.matmul %174, %176, %cst_109 {dimension_numbers = #tpu.dot_dimension_numbers<[1], [0], [0], [1], [0, 0, 1, 1], [], []>} : vector<1x100xbf16>, vector<100x256xbf16>, vector<1x256xf32> -> vector<1x256xf32>
    %178 = arith.addf %172, %177 : vector<1x256xf32>
    %179 = vector.extract_strided_slice %81 {offsets = [16, 0], sizes = [1, 100], strides = [1, 1]} : vector<32x128xf32> to vector<1x100xf32>
    %180 = arith.truncf %179 : vector<1x100xf32> to vector<1x100xbf16>
    %c16 = arith.constant 16 : index
    %c0_110 = arith.constant 0 : index
    %c0_111 = arith.constant 0 : index
    %181 = vector.load %arg5[%c16, %c0_110, %c0_111] : memref<25x100x256xbf16, #tpu.memory_space<vmem>>, vector<1x100x256xbf16>
    %182 = vector.shape_cast %181 : vector<1x100x256xbf16> to vector<100x256xbf16>
    %cst_112 = arith.constant dense<0.000000e+00> : vector<1x256xf32>
    %183 = tpu.matmul %180, %182, %cst_112 {dimension_numbers = #tpu.dot_dimension_numbers<[1], [0], [0], [1], [0, 0, 1, 1], [], []>} : vector<1x100xbf16>, vector<100x256xbf16>, vector<1x256xf32> -> vector<1x256xf32>
    %184 = arith.addf %178, %183 : vector<1x256xf32>
    %185 = vector.extract_strided_slice %81 {offsets = [17, 0], sizes = [1, 100], strides = [1, 1]} : vector<32x128xf32> to vector<1x100xf32>
    %186 = arith.truncf %185 : vector<1x100xf32> to vector<1x100xbf16>
    %c17 = arith.constant 17 : index
    %c0_113 = arith.constant 0 : index
    %c0_114 = arith.constant 0 : index
    %187 = vector.load %arg5[%c17, %c0_113, %c0_114] : memref<25x100x256xbf16, #tpu.memory_space<vmem>>, vector<1x100x256xbf16>
    %188 = vector.shape_cast %187 : vector<1x100x256xbf16> to vector<100x256xbf16>
    %cst_115 = arith.constant dense<0.000000e+00> : vector<1x256xf32>
    %189 = tpu.matmul %186, %188, %cst_115 {dimension_numbers = #tpu.dot_dimension_numbers<[1], [0], [0], [1], [0, 0, 1, 1], [], []>} : vector<1x100xbf16>, vector<100x256xbf16>, vector<1x256xf32> -> vector<1x256xf32>
    %190 = arith.addf %184, %189 : vector<1x256xf32>
    %191 = vector.extract_strided_slice %81 {offsets = [18, 0], sizes = [1, 100], strides = [1, 1]} : vector<32x128xf32> to vector<1x100xf32>
    %192 = arith.truncf %191 : vector<1x100xf32> to vector<1x100xbf16>
    %c18 = arith.constant 18 : index
    %c0_116 = arith.constant 0 : index
    %c0_117 = arith.constant 0 : index
    %193 = vector.load %arg5[%c18, %c0_116, %c0_117] : memref<25x100x256xbf16, #tpu.memory_space<vmem>>, vector<1x100x256xbf16>
    %194 = vector.shape_cast %193 : vector<1x100x256xbf16> to vector<100x256xbf16>
    %cst_118 = arith.constant dense<0.000000e+00> : vector<1x256xf32>
    %195 = tpu.matmul %192, %194, %cst_118 {dimension_numbers = #tpu.dot_dimension_numbers<[1], [0], [0], [1], [0, 0, 1, 1], [], []>} : vector<1x100xbf16>, vector<100x256xbf16>, vector<1x256xf32> -> vector<1x256xf32>
    %196 = arith.addf %190, %195 : vector<1x256xf32>
    %197 = vector.extract_strided_slice %81 {offsets = [19, 0], sizes = [1, 100], strides = [1, 1]} : vector<32x128xf32> to vector<1x100xf32>
    %198 = arith.truncf %197 : vector<1x100xf32> to vector<1x100xbf16>
    %c19 = arith.constant 19 : index
    %c0_119 = arith.constant 0 : index
    %c0_120 = arith.constant 0 : index
    %199 = vector.load %arg5[%c19, %c0_119, %c0_120] : memref<25x100x256xbf16, #tpu.memory_space<vmem>>, vector<1x100x256xbf16>
    %200 = vector.shape_cast %199 : vector<1x100x256xbf16> to vector<100x256xbf16>
    %cst_121 = arith.constant dense<0.000000e+00> : vector<1x256xf32>
    %201 = tpu.matmul %198, %200, %cst_121 {dimension_numbers = #tpu.dot_dimension_numbers<[1], [0], [0], [1], [0, 0, 1, 1], [], []>} : vector<1x100xbf16>, vector<100x256xbf16>, vector<1x256xf32> -> vector<1x256xf32>
    %202 = arith.addf %196, %201 : vector<1x256xf32>
    %203 = vector.extract_strided_slice %81 {offsets = [20, 0], sizes = [1, 100], strides = [1, 1]} : vector<32x128xf32> to vector<1x100xf32>
    %204 = arith.truncf %203 : vector<1x100xf32> to vector<1x100xbf16>
    %c20 = arith.constant 20 : index
    %c0_122 = arith.constant 0 : index
    %c0_123 = arith.constant 0 : index
    %205 = vector.load %arg5[%c20, %c0_122, %c0_123] : memref<25x100x256xbf16, #tpu.memory_space<vmem>>, vector<1x100x256xbf16>
    %206 = vector.shape_cast %205 : vector<1x100x256xbf16> to vector<100x256xbf16>
    %cst_124 = arith.constant dense<0.000000e+00> : vector<1x256xf32>
    %207 = tpu.matmul %204, %206, %cst_124 {dimension_numbers = #tpu.dot_dimension_numbers<[1], [0], [0], [1], [0, 0, 1, 1], [], []>} : vector<1x100xbf16>, vector<100x256xbf16>, vector<1x256xf32> -> vector<1x256xf32>
    %208 = arith.addf %202, %207 : vector<1x256xf32>
    %209 = vector.extract_strided_slice %81 {offsets = [21, 0], sizes = [1, 100], strides = [1, 1]} : vector<32x128xf32> to vector<1x100xf32>
    %210 = arith.truncf %209 : vector<1x100xf32> to vector<1x100xbf16>
    %c21 = arith.constant 21 : index
    %c0_125 = arith.constant 0 : index
    %c0_126 = arith.constant 0 : index
    %211 = vector.load %arg5[%c21, %c0_125, %c0_126] : memref<25x100x256xbf16, #tpu.memory_space<vmem>>, vector<1x100x256xbf16>
    %212 = vector.shape_cast %211 : vector<1x100x256xbf16> to vector<100x256xbf16>
    %cst_127 = arith.constant dense<0.000000e+00> : vector<1x256xf32>
    %213 = tpu.matmul %210, %212, %cst_127 {dimension_numbers = #tpu.dot_dimension_numbers<[1], [0], [0], [1], [0, 0, 1, 1], [], []>} : vector<1x100xbf16>, vector<100x256xbf16>, vector<1x256xf32> -> vector<1x256xf32>
    %214 = arith.addf %208, %213 : vector<1x256xf32>
    %215 = vector.extract_strided_slice %81 {offsets = [22, 0], sizes = [1, 100], strides = [1, 1]} : vector<32x128xf32> to vector<1x100xf32>
    %216 = arith.truncf %215 : vector<1x100xf32> to vector<1x100xbf16>
    %c22 = arith.constant 22 : index
    %c0_128 = arith.constant 0 : index
    %c0_129 = arith.constant 0 : index
    %217 = vector.load %arg5[%c22, %c0_128, %c0_129] : memref<25x100x256xbf16, #tpu.memory_space<vmem>>, vector<1x100x256xbf16>
    %218 = vector.shape_cast %217 : vector<1x100x256xbf16> to vector<100x256xbf16>
    %cst_130 = arith.constant dense<0.000000e+00> : vector<1x256xf32>
    %219 = tpu.matmul %216, %218, %cst_130 {dimension_numbers = #tpu.dot_dimension_numbers<[1], [0], [0], [1], [0, 0, 1, 1], [], []>} : vector<1x100xbf16>, vector<100x256xbf16>, vector<1x256xf32> -> vector<1x256xf32>
    %220 = arith.addf %214, %219 : vector<1x256xf32>
    %221 = vector.extract_strided_slice %81 {offsets = [23, 0], sizes = [1, 100], strides = [1, 1]} : vector<32x128xf32> to vector<1x100xf32>
    %222 = arith.truncf %221 : vector<1x100xf32> to vector<1x100xbf16>
    %c23 = arith.constant 23 : index
    %c0_131 = arith.constant 0 : index
    %c0_132 = arith.constant 0 : index
    %223 = vector.load %arg5[%c23, %c0_131, %c0_132] : memref<25x100x256xbf16, #tpu.memory_space<vmem>>, vector<1x100x256xbf16>
    %224 = vector.shape_cast %223 : vector<1x100x256xbf16> to vector<100x256xbf16>
    %cst_133 = arith.constant dense<0.000000e+00> : vector<1x256xf32>
    %225 = tpu.matmul %222, %224, %cst_133 {dimension_numbers = #tpu.dot_dimension_numbers<[1], [0], [0], [1], [0, 0, 1, 1], [], []>} : vector<1x100xbf16>, vector<100x256xbf16>, vector<1x256xf32> -> vector<1x256xf32>
    %226 = arith.addf %220, %225 : vector<1x256xf32>
    %227 = vector.extract_strided_slice %81 {offsets = [24, 0], sizes = [1, 100], strides = [1, 1]} : vector<32x128xf32> to vector<1x100xf32>
    %228 = arith.truncf %227 : vector<1x100xf32> to vector<1x100xbf16>
    %c24 = arith.constant 24 : index
    %c0_134 = arith.constant 0 : index
    %c0_135 = arith.constant 0 : index
    %229 = vector.load %arg5[%c24, %c0_134, %c0_135] : memref<25x100x256xbf16, #tpu.memory_space<vmem>>, vector<1x100x256xbf16>
    %230 = vector.shape_cast %229 : vector<1x100x256xbf16> to vector<100x256xbf16>
    %cst_136 = arith.constant dense<0.000000e+00> : vector<1x256xf32>
    %231 = tpu.matmul %228, %230, %cst_136 {dimension_numbers = #tpu.dot_dimension_numbers<[1], [0], [0], [1], [0, 0, 1, 1], [], []>} : vector<1x100xbf16>, vector<100x256xbf16>, vector<1x256xf32> -> vector<1x256xf32>
    %232 = arith.addf %226, %231 : vector<1x256xf32>
    %c0_137 = arith.constant 0 : index
    %c0_138 = arith.constant 0 : index
    %233 = vector.load %arg7[%c0_137, %c0_138] : memref<1x256xf32, #tpu.memory_space<vmem>>, vector<1x256xf32>
    %234 = arith.mulf %232, %233 : vector<1x256xf32>
    %cst_139 = arith.constant dense<0.000000e+00> : vector<1xf32>
    %235 = vector.multi_reduction <add>, %234, %cst_139 [1] : vector<1x256xf32> to vector<1xf32>
    %236 = vector.shape_cast %235 : vector<1xf32> to vector<1x1xf32>
    %c0_140 = arith.constant 0 : index
    %c0_141 = arith.constant 0 : index
    %237 = vector.load %arg8[%c0_140, %c0_141] : memref<1x1xf32, #tpu.memory_space<vmem>>, vector<1x1xf32>
    %238 = arith.addf %236, %237 : vector<1x1xf32>
    %cst_142 = arith.constant 0.000000e+00 : f32
    %239 = vector.broadcast %cst_142 : f32 to vector<1x1xf32>
    %240 = arith.subf %239, %238 : vector<1x1xf32>
    %241 = math.exp %240 : vector<1x1xf32>
    %cst_143 = arith.constant 1.000000e+00 : f32
    %242 = vector.broadcast %cst_143 : f32 to vector<1x1xf32>
    %243 = arith.addf %242, %241 : vector<1x1xf32>
    %cst_144 = arith.constant 1.000000e+00 : f32
    %244 = vector.broadcast %cst_144 : f32 to vector<1x1xf32>
    %245 = arith.divf %244, %243 : vector<1x1xf32>
    %c0_145 = arith.constant 0 : index
    %c0_146 = arith.constant 0 : index
    %c0_147 = arith.constant 0 : index
    %246 = vector.load %arg9[%c0_145, %c0_146, %c0_147] : memref<1x1x1xf32, #tpu.memory_space<vmem>>, vector<1x1x1xf32>
    %247 = vector.shape_cast %246 : vector<1x1x1xf32> to vector<1x1xf32>
    %248 = vector.shape_cast %245 : vector<1x1xf32> to vector<1x1x1xf32>
    tpu.vector_store %arg9[%c0_145, %c0_146, %c0_147], %248 {strides = array<i32>} : memref<1x1x1xf32, #tpu.memory_space<vmem>>, vector<1x1x1xf32>,
    return
  }
  func.func @transform_0(%arg0: i32) -> (i32, i32, i32, i32) {
    %c0_i32 = arith.constant 0 : i32
    %c0_i32_0 = arith.constant 0 : i32
    %c0_i32_1 = arith.constant 0 : i32
    %c0_i32_2 = arith.constant 0 : i32
    return %arg0, %c0_i32, %c0_i32_0, %c0_i32_1 : i32, i32, i32, i32
  }
  func.func @transform_1(%arg0: i32) -> (i32, i32) {
    %c0_i32 = arith.constant 0 : i32
    %c0_i32_0 = arith.constant 0 : i32
    %c0_i32_1 = arith.constant 0 : i32
    return %c0_i32, %c0_i32_0 : i32, i32
  }
  func.func @transform_2(%arg0: i32) -> (i32, i32, i32) {
    %c0_i32 = arith.constant 0 : i32
    %c0_i32_0 = arith.constant 0 : i32
    %c0_i32_1 = arith.constant 0 : i32
    %c0_i32_2 = arith.constant 0 : i32
    return %c0_i32, %c0_i32_0, %c0_i32_1 : i32, i32, i32
  }
  func.func @transform_3(%arg0: i32) -> (i32, i32) {
    %c0_i32 = arith.constant 0 : i32
    %c0_i32_0 = arith.constant 0 : i32
    %c0_i32_1 = arith.constant 0 : i32
    return %c0_i32, %c0_i32_0 : i32, i32
  }
  func.func @transform_4(%arg0: i32) -> (i32, i32, i32) {
    %c0_i32 = arith.constant 0 : i32
    %c0_i32_0 = arith.constant 0 : i32
    %c0_i32_1 = arith.constant 0 : i32
    %c0_i32_2 = arith.constant 0 : i32
    return %c0_i32, %c0_i32_0, %c0_i32_1 : i32, i32, i32
  }
  func.func @transform_5(%arg0: i32) -> (i32, i32) {
    %c0_i32 = arith.constant 0 : i32
    %c0_i32_0 = arith.constant 0 : i32
    %c0_i32_1 = arith.constant 0 : i32
    return %c0_i32, %c0_i32_0 : i32, i32
  }
  func.func @transform_6(%arg0: i32) -> (i32, i32) {
    %c0_i32 = arith.constant 0 : i32
    %c0_i32_0 = arith.constant 0 : i32
    %c0_i32_1 = arith.constant 0 : i32
    return %c0_i32, %c0_i32_0 : i32, i32
  }
  func.func @transform_7(%arg0: i32) -> (i32, i32) {
    %c0_i32 = arith.constant 0 : i32
    %c0_i32_0 = arith.constant 0 : i32
    %c0_i32_1 = arith.constant 0 : i32
    return %c0_i32, %c0_i32_0 : i32, i32
  }
  func.func @transform_8(%arg0: i32) -> (i32, i32, i32) {
    %c0_i32 = arith.constant 0 : i32
    %c0_i32_0 = arith.constant 0 : i32
    %c0_i32_1 = arith.constant 0 : i32
    return %arg0, %c0_i32, %c0_i32_0 : i32, i32, i32
  }
}

</mosaic_0001>

<bundles_post_ra>
// kernel: tile.8
= control target key start
LH: loop header
LB: loop body
LE: loop exit
PB: predicated region body
PF: predicated region fallthrough
CT: control target
= control target key end

     0   :  { %s22_s0 = inlined_call_operand.vmem [shape: f32[128], index: 0, kind: input, shape index: {}]   ;;  %s23_s1 = inlined_call_operand.vmem [shape: f32[2,128], index: 1, kind: output, shape index: {}]  }
   0x1   :  { %v4_v0 = vld [vmem:[%s22_s0] ss:$0 sm:$0xff] }
   0x2   :  { %5 = vst [vmem:[%s23_s1] sm:$0x3] %v4_v0 }

// kernel: forward.1
= control target key start
LH: loop header
LB: loop body
LE: loop exit
PB: predicated region body
PF: predicated region fallthrough
CT: control target
= control target key end

     0   :  { %s10064_s29 = smov 0   ;;  %s13150_s0 = inlined_call_operand.vmem [shape: f32[2,3,224,224], index: 0, kind: input, shape index: {}]   ;;  %s13151_s1 = inlined_call_operand.vmem [shape: bf16[192,224], index: 1, kind: input, shape index: {}]   ;;  %s13152_s2 = inlined_call_operand.vmem [shape: bf16[9,224,256], index: 2, kind: input, shape index: {}]   ;;  %s13153_s3 = inlined_call_operand.vmem [shape: f32[1,256], index: 3, kind: input, shape index: {}]   ;;  %s13154_s4 = inlined_call_operand.vmem [shape: bf16[25,100,256], index: 4, kind: input, shape index: {}]   ;;  %s13155_s5 = inlined_call_operand.vmem [shape: f32[1,256], index: 5, kind: input, shape index: {}]   ;;  %s13156_s6 = inlined_call_operand.vmem [shape: f32[1,256], index: 6, kind: input, shape index: {}]   ;;  %s13157_s7 = inlined_call_operand.<no memory space> [shape: f32[1,1], index: 7, kind: input, shape index: {}]   ;;  %s13158_s8 = inlined_call_operand.vmem [shape: f32[2,1,1], index: 8, kind: output, shape index: {}]  }
   0x1   :  { %v13_v0 = vstv %s13157_s7 }
   0x2   :  { %14 = vst [vmem:[#allocation2] sm:$0x1] %v13_v0 }
   0x3 LB: > { %s7521_s30 = sadd.s32 4294967295, %s10012_s29   ;;  %p7525_p0 = scmp.ge.s32.totalorder %s10012_s29, 1  ;;  %s10012_s29 = sphi %s10064_s29, %s20_s29  }
   0x4   : > { %p264_p1 = scmp.lt.s32.totalorder %s10012_s29, 3 }
   0x6   : > { %p265_p2 = pnand %p7525_p0, %p264_p1 }
   0x7   : > { %p296_p3 = scmp.lt.s32.totalorder (!%p265_p2), %s7521_s30, 1  ;;  %v9064_v1 = vld [vmem:[%s13151_s1 + $0x4] ss:$8 sps:$4 sm:$0xff] (!%p265_p2)   ;;  %vm521_vm0 = vcmask (!%p265_p2), 785408   ;;  %vm3796_vm1 = vcmask (!%p265_p2), 1041408   ;;  %vm3792_vm2 = vcmask (!%p265_p2), 818176  }
   0x8   : > { %268 = sbr.rel (%p265_p2) target bundleno = 1836 (0x72c), region = 52  ;;  %7551 = vmatprep.mubr.msk.bf16.mxu0 (!%p265_p2), %vm521_vm0, %v9064_v1  ;;  %vm7458_vm3 = vcmask (!%p265_p2), 1040384   ;;  %vm7472_vm4 = vcmask (!%p265_p2), 0  }
   0xf   : > { %s13165_s30 = smov (!%p296_p3, %s7521_s30), 1 }
  0x10   : > { %s9053_s7 = smul.u32 1344, %s13165_s30  ;;  %s303_s15 = scalar_lea.vmem %s13158_s8, %s13165_s30 }
  0x12   : > { %s10082_s13 = scalar_lea.vmem %s13150_s0, %s9053_s7 }
  0x13   : > { %v306_v2 = vld [vmem:[%s10082_s13 + $0x8] sm:$0xff]  ;;  %v308_v3 = vld [vmem:[%s10082_s13 + $0x18] sm:$0xff]  ;;  %v305_v4 = vld [vmem:[%s10082_s13] sm:$0xff] }
  0x14   : > { %v362_v5 = vpack.c.bf16 %v308_v3, %v306_v2  ;;  %v307_v6 = vld [vmem:[%s10082_s13 + $0x10] sm:$0xff]  ;;  %v310_v7 = vld [vmem:[%s10082_s13 + $0x28] sm:$0xff]  ;;  %v312_v8 = vld [vmem:[%s10082_s13 + $0x38] sm:$0xff] }
  0x15   : > { %v361_v9 = vpack.c.bf16 %v307_v6, %v305_v4  ;;  %v364_v10 = vpack.c.bf16 %v312_v8, %v310_v7  ;;  %v309_v11 = vld [vmem:[%s10082_s13 + $0x20] sm:$0xff]  ;;  %v311_v12 = vld [vmem:[%s10082_s13 + $0x30] sm:$0xff]  ;;  %v314_v13 = vld [vmem:[%s10082_s13 + $0x48] sm:$0xff] }
  0x16   : > { %558 = vmatprep.subr.bf16.mxu0 %v362_v5  ;;  %v316_v14 = vld [vmem:[%s10082_s13 + $0x58] sm:$0xff]  ;;  %v363_v15 = vpack.c.bf16 %v311_v12, %v309_v11  ;;  %v313_v17 = vld [vmem:[%s10082_s13 + $0x40] sm:$0xff]  ;;  %v315_v18 = vld [vmem:[%s10082_s13 + $0x50] sm:$0xff] }
  0x17   : > { %559 = vmatpush1.bf16.msra.mxu0 %v361_v9  ;;  %v366_v16 = vpack.c.bf16 %v316_v14, %v314_v13  ;;  %v318_v19 = vld [vmem:[%s10082_s13 + $0x68] sm:$0xff]  ;;  %v320_v20 = vld [vmem:[%s10082_s13 + $0x78] sm:$0xff]  ;;  %v365_v21 = vpack.c.bf16 %v315_v18, %v313_v17  ;;  %v317_v23 = vld [vmem:[%s10082_s13 + $0x60] sm:$0xff] }
  0x18   : > { %560 = vmatprep.subr.bf16.mxu0 %v364_v10  ;;  %v368_v22 = vpack.c.bf16 %v320_v20, %v318_v19  ;;  %v319_v24 = vld [vmem:[%s10082_s13 + $0x70] sm:$0xff]  ;;  %v322_v25 = vld [vmem:[%s10082_s13 + $0x88] sm:$0xff]  ;;  %v324_v26 = vld [vmem:[%s10082_s13 + $0x98] sm:$0xff] }
  0x19   : > { %v367_v27 = vpack.c.bf16 %v319_v24, %v317_v23  ;;  %v370_v28 = vpack.c.bf16 %v324_v26, %v322_v25  ;;  %v321_v29 = vld [vmem:[%s10082_s13 + $0x80] sm:$0xff]  ;;  %v323_v30 = vld [vmem:[%s10082_s13 + $0x90] sm:$0xff]  ;;  %v326_v31 = vld [vmem:[%s10082_s13 + $0xa8] sm:$0xff] }
  0x1a   : > { %v328_v32 = vld [vmem:[%s10082_s13 + $0xb8] sm:$0xff]  ;;  %v369_v33 = vpack.c.bf16 %v323_v30, %v321_v29  ;;  %v325_v35 = vld [vmem:[%s10082_s13 + $0xa0] sm:$0xff]  ;;  %v327_v36 = vld [vmem:[%s10082_s13 + $0xb0] sm:$0xff] }
  0x1b   : > { %561 = vmatpush1.bf16.msra.mxu0 %v363_v15  ;;  %v372_v34 = vpack.c.bf16 %v328_v32, %v326_v31  ;;  %v330_v37 = vld [vmem:[%s10082_s13 + $0xc8] sm:$0xff]  ;;  %v332_v38 = vld [vmem:[%s10082_s13 + $0xd8] sm:$0xff]  ;;  %v371_v39 = vpack.c.bf16 %v327_v36, %v325_v35  ;;  %v329_v40 = vld [vmem:[%s10082_s13 + $0xc0] sm:$0xff] }
  0x1c   : > { %562 = vmatprep.subr.bf16.mxu0 %v366_v16  ;;  %v374_v41 = vpack.c.bf16 %v332_v38, %v330_v37  ;;  %v331_v42 = vld [vmem:[%s10082_s13 + $0xd0] sm:$0xff]  ;;  %v334_v43 = vld [vmem:[%s10082_s13 + $0xe8] sm:$0xff]  ;;  %v336_v44 = vld [vmem:[%s10082_s13 + $0xf8] sm:$0xff] }
  0x1d   : > { %v373_v45 = vpack.c.bf16 %v331_v42, %v329_v40  ;;  %v376_v46 = vpack.c.bf16 %v336_v44, %v334_v43  ;;  %v333_v47 = vld [vmem:[%s10082_s13 + $0xe0] sm:$0xff]  ;;  %v335_v48 = vld [vmem:[%s10082_s13 + $0xf0] sm:$0xff]  ;;  %v338_v49 = vld [vmem:[%s10082_s13 + $0x108] sm:$0xff] }
  0x1e   : > { %v340_v50 = vld [vmem:[%s10082_s13 + $0x118] sm:$0xff]  ;;  %v375_v51 = vpack.c.bf16 %v335_v48, %v333_v47  ;;  %v337_v53 = vld [vmem:[%s10082_s13 + $0x100] sm:$0xff]  ;;  %v339_v54 = vld [vmem:[%s10082_s13 + $0x110] sm:$0xff] }
  0x1f   : > { %563 = vmatpush1.bf16.msra.mxu0 %v365_v21  ;;  %v378_v52 = vpack.c.bf16 %v340_v50, %v338_v49  ;;  %v342_v55 = vld [vmem:[%s10082_s13 + $0x128] sm:$0xff]  ;;  %v344_v56 = vld [vmem:[%s10082_s13 + $0x138] sm:$0xff]  ;;  %v377_v57 = vpack.c.bf16 %v339_v54, %v337_v53  ;;  %v341_v59 = vld [vmem:[%s10082_s13 + $0x120] sm:$0xff] }
  0x20   : > { %564 = vmatprep.subr.bf16.mxu0 %v368_v22  ;;  %v380_v58 = vpack.c.bf16 %v344_v56, %v342_v55  ;;  %v343_v60 = vld [vmem:[%s10082_s13 + $0x130] sm:$0xff]  ;;  %v346_v61 = vld [vmem:[%s10082_s13 + $0x148] sm:$0xff]  ;;  %v348_v62 = vld [vmem:[%s10082_s13 + $0x158] sm:$0xff] }
  0x21   : > { %v379_v63 = vpack.c.bf16 %v343_v60, %v341_v59  ;;  %v345_v0 = vld [vmem:[%s10082_s13 + $0x140] sm:$0xff]  ;;  %v382_v1 = vpack.c.bf16 %v348_v62, %v346_v61  ;;  %v347_v2 = vld [vmem:[%s10082_s13 + $0x150] sm:$0xff]  ;;  %v350_v3 = vld [vmem:[%s10082_s13 + $0x168] sm:$0xff] }
  0x22   : > { %v352_v4 = vld [vmem:[%s10082_s13 + $0x178] sm:$0xff]  ;;  %v381_v5 = vpack.c.bf16 %v347_v2, %v345_v0  ;;  %v349_v7 = vld [vmem:[%s10082_s13 + $0x160] sm:$0xff]  ;;  %v351_v8 = vld [vmem:[%s10082_s13 + $0x170] sm:$0xff] }
  0x23   : > { %565 = vmatpush1.bf16.msra.mxu0 %v367_v27  ;;  %v384_v6 = vpack.c.bf16 %v352_v4, %v350_v3  ;;  %v354_v9 = vld [vmem:[%s10082_s13 + $0x188] sm:$0xff]  ;;  %v356_v10 = vld [vmem:[%s10082_s13 + $0x198] sm:$0xff]  ;;  %v383_v11 = vpack.c.bf16 %v351_v8, %v349_v7  ;;  %v353_v12 = vld [vmem:[%s10082_s13 + $0x180] sm:$0xff] }
  0x24   : > { %566 = vmatprep.subr.bf16.mxu0 %v370_v28  ;;  %v355_v13 = vld [vmem:[%s10082_s13 + $0x190] sm:$0xff]  ;;  %v386_v14 = vpack.c.bf16 %v356_v10, %v354_v9  ;;  %v9100_v15 = vld [vmem:[%s13152_s2 + $0xe4] ss:$8 sps:$4 sm:$0xff]   ;;  %v360_v17 = vld [vmem:[%s10082_s13 + $0x1b8] sm:$0xff] }
  0x25   : > { %v358_v16 = vld [vmem:[%s10082_s13 + $0x1a8] sm:$0xff]  ;;  %v357_v19 = vld [vmem:[%s10082_s13 + $0x1a0] sm:$0xff]  ;;  %v359_v20 = vld [vmem:[%s10082_s13 + $0x1b0] sm:$0xff]  ;;  %936 = vmatprep.subr.bf16.mxu1 %v9100_v15  ;;  %v385_v21 = vpack.c.bf16 %v355_v13, %v353_v12 }
  0x26   : > { %v9102_v18 = vld [vmem:[%s13152_s2 + $0xe0] ss:$8 sps:$4 sm:$0xff]   ;;  %v9103_v23 = vld [vmem:[%s13152_s2 + $0xf4] ss:$8 sps:$4 sm:$0xff]   ;;  %v9105_v24 = vld [vmem:[%s13152_s2 + $0xf0] ss:$8 sps:$4 sm:$0xff]   ;;  %v388_v25 = vpack.c.bf16 %v360_v17, %v358_v16  ;;  %v387_v30 = vpack.c.bf16 %v359_v20, %v357_v19 }
  0x27   : > { %567 = vmatpush1.bf16.msra.mxu0 %v369_v33  ;;  %v7716_v22 = vld [vmem:[%s10082_s13 + $0x1c8] sm:$0xff]  ;;  %937 = vmatpush1.bf16.msra.mxu1 %v9102_v18  ;;  %v7718_v27 = vld [vmem:[%s10082_s13 + $0x1d8] sm:$0xff]  ;;  %v7715_v28 = vld [vmem:[%s10082_s13 + $0x1c0] sm:$0xff] }
  0x28   : > { %568 = vmatprep.subr.bf16.mxu0 %v372_v34  ;;  %v9106_v26 = vld [vmem:[%s13152_s2 + $0x104] ss:$8 sps:$4 sm:$0xff]   ;;  %938 = vmatprep.subr.bf16.mxu1 %v9103_v23  ;;  %v7717_v29 = vld [vmem:[%s10082_s13 + $0x1d0] sm:$0xff]  ;;  %v7722_v32 = vld [vmem:[%s10082_s13 + $0x1f8] sm:$0xff]  ;;  %v1570_v36 = vpack.c.bf16 %v7718_v27, %v7716_v22 }
  0x29   : > { %v7720_v31 = vld [vmem:[%s10082_s13 + $0x1e8] sm:$0xff]  ;;  %v9109_v34 = vld [vmem:[%s13152_s2 + $0x114] ss:$8 sps:$4 sm:$0xff]   ;;  %v7719_v38 = vld [vmem:[%s10082_s13 + $0x1e0] sm:$0xff] }
  0x2a   : > { %v9108_v33 = vld [vmem:[%s13152_s2 + $0x100] ss:$8 sps:$4 sm:$0xff]   ;;  %v10175_v37 = vld [vmem:[%s13151_s1 + $0x14] ss:$8 sps:$4 sm:$0xff]   ;;  %v9111_v40 = vld [vmem:[%s13152_s2 + $0x110] ss:$8 sps:$4 sm:$0xff]  }
  0x2b   : > { %569 = vmatpush1.bf16.msra.mxu0 %v371_v39  ;;  %939 = vmatpush1.bf16.msra.mxu1 %v9105_v24  ;;  %v10170_v35 = vld [vmem:[%s13151_s1] ss:$8 sps:$4 sm:$0xff]   ;;  %v7721_v39 = vld [vmem:[%s10082_s13 + $0x1f0] sm:$0xff]  ;;  %v7726_v43 = vld [vmem:[%s10082_s13 + $0x218] sm:$0xff] }
  0x2c   : > { %570 = vmatprep.subr.bf16.mxu0 %v374_v41  ;;  %940 = vmatprep.subr.bf16.mxu1 %v9106_v26  ;;  %v1569_v41 = vpack.c.bf16 %v7717_v29, %v7715_v28  ;;  %v7724_v42 = vld [vmem:[%s10082_s13 + $0x208] sm:$0xff]  ;;  %v7725_v47 = vld [vmem:[%s10082_s13 + $0x210] sm:$0xff]  ;;  %v1571_v49 = vpack.c.bf16 %v7721_v39, %v7719_v38  ;;  %v7727_v55 = vld [vmem:[%s10082_s13 + $0x220] sm:$0xff] }
  0x2d   : > { %v9112_v44 = vld [vmem:[%s13152_s2 + $0x124] ss:$8 sps:$4 sm:$0xff]   ;;  %v9114_v48 = vld [vmem:[%s13152_s2 + $0x120] ss:$8 sps:$4 sm:$0xff]   ;;  %v1574_v53 = vpack.c.bf16 %v7726_v43, %v7724_v42  ;;  %v7729_v56 = vld [vmem:[%s10082_s13 + $0x230] sm:$0xff] }
  0x2e   : > { %v7728_v50 = vld [vmem:[%s10082_s13 + $0x228] sm:$0xff]  ;;  %v7734_v59 = vld [vmem:[%s10082_s13 + $0x258] sm:$0xff]  ;;  %v7731_v61 = vld [vmem:[%s10082_s13 + $0x240] sm:$0xff] }
  0x2f   : > { %571 = vmatpush1.bf16.msra.mxu0 %v373_v45  ;;  %941 = vmatpush1.bf16.msra.mxu1 %v9108_v33  ;;  %v1572_v45 = vpack.c.bf16 %v7722_v32, %v7720_v31  ;;  %v10205_v54 = vld [vmem:[%s13151_s1 + $0x24] ss:$8 sps:$4 sm:$0xff]   ;;  %v7733_v62 = vld [vmem:[%s10082_s13 + $0x250] sm:$0xff]  ;;  %v10221_v2 = vld [vmem:[%s13151_s1 + $0x20] ss:$8 sps:$4 sm:$0xff]  }
  0x30   : > { %572 = vmatprep.subr.bf16.mxu0 %v376_v46  ;;  %942 = vmatprep.subr.bf16.mxu1 %v9109_v34  ;;  %v7723_v46 = vld [vmem:[%s10082_s13 + $0x200] sm:$0xff]  ;;  %v7736_v0 = vld [vmem:[%s10082_s13 + $0x268] sm:$0xff]  ;;  %v10226_v4 = vld [vmem:[%s13151_s1 + $0x34] ss:$8 sps:$4 sm:$0xff]   ;;  %v1577_v7 = vpack.c.bf16 %v7733_v62, %v7731_v61 }
  0x31   : > { %v7740_v8 = vld [vmem:[%s10082_s13 + $0x288] sm:$0xff]  ;;  %v7742_v9 = vld [vmem:[%s10082_s13 + $0x298] sm:$0xff]  ;;  %v7741_v12 = vld [vmem:[%s10082_s13 + $0x290] sm:$0xff] }
  0x32   : > { %v7746_v15 = vld [vmem:[%s10082_s13 + $0x2b8] sm:$0xff]  ;;  %v1582_v17 = vpack.c.bf16 %v7742_v9, %v7740_v8  ;;  %v10247_v18 = vld [vmem:[%s13151_s1 + $0x44] ss:$8 sps:$4 sm:$0xff]   ;;  %v7745_v20 = vld [vmem:[%s10082_s13 + $0x2b0] sm:$0xff] }
  0x33   : > { %573 = vmatpush1.bf16.msra.mxu0 %v375_v51  ;;  %v7730_v51 = vld [vmem:[%s10082_s13 + $0x238] sm:$0xff]  ;;  %943 = vmatpush1.bf16.msra.mxu1 %v9111_v40  ;;  %v7743_v19 = vld [vmem:[%s10082_s13 + $0x2a0] sm:$0xff]  ;;  %v7748_v22 = vld [vmem:[%s10082_s13 + $0x2c8] sm:$0xff] }
  0x34   : > { %574 = vmatprep.subr.bf16.mxu0 %v378_v52  ;;  %v10200_v52 = vld [vmem:[%s13151_s1 + $0x10] ss:$8 sps:$4 sm:$0xff]   ;;  %944 = vmatprep.subr.bf16.mxu1 %v9112_v44  ;;  %v1576_v60 = vpack.c.bf16 %v7730_v51, %v7728_v50  ;;  %v1583_v27 = vpack.c.bf16 %v7745_v20, %v7743_v19  ;;  %v7752_v28 = vld [vmem:[%s10082_s13 + $0x2e8] sm:$0xff]  ;;  %v10268_v32 = vld [vmem:[%s13151_s1 + $0x54] ss:$8 sps:$4 sm:$0xff]  }
  0x35   : > { %v10242_v16 = vld [vmem:[%s13151_s1 + $0x30] ss:$8 sps:$4 sm:$0xff]   ;;  %v7751_v33 = vld [vmem:[%s10082_s13 + $0x2e0] sm:$0xff]  ;;  %v7756_v38 = vld [vmem:[%s10082_s13 + $0x308] sm:$0xff] }
  0x36   : > { %v7750_v23 = vld [vmem:[%s10082_s13 + $0x2d8] sm:$0xff]  ;;  %v7749_v26 = vld [vmem:[%s10082_s13 + $0x2d0] sm:$0xff]  ;;  %v7760_v44 = vld [vmem:[%s10082_s13 + $0x328] sm:$0xff] }
  0x37   : > { %575 = vmatpush1.bf16.msra.mxu0 %v377_v57  ;;  %v1573_v57 = vpack.c.bf16 %v7725_v47, %v7723_v46  ;;  %945 = vmatpush1.bf16.msra.mxu1 %v9114_v48  ;;  %v7754_v29 = vld [vmem:[%s10082_s13 + $0x2f8] sm:$0xff]  ;;  %v1586_v31 = vpack.c.bf16 %v7750_v23, %v7748_v22  ;;  %v7753_v34 = vld [vmem:[%s10082_s13 + $0x2f0] sm:$0xff]  ;;  %v10289_v48 = vld [vmem:[%s13151_s1 + $0x64] ss:$8 sps:$4 sm:$0xff]  }
  0x38   : > { %576 = vmatprep.subr.bf16.mxu0 %v380_v58  ;;  %v7732_v58 = vld [vmem:[%s10082_s13 + $0x248] sm:$0xff]  ;;  %v7758_v39 = vld [vmem:[%s10082_s13 + $0x318] sm:$0xff]  ;;  %v1588_v40 = vpack.c.bf16 %v7754_v29, %v7752_v28  ;;  %v7757_v42 = vld [vmem:[%s10082_s13 + $0x310] sm:$0xff]  ;;  %v1587_v43 = vpack.c.bf16 %v7753_v34, %v7751_v33 }
  0x39   : > { %v1578_v3 = vpack.c.bf16 %v7734_v59, %v7732_v58  ;;  %v10284_v46 = vld [vmem:[%s13151_s1 + $0x50] ss:$8 sps:$4 sm:$0xff]   ;;  %v1590_v47 = vpack.c.bf16 %v7758_v39, %v7756_v38  ;;  %v10305_v62 = vld [vmem:[%s13151_s1 + $0x60] ss:$8 sps:$4 sm:$0xff]   ;;  %v10325_v9 = vld [vmem:[%s13151_s1 + $0x84] ss:$8 sps:$4 sm:$0xff]  }
  0x3a   : > { %v7761_v50 = vld [vmem:[%s10082_s13 + $0x330] sm:$0xff]  ;;  %v7770_v61 = vld [vmem:[%s10082_s13 + $0x378] sm:$0xff]  ;;  %v9120_v22 = vld [vmem:[%s13152_s2 + $0x140] ss:$8 sps:$4 sm:$0xff]  }
  0x3b   : > { %577 = vmatpush1.bf16.msra.mxu0 %v379_v63  ;;  %v1575_v63 = vpack.c.bf16 %v7729_v56, %v7727_v55  ;;  %v7766_v55 = vld [vmem:[%s10082_s13 + $0x358] sm:$0xff]  ;;  %v7765_v58 = vld [vmem:[%s10082_s13 + $0x350] sm:$0xff]  ;;  %v10390_v23 = vld [vmem:[%s13151_s1 + $0x4] ss:$8 sps:$4 sm:$0xff]  }
  0x3c   : > { %578 = vmatprep.subr.bf16.mxu0 %v382_v1  ;;  %v7738_v1 = vld [vmem:[%s10082_s13 + $0x278] sm:$0xff]  ;;  %v9136_v34 = vld [vmem:[%s13152_s2 + $0x1a4] ss:$8 sps:$4 sm:$0xff]  }
  0x3d   : > { %v1580_v10 = vpack.c.bf16 %v7738_v1, %v7736_v0  ;;  %v10310_v0 = vld [vmem:[%s13151_s1 + $0x74] ss:$8 sps:$4 sm:$0xff]   ;;  %v7767_v1 = vld [vmem:[%s10082_s13 + $0x360] sm:$0xff]  ;;  %v10320_v8 = vld [vmem:[%s13151_s1 + $0x70] ss:$8 sps:$4 sm:$0xff]  }
  0x3e   : > { %v9115_v19 = vld [vmem:[%s13152_s2 + $0x134] ss:$8 sps:$4 sm:$0xff]   ;;  %v9117_v20 = vld [vmem:[%s13152_s2 + $0x130] ss:$8 sps:$4 sm:$0xff]   ;;  %v7963_v38 = vld [vmem:[%s10082_s13 + $0x380] sm:$0xff] }
  0x3f   : > { %579 = vmatpush1.bf16.msra.mxu0 %v381_v5  ;;  %v7735_v5 = vld [vmem:[%s10082_s13 + $0x260] sm:$0xff]  ;;  %946 = vmatprep.subr.bf16.mxu1 %v9115_v19  ;;  %v9127_v28 = vld [vmem:[%s13152_s2 + $0x174] ss:$8 sps:$4 sm:$0xff]   ;;  %v9129_v29 = vld [vmem:[%s13152_s2 + $0x170] ss:$8 sps:$4 sm:$0xff]  }
  0x40   : > { %580 = vmatprep.subr.bf16.mxu0 %v384_v6  ;;  %v7737_v6 = vld [vmem:[%s10082_s13 + $0x270] sm:$0xff]  ;;  %947 = vmatpush1.bf16.msra.mxu1 %v9117_v20  ;;  %v7994_v19 = vld [vmem:[%s10082_s13 + $0x478] sm:$0xff] }
  0x41   : > { %v1579_v13 = vpack.c.bf16 %v7737_v6, %v7735_v5  ;;  %v9135_v33 = vld [vmem:[%s13152_s2 + $0x190] ss:$8 sps:$4 sm:$0xff]  }
  0x43   : > { %581 = vmatpush1.bf16.msra.mxu0 %v383_v11  ;;  %v7739_v11 = vld [vmem:[%s10082_s13 + $0x280] sm:$0xff] }
  0x44   : > { %582 = vmatprep.subr.bf16.mxu0 %v386_v14  ;;  %v7744_v14 = vld [vmem:[%s10082_s13 + $0x2a8] sm:$0xff] }
  0x45   : > { %v1584_v24 = vpack.c.bf16 %v7746_v15, %v7744_v14  ;;  %v10359_v14 = vld [vmem:[%s13151_s1 + $0xa0] ss:$8 sps:$4 sm:$0xff]   ;;  %v10364_v15 = vld [vmem:[%s13151_s1 + $0xb4] ss:$8 sps:$4 sm:$0xff]  }
  0x47   : > { %583 = vmatpush1.bf16.msra.mxu0 %v385_v21  ;;  %v1581_v21 = vpack.c.bf16 %v7741_v12, %v7739_v11  ;;  %v10338_v11 = vld [vmem:[%s13151_s1 + $0x94] ss:$8 sps:$4 sm:$0xff]   ;;  %v10346_v12 = vld [vmem:[%s13151_s1 + $0x90] ss:$8 sps:$4 sm:$0xff]  }
  0x48   : > { %584 = vmatprep.subr.bf16.mxu0 %v388_v25  ;;  %v7747_v25 = vld [vmem:[%s10082_s13 + $0x2c0] sm:$0xff] }
  0x4b   : > { %585 = vmatpush1.bf16.msra.mxu0 %v387_v30  ;;  %v10263_v30 = vld [vmem:[%s13151_s1 + $0x40] ss:$8 sps:$4 sm:$0xff]  }
  0x4c   : > { %1597 = vmatprep.subr.bf16.mxu0 %v1570_v36  ;;  %v1585_v36 = vpack.c.bf16 %v7749_v26, %v7747_v25  ;;  %v9123_v25 = vld [vmem:[%s13152_s2 + $0x150] ss:$8 sps:$4 sm:$0xff]   ;;  %v9124_v26 = vld [vmem:[%s13152_s2 + $0x164] ss:$8 sps:$4 sm:$0xff]  }
  0x4e   : > { %591 = vmatmul.mubr.bf16.vlgmr.msra.gmra.mrb[0].mxu0 %v10170_v35 }
  0x4f   : > { %7552 = vmatprep.mubr.msk.bf16.mxu0 %vm521_vm0, %v10175_v37  ;;  %1598 = vmatpush1.bf16.msra.mxu0 %v1569_v41  ;;  %v7755_v41 = vld [vmem:[%s10082_s13 + $0x300] sm:$0xff] }
  0x50   : > { %1599 = vmatprep.subr.bf16.mxu0 %v1572_v45  ;;  %v7762_v45 = vld [vmem:[%s10082_s13 + $0x338] sm:$0xff]  ;;  %v1589_v51 = vpack.c.bf16 %v7757_v42, %v7755_v41  ;;  %v7967_v41 = vld [vmem:[%s10082_s13 + $0x3a0] sm:$0xff] }
  0x51   : > { %v1592_v56 = vpack.c.bf16 %v7762_v45, %v7760_v44  ;;  %v7972_v45 = vld [vmem:[%s10082_s13 + $0x3c8] sm:$0xff] }
  0x53   : > { %1600 = vmatpush1.bf16.msra.mxu0 %v1571_v49  ;;  %v7759_v49 = vld [vmem:[%s10082_s13 + $0x320] sm:$0xff] }
  0x54   : > { %1601 = vmatprep.subr.bf16.mxu0 %v1574_v53  ;;  %v7764_v53 = vld [vmem:[%s10082_s13 + $0x348] sm:$0xff]  ;;  %v1591_v59 = vpack.c.bf16 %v7761_v50, %v7759_v49  ;;  %v7973_v49 = vld [vmem:[%s10082_s13 + $0x3d0] sm:$0xff] }
  0x56   : > { %601 = vmatmul.mubr.bf16.gmra.mrb[4].mxu0 %v10200_v52 }
  0x57   : > { %7553 = vmatprep.mubr.msk.bf16.mxu0 %vm521_vm0, %v10205_v54  ;;  %1602 = vmatpush1.bf16.msra.mxu0 %v1573_v57  ;;  %v7763_v57 = vld [vmem:[%s10082_s13 + $0x340] sm:$0xff] }
  0x58   : > { %1603 = vmatprep.subr.bf16.mxu0 %v1576_v60  ;;  %v7768_v60 = vld [vmem:[%s10082_s13 + $0x368] sm:$0xff]  ;;  %v1593_v5 = vpack.c.bf16 %v7765_v58, %v7763_v57  ;;  %v7977_v57 = vld [vmem:[%s10082_s13 + $0x3f0] sm:$0xff] }
  0x59   : > { %v1596_v6 = vpack.c.bf16 %v7770_v61, %v7768_v60  ;;  %v7982_v60 = vld [vmem:[%s10082_s13 + $0x418] sm:$0xff]  ;;  %v7979_v61 = vld [vmem:[%s10082_s13 + $0x400] sm:$0xff] }
  0x5b   : > { %1604 = vmatpush1.bf16.msra.mxu0 %v1575_v63  ;;  %v1594_v63 = vpack.c.bf16 %v7766_v55, %v7764_v53  ;;  %v7978_v53 = vld [vmem:[%s10082_s13 + $0x3f8] sm:$0xff] }
  0x5c   : > { %1605 = vmatprep.subr.bf16.mxu0 %v1578_v3  ;;  %v7769_v3 = vld [vmem:[%s10082_s13 + $0x370] sm:$0xff] }
  0x5e   : > { %611 = vmatmul.mubr.bf16.gmra.mrb[8].mxu0 %v10221_v2 }
  0x5f   : > { %7554 = vmatprep.mubr.msk.bf16.mxu0 %vm521_vm0, %v10226_v4  ;;  %1606 = vmatpush1.bf16.msra.mxu0 %v1577_v7  ;;  %v1595_v7 = vpack.c.bf16 %v7769_v3, %v7767_v1  ;;  %v7984_v1 = vld [vmem:[%s10082_s13 + $0x428] sm:$0xff]  ;;  %v7986_v3 = vld [vmem:[%s10082_s13 + $0x438] sm:$0xff] }
  0x60   : > { %1607 = vmatprep.subr.bf16.mxu0 %v1580_v10  ;;  %v10333_v10 = vld [vmem:[%s13151_s1 + $0x80] ss:$8 sps:$4 sm:$0xff]  }
  0x63   : > { %1608 = vmatpush1.bf16.msra.mxu0 %v1579_v13  ;;  %v10351_v13 = vld [vmem:[%s13151_s1 + $0xa4] ss:$8 sps:$4 sm:$0xff]  }
  0x64   : > { %1609 = vmatprep.subr.bf16.mxu0 %v1582_v17  ;;  %v10372_v17 = vld [vmem:[%s13151_s1 + $0xb0] ss:$8 sps:$4 sm:$0xff]  }
  0x66   : > { %621 = vmatmul.mubr.bf16.gmra.mrb[12].mxu0 %v10242_v16 }
  0x67   : > { %7555 = vmatprep.mubr.msk.bf16.mxu0 %vm521_vm0, %v10247_v18  ;;  %1610 = vmatpush1.bf16.msra.mxu0 %v1581_v21  ;;  %v9118_v21 = vld [vmem:[%s13152_s2 + $0x144] ss:$8 sps:$4 sm:$0xff]  }
  0x68   : > { %1611 = vmatprep.subr.bf16.mxu0 %v1584_v24  ;;  %948 = vmatprep.subr.bf16.mxu1 %v9118_v21  ;;  %v9121_v24 = vld [vmem:[%s13152_s2 + $0x154] ss:$8 sps:$4 sm:$0xff]  }
  0x69   : > { %949 = vmatpush1.bf16.msra.mxu1 %v9120_v22  ;;  %v7993_v21 = vld [vmem:[%s10082_s13 + $0x470] sm:$0xff] }
  0x6a   : > { %950 = vmatprep.subr.bf16.mxu1 %v9121_v24  ;;  %v7998_v24 = vld [vmem:[%s10082_s13 + $0x498] sm:$0xff] }
  0x6b   : > { %1612 = vmatpush1.bf16.msra.mxu0 %v1583_v27  ;;  %v9126_v27 = vld [vmem:[%s13152_s2 + $0x160] ss:$8 sps:$4 sm:$0xff]  }
  0x6c   : > { %1613 = vmatprep.subr.bf16.mxu0 %v1586_v31  ;;  %v9130_v31 = vld [vmem:[%s13152_s2 + $0x184] ss:$8 sps:$4 sm:$0xff]  }
  0x6d   : > { %951 = vmatpush1.bf16.msra.mxu1 %v9123_v25  ;;  %v7995_v25 = vld [vmem:[%s10082_s13 + $0x480] sm:$0xff] }
  0x6e   : > { %631 = vmatmul.mubr.bf16.gmra.mrb[16].mxu0 %v10263_v30  ;;  %952 = vmatprep.subr.bf16.mxu1 %v9124_v26 }
  0x6f   : > { %7556 = vmatprep.mubr.msk.bf16.mxu0 %vm521_vm0, %v10268_v32  ;;  %1614 = vmatpush1.bf16.msra.mxu0 %v1585_v36  ;;  %v9141_v36 = vld [vmem:[%s13152_s2 + $0x1b0] ss:$8 sps:$4 sm:$0xff]  }
  0x70   : > { %1615 = vmatprep.subr.bf16.mxu0 %v1588_v40  ;;  %v7965_v40 = vld [vmem:[%s10082_s13 + $0x390] sm:$0xff] }
  0x71   : > { %953 = vmatpush1.bf16.msra.mxu1 %v9126_v27  ;;  %v7997_v27 = vld [vmem:[%s10082_s13 + $0x490] sm:$0xff] }
  0x72   : > { %954 = vmatprep.subr.bf16.mxu1 %v9127_v28  ;;  %v2657_v28 = vpack.c.bf16 %v7997_v27, %v7995_v25 }
  0x73   : > { %1616 = vmatpush1.bf16.msra.mxu0 %v1587_v43  ;;  %v7969_v43 = vld [vmem:[%s10082_s13 + $0x3b0] sm:$0xff] }
  0x74   : > { %1617 = vmatprep.subr.bf16.mxu0 %v1590_v47  ;;  %v2643_v44 = vpack.c.bf16 %v7969_v43, %v7967_v41  ;;  %v8010_v43 = vld [vmem:[%s10082_s13 + $0x4f8] sm:$0xff] }
  0x75   : > { %955 = vmatpush1.bf16.msra.mxu1 %v9129_v29  ;;  %v8000_v29 = vld [vmem:[%s10082_s13 + $0x4a8] sm:$0xff] }
  0x76   : > { %641 = vmatmul.mubr.bf16.gmra.mrb[20].mxu0 %v10284_v46  ;;  %956 = vmatprep.subr.bf16.mxu1 %v9130_v31  ;;  %v8002_v31 = vld [vmem:[%s10082_s13 + $0x4b8] sm:$0xff] }
  0x77   : > { %7557 = vmatprep.mubr.msk.bf16.mxu0 %vm521_vm0, %v10289_v48  ;;  %1618 = vmatpush1.bf16.msra.mxu0 %v1589_v51  ;;  %v7976_v51 = vld [vmem:[%s10082_s13 + $0x3e8] sm:$0xff] }
  0x78   : > { %1619 = vmatprep.subr.bf16.mxu0 %v1592_v56  ;;  %v2648_v55 = vpack.c.bf16 %v7978_v53, %v7976_v51  ;;  %v7975_v56 = vld [vmem:[%s10082_s13 + $0x3e0] sm:$0xff] }
  0x79   : > { %v2647_v58 = vpack.c.bf16 %v7977_v57, %v7975_v56  ;;  %v8012_v56 = vld [vmem:[%s10082_s13 + $0x508] sm:$0xff]  ;;  %v8014_v57 = vld [vmem:[%s10082_s13 + $0x518] sm:$0xff] }
  0x7b   : > { %1620 = vmatpush1.bf16.msra.mxu0 %v1591_v59  ;;  %v7980_v59 = vld [vmem:[%s10082_s13 + $0x408] sm:$0xff] }
  0x7c   : > { %1621 = vmatprep.subr.bf16.mxu0 %v1594_v63  ;;  %v7981_v63 = vld [vmem:[%s10082_s13 + $0x410] sm:$0xff] }
  0x7e   : > { %651 = vmatmul.mubr.bf16.gmra.mrb[24].mxu0 %v10305_v62 }
  0x7f   : > { %7558 = vmatprep.mubr.msk.bf16.mxu0 %vm521_vm0, %v10310_v0  ;;  %1622 = vmatpush1.bf16.msra.mxu0 %v1593_v5  ;;  %v7983_v5 = vld [vmem:[%s10082_s13 + $0x420] sm:$0xff] }
  0x80   : > { %1623 = vmatprep.subr.bf16.mxu0 %v1596_v6  ;;  %v2652_v6 = vpack.c.bf16 %v7986_v3, %v7984_v1 }
  0x83   : > { %1624 = vmatpush1.bf16.msra.mxu0 %v1595_v7  ;;  %v7985_v7 = vld [vmem:[%s10082_s13 + $0x430] sm:$0xff] }
  0x86   : > { %661 = vmatmul.mubr.bf16.gmra.mrb[28].mxu0 %v10320_v8 }
  0x87   : > { %7559 = vmatprep.mubr.msk.bf16.mxu0 %vm521_vm0, %v10325_v9 }
  0x8e   : > { %671 = vmatmul.mubr.bf16.gmra.mrb[32].mxu0 %v10333_v10 }
  0x8f   : > { %7560 = vmatprep.mubr.msk.bf16.mxu0 %vm521_vm0, %v10338_v11 }
  0x96   : > { %681 = vmatmul.mubr.bf16.gmra.mrb[36].mxu0 %v10346_v12 }
  0x97   : > { %7561 = vmatprep.mubr.msk.bf16.mxu0 %vm521_vm0, %v10351_v13 }
  0x9e   : > { %691 = vmatmul.mubr.bf16.gmra.mrb[40].mxu0 %v10359_v14 }
  0x9f   : > { %7562 = vmatprep.mubr.msk.bf16.mxu0 %vm521_vm0, %v10364_v15 }
  0xa6   : > { %701 = vmatmul.mubr.bf16.gmra.mrb[44].mxu0 %v10372_v17 }
  0xa7   : > { %7771 = vmatprep.mubr.msk.bf16.mxu0 %vm521_vm0, %v10390_v23 }
  0xae   : > { %1630 = vmatmul.mubr.bf16.vlgmr.msra.gmra.mrb[48].mxu0 %v10170_v35  ;;  %v9132_v35 = vld [vmem:[%s13152_s2 + $0x180] ss:$8 sps:$4 sm:$0xff]  }
  0xaf   : > { %7772 = vmatprep.mubr.msk.bf16.mxu0 %vm521_vm0, %v10175_v37  ;;  %957 = vmatpush1.bf16.msra.mxu1 %v9132_v35  ;;  %v9133_v37 = vld [vmem:[%s13152_s2 + $0x194] ss:$8 sps:$4 sm:$0xff]   ;;  %v2660_v35 = vpack.c.bf16 %v8002_v31, %v8000_v29  ;;  %v9986_v29 = vld [vmem:[%s13151_s1 + $0x24] ss:$8 sps:$4 sm:$0xff]  }
  0xb0   : > { %958 = vmatprep.subr.bf16.mxu1 %v9133_v37  ;;  %v7999_v37 = vld [vmem:[%s10082_s13 + $0x4a0] sm:$0xff]  ;;  %v9147_v31 = vld [vmem:[%s13152_s2 + $0x14] ss:$8 sps:$4 sm:$0xff]  }
  0xb3   : > { %959 = vmatpush1.bf16.msra.mxu1 %v9135_v33  ;;  %v8001_v33 = vld [vmem:[%s10082_s13 + $0x4b0] sm:$0xff] }
  0xb4   : > { %960 = vmatprep.subr.bf16.mxu1 %v9136_v34  ;;  %v2659_v34 = vpack.c.bf16 %v8001_v33, %v7999_v37  ;;  %v9145_v37 = vld [vmem:[%s13152_s2 + $0x10] ss:$8 sps:$4 sm:$0xff]  }
  0xb6   : > { %1640 = vmatmul.mubr.bf16.gmra.mrb[52].mxu0 %v10200_v52  ;;  %v9138_v52 = vld [vmem:[%s13152_s2 + $0x1a0] ss:$8 sps:$4 sm:$0xff]  }
  0xb7   : > { %7773 = vmatprep.mubr.msk.bf16.mxu0 %vm521_vm0, %v10205_v54  ;;  %961 = vmatpush1.bf16.msra.mxu1 %v9138_v52  ;;  %v9139_v54 = vld [vmem:[%s13152_s2 + $0x1b4] ss:$8 sps:$4 sm:$0xff]  }
  0xb8   : > { %962 = vmatprep.subr.bf16.mxu1 %v9139_v54  ;;  %v8004_v54 = vld [vmem:[%s10082_s13 + $0x4c8] sm:$0xff] }
  0xbb   : > { %963 = vmatpush1.bf16.msra.mxu1 %v9141_v36  ;;  %v8006_v36 = vld [vmem:[%s10082_s13 + $0x4d8] sm:$0xff] }
  0xbe   : > { %1650 = vmatmul.mubr.bf16.gmra.mrb[56].mxu0 %v10221_v2  ;;  %v9144_v2 = vld [vmem:[%s13152_s2 + $0x4] ss:$8 sps:$4 sm:$0xff]  }
  0xbf   : > { %7774 = vmatprep.mubr.msk.bf16.mxu0 %vm521_vm0, %v10226_v4  ;;  %1161 = vmatprep.subr.bf16.mxu1 %v9144_v2  ;;  %v7964_v4 = vld [vmem:[%s10082_s13 + $0x388] sm:$0xff] }
  0xc6   : > { %1660 = vmatmul.mubr.bf16.gmra.mrb[60].mxu0 %v10242_v16  ;;  %v7966_v16 = vld [vmem:[%s10082_s13 + $0x398] sm:$0xff] }
  0xc7   : > { %7775 = vmatprep.mubr.msk.bf16.mxu0 %vm521_vm0, %v10247_v18  ;;  %v2642_v39 = vpack.c.bf16 %v7966_v16, %v7964_v4  ;;  %v2641_v18 = vpack.c.bf16 %v7965_v40, %v7963_v38  ;;  %v2662_v4 = vpack.c.bf16 %v8006_v36, %v8004_v54  ;;  %v8003_v16 = vld [vmem:[%s10082_s13 + $0x4c0] sm:$0xff]  ;;  %v8005_v38 = vld [vmem:[%s10082_s13 + $0x4d0] sm:$0xff] }
  0xc8   : > { %v2661_v40 = vpack.c.bf16 %v8005_v38, %v8003_v16  ;;  %v9987_v16 = vld [vmem:[%s13151_s1 + $0x20] ss:$8 sps:$4 sm:$0xff]  }
  0xc9   : > { %2669 = vmatprep.subr.bf16.mxu0 %v2642_v39 }
  0xca   : > { %2670 = vmatpush1.bf16.msra.mxu0 %v2641_v18 }
  0xce   : > { %1670 = vmatmul.mubr.bf16.gmra.mrb[64].mxu0 %v10263_v30  ;;  %v7968_v30 = vld [vmem:[%s10082_s13 + $0x3a8] sm:$0xff] }
  0xcf   : > { %7776 = vmatprep.mubr.msk.bf16.mxu0 %vm521_vm0, %v10268_v32  ;;  %v7970_v32 = vld [vmem:[%s10082_s13 + $0x3b8] sm:$0xff] }
  0xd0   : > { %v2644_v42 = vpack.c.bf16 %v7970_v32, %v7968_v30 }
  0xd2   : > { %2671 = vmatprep.subr.bf16.mxu0 %v2644_v42  ;;  %v8008_v42 = vld [vmem:[%s10082_s13 + $0x4e8] sm:$0xff] }
  0xd3   : > { %2672 = vmatpush1.bf16.msra.mxu0 %v2643_v44  ;;  %v8007_v44 = vld [vmem:[%s10082_s13 + $0x4e0] sm:$0xff] }
  0xd6   : > { %1680 = vmatmul.mubr.bf16.gmra.mrb[68].mxu0 %v10284_v46  ;;  %v7974_v46 = vld [vmem:[%s10082_s13 + $0x3d8] sm:$0xff] }
  0xd7   : > { %7777 = vmatprep.mubr.msk.bf16.mxu0 %vm521_vm0, %v10289_v48  ;;  %v2646_v47 = vpack.c.bf16 %v7974_v46, %v7972_v45  ;;  %v7971_v48 = vld [vmem:[%s10082_s13 + $0x3c0] sm:$0xff]  ;;  %v2664_v46 = vpack.c.bf16 %v8010_v43, %v8008_v42  ;;  %v9988_v42 = vld [vmem:[%s13151_s1 + $0x34] ss:$8 sps:$4 sm:$0xff]  }
  0xd8   : > { %v2645_v50 = vpack.c.bf16 %v7973_v49, %v7971_v48  ;;  %v9153_v43 = vld [vmem:[%s13152_s2 + $0x34] ss:$8 sps:$4 sm:$0xff]  }
  0xd9   : > { %2673 = vmatprep.subr.bf16.mxu0 %v2646_v47  ;;  %v8009_v47 = vld [vmem:[%s10082_s13 + $0x4f0] sm:$0xff] }
  0xda   : > { %2674 = vmatpush1.bf16.msra.mxu0 %v2645_v50  ;;  %v2663_v49 = vpack.c.bf16 %v8009_v47, %v8007_v44 }
  0xdb   : > { %2675 = vmatprep.subr.bf16.mxu0 %v2648_v55 }
  0xde   : > { %1690 = vmatmul.mubr.bf16.gmra.mrb[72].mxu0 %v10305_v62  ;;  %v2650_v62 = vpack.c.bf16 %v7982_v60, %v7980_v59  ;;  %v2666_v60 = vpack.c.bf16 %v8014_v57, %v8012_v56 }
  0xdf   : > { %7778 = vmatprep.mubr.msk.bf16.mxu0 %vm521_vm0, %v10310_v0  ;;  %2676 = vmatpush1.bf16.msra.mxu0 %v2647_v58  ;;  %v2649_v0 = vpack.c.bf16 %v7981_v63, %v7979_v61  ;;  %v8011_v58 = vld [vmem:[%s10082_s13 + $0x500] sm:$0xff]  ;;  %v8013_v61 = vld [vmem:[%s10082_s13 + $0x510] sm:$0xff] }
  0xe0   : > { %2677 = vmatprep.subr.bf16.mxu0 %v2650_v62  ;;  %v2665_v63 = vpack.c.bf16 %v8013_v61, %v8011_v58 }
  0xe3   : > { %2678 = vmatpush1.bf16.msra.mxu0 %v2649_v0 }
  0xe4   : > { %2679 = vmatprep.subr.bf16.mxu0 %v2652_v6  ;;  %v8018_v6 = vld [vmem:[%s10082_s13 + $0x538] sm:$0xff] }
  0xe6   : > { %1700 = vmatmul.mubr.bf16.gmra.mrb[76].mxu0 %v10320_v8  ;;  %v2651_v8 = vpack.c.bf16 %v7985_v7, %v7983_v5  ;;  %v8016_v5 = vld [vmem:[%s10082_s13 + $0x528] sm:$0xff] }
  0xe7   : > { %7779 = vmatprep.mubr.msk.bf16.mxu0 %vm521_vm0, %v10325_v9  ;;  %v7988_v9 = vld [vmem:[%s10082_s13 + $0x448] sm:$0xff]  ;;  %v2668_v7 = vpack.c.bf16 %v8018_v6, %v8016_v5  ;;  %v9159_v6 = vld [vmem:[%s13152_s2 + $0x54] ss:$8 sps:$4 sm:$0xff]  }
  0xe8   : > { %2680 = vmatpush1.bf16.msra.mxu0 %v2651_v8  ;;  %v8015_v8 = vld [vmem:[%s10082_s13 + $0x520] sm:$0xff] }
  0xe9   : > { %v9990_v5 = vld [vmem:[%s13151_s1 + $0x44] ss:$8 sps:$4 sm:$0xff]  }
  0xee   : > { %1710 = vmatmul.mubr.bf16.gmra.mrb[80].mxu0 %v10333_v10  ;;  %v7990_v10 = vld [vmem:[%s10082_s13 + $0x458] sm:$0xff] }
  0xef   : > { %7780 = vmatprep.mubr.msk.bf16.mxu0 %vm521_vm0, %v10338_v11  ;;  %v2654_v11 = vpack.c.bf16 %v7990_v10, %v7988_v9  ;;  %v8017_v9 = vld [vmem:[%s10082_s13 + $0x530] sm:$0xff] }
  0xf0   : > { %v2667_v10 = vpack.c.bf16 %v8017_v9, %v8015_v8  ;;  %v9157_v8 = vld [vmem:[%s13152_s2 + $0x50] ss:$8 sps:$4 sm:$0xff]  }
  0xf1   : > { %2681 = vmatprep.subr.bf16.mxu0 %v2654_v11 }
  0xf6   : > { %1720 = vmatmul.mubr.bf16.gmra.mrb[84].mxu0 %v10346_v12  ;;  %v7987_v12 = vld [vmem:[%s10082_s13 + $0x440] sm:$0xff] }
  0xf7   : > { %7781 = vmatprep.mubr.msk.bf16.mxu0 %vm521_vm0, %v10351_v13  ;;  %v7989_v13 = vld [vmem:[%s10082_s13 + $0x450] sm:$0xff] }
  0xfe   : > { %1730 = vmatmul.mubr.bf16.gmra.mrb[88].mxu0 %v10359_v14  ;;  %v2653_v14 = vpack.c.bf16 %v7989_v13, %v7987_v12 }
  0xff   : > { %7782 = vmatprep.mubr.msk.bf16.mxu0 %vm521_vm0, %v10364_v15  ;;  %v7992_v15 = vld [vmem:[%s10082_s13 + $0x468] sm:$0xff] }
 0x100   : > { %2682 = vmatpush1.bf16.msra.mxu0 %v2653_v14  ;;  %v2656_v20 = vpack.c.bf16 %v7994_v19, %v7992_v15  ;;  %v9983_v19 = vld [vmem:[%s13151_s1] ss:$8 sps:$4 sm:$0xff]  }
 0x102   : > { %2683 = vmatprep.subr.bf16.mxu0 %v2656_v20  ;;  %v9984_v20 = vld [vmem:[%s13151_s1 + $0x14] ss:$8 sps:$4 sm:$0xff]  }
 0x106   : > { %1740 = vmatmul.mubr.bf16.gmra.mrb[92].mxu0 %v10372_v17  ;;  %v7991_v17 = vld [vmem:[%s10082_s13 + $0x460] sm:$0xff] }
 0x107   : > { %8019 = vmatprep.mubr.msk.bf16.mxu0 %vm521_vm0, %v10390_v23  ;;  %v2655_v22 = vpack.c.bf16 %v7993_v21, %v7991_v17  ;;  %v7996_v23 = vld [vmem:[%s10082_s13 + $0x488] sm:$0xff] }
 0x108   : > { %v2658_v26 = vpack.c.bf16 %v7998_v24, %v7996_v23 }
 0x109   : > { %2684 = vmatpush1.bf16.msra.mxu0 %v2655_v22 }
 0x10a   : > { %2685 = vmatprep.subr.bf16.mxu0 %v2658_v26  ;;  %v9985_v26 = vld [vmem:[%s13151_s1 + $0x10] ss:$8 sps:$4 sm:$0xff]  }
 0x10d   : > { %2686 = vmatpush1.bf16.msra.mxu0 %v2657_v28  ;;  %v9142_v28 = vld [vmem:[%s13152_s2] ss:$8 sps:$4 sm:$0xff]  }
 0x10e   : > { %2687 = vmatprep.subr.bf16.mxu0 %v2660_v35 }
 0x111   : > { %2688 = vmatpush1.bf16.msra.mxu0 %v2659_v34  ;;  %v9150_v34 = vld [vmem:[%s13152_s2 + $0x24] ss:$8 sps:$4 sm:$0xff]  }
 0x112   : > { %2689 = vmatprep.subr.bf16.mxu0 %v2662_v4 }
 0x115   : > { %2690 = vmatpush1.bf16.msra.mxu0 %v2661_v40  ;;  %v9148_v40 = vld [vmem:[%s13152_s2 + $0x20] ss:$8 sps:$4 sm:$0xff]  }
 0x116   : > { %2691 = vmatprep.subr.bf16.mxu0 %v2664_v46  ;;  %v9151_v46 = vld [vmem:[%s13152_s2 + $0x30] ss:$8 sps:$4 sm:$0xff]  }
 0x119   : > { %2692 = vmatpush1.bf16.msra.mxu0 %v2663_v49  ;;  %v9156_v49 = vld [vmem:[%s13152_s2 + $0x44] ss:$8 sps:$4 sm:$0xff]  }
 0x11a   : > { %2693 = vmatprep.subr.bf16.mxu0 %v2666_v60  ;;  %v9989_v60 = vld [vmem:[%s13151_s1 + $0x30] ss:$8 sps:$4 sm:$0xff]  }
 0x11d   : > { %2694 = vmatpush1.bf16.msra.mxu0 %v2665_v63  ;;  %v9154_v63 = vld [vmem:[%s13152_s2 + $0x40] ss:$8 sps:$4 sm:$0xff]  }
 0x11e   : > { %2695 = vmatprep.subr.bf16.mxu0 %v2668_v7 }
 0x121   : > { %v10515_v52 = vpop.f32.mrb[0].mxu0  ;;  %2696 = vmatpush1.bf16.msra.mxu0 %v2667_v10  ;;  %v9162_v10 = vld [vmem:[%s13152_s2 + $0x64] ss:$8 sps:$4 sm:$0xff]  }
 0x122   : > { %v10519_v2 = vpop.f32.mrb[1].mxu0 }
 0x123   : > { %v10523_v39 = vpop.f32.mrb[2].mxu0 }
 0x124   : > { %v711_v18 = vpack.c.bf16 %v10523_v39, %v10515_v52  ;;  %v10527_v30 = vpop.f32.mrb[3].mxu0  ;;  %2702 = vmatmul.mubr.bf16.vlgmr.msra.gmra.mrb[96].mxu0 %v9983_v19 }
 0x125   : > { %v712_v32 = vpack.c.bf16 %v10527_v30, %v10519_v2  ;;  %8020 = vmatprep.mubr.msk.bf16.mxu0 %vm521_vm0, %v9984_v20 }
 0x129   : > { %v10531_v41 = vpop.f32.mrb[4].mxu0 }
 0x12a   : > { %v10536_v45 = vpop.f32.mrb[5].mxu0 }
 0x12b   : > { %v10539_v48 = vpop.f32.mrb[6].mxu0 }
 0x12c   : > { %v713_v50 = vpack.c.bf16 %v10539_v48, %v10531_v41  ;;  %v10543_v51 = vpop.f32.mrb[7].mxu0  ;;  %2712 = vmatmul.mubr.bf16.gmra.mrb[100].mxu0 %v9985_v26  ;;  %v9165_v26 = vld [vmem:[%s13152_s2 + $0x74] ss:$8 sps:$4 sm:$0xff]  }
 0x12d   : > { %v714_v53 = vpack.c.bf16 %v10543_v51, %v10536_v45  ;;  %8021 = vmatprep.mubr.msk.bf16.mxu0 %vm521_vm0, %v9986_v29  ;;  %v9168_v29 = vld [vmem:[%s13152_s2 + $0x84] ss:$8 sps:$4 sm:$0xff]   ;;  %v10001_v45 = vld [vmem:[%s13151_s1 + $0x90] ss:$8 sps:$4 sm:$0xff]   ;;  %v9190_v51 = vld [vmem:[%s13152_s2 + $0x1e0] ss:$8 sps:$4 sm:$0xff]  }
 0x131   : > { %v10547_v55 = vpop.f32.mrb[8].mxu0 }
 0x132   : > { %v10552_v59 = vpop.f32.mrb[9].mxu0 }
 0x133   : > { %v10555_v62 = vpop.f32.mrb[10].mxu0 }
 0x134   : > { %v715_v0 = vpack.c.bf16 %v10555_v62, %v10547_v55  ;;  %v10559_v1 = vpop.f32.mrb[11].mxu0  ;;  %2722 = vmatmul.mubr.bf16.gmra.mrb[104].mxu0 %v9987_v16  ;;  %v9174_v16 = vld [vmem:[%s13152_s2 + $0xa4] ss:$8 sps:$4 sm:$0xff]  }
 0x135   : > { %v716_v3 = vpack.c.bf16 %v10559_v1, %v10552_v59  ;;  %8022 = vmatprep.mubr.msk.bf16.mxu0 %vm521_vm0, %v9988_v42  ;;  %v10003_v59 = vld [vmem:[%s13151_s1 + $0xa0] ss:$8 sps:$4 sm:$0xff]  }
 0x136   : > { %v9196_v1 = vld [vmem:[%s13152_s2 + $0x200] ss:$8 sps:$4 sm:$0xff]  }
 0x139   : > { %v10567_v11 = vpop.f32.mrb[12].mxu0 }
 0x13a   : > { %v10569_v12 = vpop.f32.mrb[13].mxu0 }
 0x13b   : > { %v10571_v13 = vpop.f32.mrb[14].mxu0 }
 0x13c   : > { %v717_v14 = vpack.c.bf16 %v10571_v13, %v10567_v11  ;;  %v10575_v15 = vpop.f32.mrb[15].mxu0  ;;  %2732 = vmatmul.mubr.bf16.gmra.mrb[108].mxu0 %v9989_v60  ;;  %v9180_v60 = vld [vmem:[%s13152_s2 + $0xc4] ss:$8 sps:$4 sm:$0xff]  }
 0x13d   : > { %v718_v17 = vpack.c.bf16 %v10575_v15, %v10569_v12  ;;  %8023 = vmatprep.mubr.msk.bf16.mxu0 %vm521_vm0, %v9990_v5  ;;  %v10005_v12 = vld [vmem:[%s13151_s1 + $0xb0] ss:$8 sps:$4 sm:$0xff]   ;;  %v9202_v15 = vld [vmem:[%s13152_s2 + $0x220] ss:$8 sps:$4 sm:$0xff]  }
 0x141   : > { %v632_v21 = vpop.f32.mrb[16].mxu0 }
 0x142   : > { %v634_v22 = vpop.f32.mrb[17].mxu0 }
 0x143   : > { %v636_v23 = vpop.f32.mrb[18].mxu0 }
 0x144   : > { %v747_v24 = vpack.c.bf16 %v636_v23, %v632_v21  ;;  %v638_v25 = vpop.f32.mrb[19].mxu0 }
 0x145   : > { %v748_v27 = vpack.c.bf16 %v638_v25, %v634_v22  ;;  %v9991_v22 = vld [vmem:[%s13151_s1 + $0x40] ss:$8 sps:$4 sm:$0xff]   ;;  %v9992_v25 = vld [vmem:[%s13151_s1 + $0x54] ss:$8 sps:$4 sm:$0xff]  }
 0x146   : > { %2742 = vmatmul.mubr.bf16.gmra.mrb[112].mxu0 %v9991_v22  ;;  %v9186_v22 = vld [vmem:[%s13152_s2 + $0x1c4] ss:$8 sps:$4 sm:$0xff]  }
 0x147   : > { %7619 = vmatprep.mubr.msk.bf16.mxu1 %vm521_vm0, %v748_v27  ;;  %8024 = vmatprep.mubr.msk.bf16.mxu0 %vm521_vm0, %v9992_v25  ;;  %v9163_v27 = vld [vmem:[%s13152_s2 + $0x70] ss:$8 sps:$4 sm:$0xff]  }
 0x148   : > { %969 = vmatmul.mubr.bf16.vlgmr.msra.gmra.mrb[0].mxu1 %v747_v24  ;;  %v9160_v24 = vld [vmem:[%s13152_s2 + $0x60] ss:$8 sps:$4 sm:$0xff]  }
 0x149   : > { %1162 = vmatpush1.bf16.msra.mxu1 %v9142_v28  ;;  %v642_v35 = vpop.f32.mrb[20].mxu0 }
 0x14a   : > { %v644_v33 = vpop.f32.mrb[21].mxu0  ;;  %1163 = vmatprep.subr.bf16.mxu1 %v9147_v31 }
 0x14b   : > { %v646_v54 = vpop.f32.mrb[22].mxu0 }
 0x14c   : > { %v749_v36 = vpack.c.bf16 %v646_v54, %v642_v35  ;;  %v648_v4 = vpop.f32.mrb[23].mxu0  ;;  %v9171_v54 = vld [vmem:[%s13152_s2 + $0x94] ss:$8 sps:$4 sm:$0xff]  }
 0x14d   : > { %v750_v38 = vpack.c.bf16 %v648_v4, %v644_v33  ;;  %1164 = vmatpush1.bf16.msra.mxu1 %v9145_v37  ;;  %v9166_v37 = vld [vmem:[%s13152_s2 + $0x80] ss:$8 sps:$4 sm:$0xff]  }
 0x14e   : > { %1165 = vmatprep.subr.bf16.mxu1 %v9150_v34  ;;  %v9994_v34 = vld [vmem:[%s13151_s1 + $0x64] ss:$8 sps:$4 sm:$0xff]  }
 0x14f   : > { %7620 = vmatprep.mubr.msk.bf16.mxu1 %vm521_vm0, %v750_v38 }
 0x150   : > { %979 = vmatmul.mubr.bf16.gmra.mrb[4].mxu1 %v749_v36  ;;  %v9169_v36 = vld [vmem:[%s13152_s2 + $0x90] ss:$8 sps:$4 sm:$0xff]  }
 0x151   : > { %1166 = vmatpush1.bf16.msra.mxu1 %v9148_v40  ;;  %v652_v44 = vpop.f32.mrb[24].mxu0 }
 0x152   : > { %v654_v47 = vpop.f32.mrb[25].mxu0  ;;  %1167 = vmatprep.subr.bf16.mxu1 %v9153_v43 }
 0x153   : > { %v656_v56 = vpop.f32.mrb[26].mxu0 }
 0x154   : > { %v751_v57 = vpack.c.bf16 %v656_v56, %v652_v44  ;;  %v658_v58 = vpop.f32.mrb[27].mxu0  ;;  %v9995_v44 = vld [vmem:[%s13151_s1 + $0x60] ss:$8 sps:$4 sm:$0xff]   ;;  %v9177_v56 = vld [vmem:[%s13152_s2 + $0xb4] ss:$8 sps:$4 sm:$0xff]  }
 0x155   : > { %v752_v61 = vpack.c.bf16 %v658_v58, %v654_v47  ;;  %1168 = vmatpush1.bf16.msra.mxu1 %v9151_v46  ;;  %v9172_v46 = vld [vmem:[%s13152_s2 + $0xa0] ss:$8 sps:$4 sm:$0xff]  }
 0x156   : > { %1169 = vmatprep.subr.bf16.mxu1 %v9156_v49  ;;  %v9996_v49 = vld [vmem:[%s13151_s1 + $0x74] ss:$8 sps:$4 sm:$0xff]  }
 0x157   : > { %7621 = vmatprep.mubr.msk.bf16.mxu1 %vm521_vm0, %v752_v61 }
 0x158   : > { %989 = vmatmul.mubr.bf16.gmra.mrb[8].mxu1 %v751_v57  ;;  %v9175_v57 = vld [vmem:[%s13152_s2 + $0xb0] ss:$8 sps:$4 sm:$0xff]  }
 0x159   : > { %1170 = vmatpush1.bf16.msra.mxu1 %v9154_v63  ;;  %v662_v7 = vpop.f32.mrb[28].mxu0 }
 0x15a   : > { %v664_v9 = vpop.f32.mrb[29].mxu0  ;;  %1171 = vmatprep.subr.bf16.mxu1 %v9159_v6 }
 0x15b   : > { %v666_v19 = vpop.f32.mrb[30].mxu0 }
 0x15c   : > { %v753_v20 = vpack.c.bf16 %v666_v19, %v662_v7  ;;  %v668_v21 = vpop.f32.mrb[31].mxu0  ;;  %v9997_v7 = vld [vmem:[%s13151_s1 + $0x70] ss:$8 sps:$4 sm:$0xff]   ;;  %v9183_v19 = vld [vmem:[%s13152_s2 + $0xd4] ss:$8 sps:$4 sm:$0xff]  }
 0x15d   : > { %v754_v23 = vpack.c.bf16 %v668_v21, %v664_v9  ;;  %1172 = vmatpush1.bf16.msra.mxu1 %v9157_v8  ;;  %v9178_v8 = vld [vmem:[%s13152_s2 + $0xc0] ss:$8 sps:$4 sm:$0xff]  }
 0x15e   : > { %1173 = vmatprep.subr.bf16.mxu1 %v9162_v10  ;;  %v9998_v10 = vld [vmem:[%s13151_s1 + $0x84] ss:$8 sps:$4 sm:$0xff]  }
 0x15f   : > { %7622 = vmatprep.mubr.msk.bf16.mxu1 %vm521_vm0, %v754_v23 }
 0x160   : > { %999 = vmatmul.mubr.bf16.gmra.mrb[12].mxu1 %v753_v20  ;;  %v9181_v20 = vld [vmem:[%s13152_s2 + $0xd0] ss:$8 sps:$4 sm:$0xff]  }
 0x161   : > { %1174 = vmatpush1.bf16.msra.mxu1 %v9160_v24  ;;  %7651 = vmatprep.mubr.msk.bf16.mxu1 %vm521_vm0, %v712_v32  ;;  %v10667_v28 = vpop.f32.mrb[32].mxu0  ;;  %v9993_v32 = vld [vmem:[%s13151_s1 + $0x50] ss:$8 sps:$4 sm:$0xff]  }
 0x162   : > { %1175 = vmatprep.subr.bf16.mxu1 %v9165_v26  ;;  %v10672_v31 = vpop.f32.mrb[33].mxu0  ;;  %2752 = vmatmul.mubr.bf16.gmra.mrb[116].mxu0 %v9993_v32 }
 0x163   : > { %v10674_v35 = vpop.f32.mrb[34].mxu0  ;;  %8025 = vmatprep.mubr.msk.bf16.mxu0 %vm521_vm0, %v9994_v34  ;;  %v9189_v34 = vld [vmem:[%s13152_s2 + $0x1d4] ss:$8 sps:$4 sm:$0xff]  }
 0x164   : > { %v1234_v2 = vpack.c.bf16 %v10674_v35, %v10667_v28  ;;  %v10678_v30 = vpop.f32.mrb[35].mxu0  ;;  %v9232_v28 = vld [vmem:[%s13152_s2 + $0x2c0] ss:$8 sps:$4 sm:$0xff]  }
 0x165   : > { %1176 = vmatpush1.bf16.msra.mxu1 %v9163_v27  ;;  %v1235_v33 = vpack.c.bf16 %v10678_v30, %v10672_v31  ;;  %v9999_v27 = vld [vmem:[%s13151_s1 + $0x80] ss:$8 sps:$4 sm:$0xff]  }
 0x166   : > { %1177 = vmatprep.subr.bf16.mxu1 %v9168_v29  ;;  %v9184_v29 = vld [vmem:[%s13152_s2 + $0x1c0] ss:$8 sps:$4 sm:$0xff]  }
 0x167   : > { %v9208_v31 = vld [vmem:[%s13152_s2 + $0x240] ss:$8 sps:$4 sm:$0xff]  }
 0x169   : > { %1178 = vmatpush1.bf16.msra.mxu1 %v9166_v37  ;;  %v10698_v4 = vpop.f32.mrb[36].mxu0  ;;  %v10000_v37 = vld [vmem:[%s13151_s1 + $0x94] ss:$8 sps:$4 sm:$0xff]  }
 0x16a   : > { %1179 = vmatprep.subr.bf16.mxu1 %v9171_v54  ;;  %v10703_v38 = vpop.f32.mrb[37].mxu0  ;;  %2762 = vmatmul.mubr.bf16.gmra.mrb[120].mxu0 %v9995_v44  ;;  %v9187_v54 = vld [vmem:[%s13152_s2 + $0x1d0] ss:$8 sps:$4 sm:$0xff]  }
 0x16b   : > { %v10705_v40 = vpop.f32.mrb[38].mxu0  ;;  %8026 = vmatprep.mubr.msk.bf16.mxu0 %vm521_vm0, %v9996_v49  ;;  %v9195_v49 = vld [vmem:[%s13152_s2 + $0x1f4] ss:$8 sps:$4 sm:$0xff]  }
 0x16c   : > { %v1236_v42 = vpack.c.bf16 %v10705_v40, %v10698_v4  ;;  %v10709_v43 = vpop.f32.mrb[39].mxu0  ;;  %v9240_v4 = vld [vmem:[%s13152_s2 + $0x2e4] ss:$8 sps:$4 sm:$0xff]   ;;  %v9238_v40 = vld [vmem:[%s13152_s2 + $0x2e0] ss:$8 sps:$4 sm:$0xff]  }
 0x16d   : > { %1180 = vmatpush1.bf16.msra.mxu1 %v9169_v36  ;;  %v1237_v47 = vpack.c.bf16 %v10709_v43, %v10703_v38 }
 0x16e   : > { %1181 = vmatprep.subr.bf16.mxu1 %v9174_v16  ;;  %v9192_v16 = vld [vmem:[%s13152_s2 + $0x1e4] ss:$8 sps:$4 sm:$0xff]  }
 0x171   : > { %1182 = vmatpush1.bf16.msra.mxu1 %v9172_v46  ;;  %v10729_v58 = vpop.f32.mrb[40].mxu0  ;;  %v10002_v46 = vld [vmem:[%s13151_s1 + $0xa4] ss:$8 sps:$4 sm:$0xff]  }
 0x172   : > { %1183 = vmatprep.subr.bf16.mxu1 %v9177_v56  ;;  %v10734_v61 = vpop.f32.mrb[41].mxu0  ;;  %2772 = vmatmul.mubr.bf16.gmra.mrb[124].mxu0 %v9997_v7  ;;  %v9193_v56 = vld [vmem:[%s13152_s2 + $0x1f0] ss:$8 sps:$4 sm:$0xff]  }
 0x173   : > { %v10736_v63 = vpop.f32.mrb[42].mxu0  ;;  %8027 = vmatprep.mubr.msk.bf16.mxu0 %vm521_vm0, %v9998_v10  ;;  %v9201_v10 = vld [vmem:[%s13152_s2 + $0x214] ss:$8 sps:$4 sm:$0xff]  }
 0x174   : > { %v1238_v5 = vpack.c.bf16 %v10736_v63, %v10729_v58  ;;  %v10740_v6 = vpop.f32.mrb[43].mxu0  ;;  %v9246_v58 = vld [vmem:[%s13152_s2 + $0x304] ss:$8 sps:$4 sm:$0xff]   ;;  %v9244_v63 = vld [vmem:[%s13152_s2 + $0x300] ss:$8 sps:$4 sm:$0xff]  }
 0x175   : > { %1184 = vmatpush1.bf16.msra.mxu1 %v9175_v57  ;;  %v1239_v9 = vpack.c.bf16 %v10740_v6, %v10734_v61  ;;  %v9243_v61 = vld [vmem:[%s13152_s2 + $0x2f4] ss:$8 sps:$4 sm:$0xff]  }
 0x176   : > { %1185 = vmatprep.subr.bf16.mxu1 %v9180_v60  ;;  %v9198_v60 = vld [vmem:[%s13152_s2 + $0x204] ss:$8 sps:$4 sm:$0xff]  }
 0x179   : > { %1186 = vmatpush1.bf16.msra.mxu1 %v9178_v8  ;;  %v10760_v21 = vpop.f32.mrb[44].mxu0  ;;  %v10004_v8 = vld [vmem:[%s13151_s1 + $0xb4] ss:$8 sps:$4 sm:$0xff]  }
 0x17a   : > { %1187 = vmatprep.subr.bf16.mxu1 %v9183_v19  ;;  %v10765_v23 = vpop.f32.mrb[45].mxu0  ;;  %2782 = vmatmul.mubr.bf16.gmra.mrb[128].mxu0 %v9999_v27  ;;  %v9199_v19 = vld [vmem:[%s13152_s2 + $0x210] ss:$8 sps:$4 sm:$0xff]  }
 0x17b   : > { %v10767_v24 = vpop.f32.mrb[46].mxu0  ;;  %8028 = vmatprep.mubr.msk.bf16.mxu0 %vm521_vm0, %v10000_v37  ;;  %v9205_v37 = vld [vmem:[%s13152_s2 + $0x230] ss:$8 sps:$4 sm:$0xff]  }
 0x17c   : > { %v1240_v25 = vpack.c.bf16 %v10767_v24, %v10760_v21  ;;  %v10771_v26 = vpop.f32.mrb[47].mxu0  ;;  %v9252_v21 = vld [vmem:[%s13152_s2 + $0x324] ss:$8 sps:$4 sm:$0xff]   ;;  %v9250_v24 = vld [vmem:[%s13152_s2 + $0x320] ss:$8 sps:$4 sm:$0xff]  }
 0x17d   : > { %1188 = vmatpush1.bf16.msra.mxu1 %v9181_v20  ;;  %v1241_v32 = vpack.c.bf16 %v10771_v26, %v10765_v23  ;;  %v9249_v23 = vld [vmem:[%s13152_s2 + $0x314] ss:$8 sps:$4 sm:$0xff]  }
 0x17e   : > { %1423 = vmatprep.subr.bf16.mxu1 %v9186_v22  ;;  %v9204_v22 = vld [vmem:[%s13152_s2 + $0x224] ss:$8 sps:$4 sm:$0xff]  }
 0x180   : > { %1194 = vmatmul.mubr.bf16.vlgmr.msra.gmra.mrb[0].mxu1 %v711_v18 }
 0x181   : > { %7652 = vmatprep.mubr.msk.bf16.mxu1 %vm521_vm0, %v714_v53  ;;  %1424 = vmatpush1.bf16.msra.mxu1 %v9184_v29  ;;  %v10798_v36 = vpop.f32.mrb[48].mxu0  ;;  %v9207_v29 = vld [vmem:[%s13152_s2 + $0x234] ss:$8 sps:$4 sm:$0xff]  }
 0x182   : > { %1425 = vmatprep.subr.bf16.mxu1 %v9189_v34  ;;  %v10803_v44 = vpop.f32.mrb[49].mxu0  ;;  %2792 = vmatmul.mubr.bf16.gmra.mrb[132].mxu0 %v10001_v45  ;;  %v9211_v45 = vld [vmem:[%s13152_s2 + $0x250] ss:$8 sps:$4 sm:$0xff]  }
 0x183   : > { %v10805_v52 = vpop.f32.mrb[50].mxu0  ;;  %8029 = vmatprep.mubr.msk.bf16.mxu0 %vm521_vm0, %v10002_v46  ;;  %v9216_v46 = vld [vmem:[%s13152_s2 + $0x264] ss:$8 sps:$4 sm:$0xff]  }
 0x184   : > { %v1750_v39 = vpack.c.bf16 %v10805_v52, %v10798_v36  ;;  %v10809_v18 = vpop.f32.mrb[51].mxu0  ;;  %v9274_v36 = vld [vmem:[%s13152_s2 + $0x3a0] ss:$8 sps:$4 sm:$0xff]  }
 0x185   : > { %1426 = vmatpush1.bf16.msra.mxu1 %v9187_v54  ;;  %v1751_v53 = vpack.c.bf16 %v10809_v18, %v10803_v44  ;;  %v9210_v54 = vld [vmem:[%s13152_s2 + $0x244] ss:$8 sps:$4 sm:$0xff]   ;;  %v9255_v44 = vld [vmem:[%s13152_s2 + $0x334] ss:$8 sps:$4 sm:$0xff]  }
 0x186   : > { %1427 = vmatprep.subr.bf16.mxu1 %v9192_v16 }
 0x188   : > { %1204 = vmatmul.mubr.bf16.gmra.mrb[4].mxu1 %v713_v50 }
 0x189   : > { %7653 = vmatprep.mubr.msk.bf16.mxu1 %vm521_vm0, %v716_v3  ;;  %1428 = vmatpush1.bf16.msra.mxu1 %v9190_v51  ;;  %v10836_v57 = vpop.f32.mrb[52].mxu0 }
 0x18a   : > { %1429 = vmatprep.subr.bf16.mxu1 %v9195_v49  ;;  %v10841_v7 = vpop.f32.mrb[53].mxu0  ;;  %2802 = vmatmul.mubr.bf16.gmra.mrb[136].mxu0 %v10003_v59 }
 0x18b   : > { %v10843_v41 = vpop.f32.mrb[54].mxu0  ;;  %8030 = vmatprep.mubr.msk.bf16.mxu0 %vm521_vm0, %v10004_v8 }
 0x18c   : > { %v1752_v48 = vpack.c.bf16 %v10843_v41, %v10836_v57  ;;  %v10847_v50 = vpop.f32.mrb[55].mxu0  ;;  %v9282_v57 = vld [vmem:[%s13152_s2 + $0x3c4] ss:$8 sps:$4 sm:$0xff]   ;;  %v9280_v41 = vld [vmem:[%s13152_s2 + $0x3c0] ss:$8 sps:$4 sm:$0xff]  }
 0x18d   : > { %1430 = vmatpush1.bf16.msra.mxu1 %v9193_v56  ;;  %v1753_v3 = vpack.c.bf16 %v10847_v50, %v10841_v7 }
 0x18e   : > { %1431 = vmatprep.subr.bf16.mxu1 %v9198_v60 }
 0x190   : > { %1214 = vmatmul.mubr.bf16.gmra.mrb[8].mxu1 %v715_v0 }
 0x191   : > { %7654 = vmatprep.mubr.msk.bf16.mxu1 %vm521_vm0, %v718_v17  ;;  %1432 = vmatpush1.bf16.msra.mxu1 %v9196_v1  ;;  %v10874_v20 = vpop.f32.mrb[56].mxu0  ;;  %v9214_v1 = vld [vmem:[%s13152_s2 + $0x260] ss:$8 sps:$4 sm:$0xff]  }
 0x192   : > { %1433 = vmatprep.subr.bf16.mxu1 %v9201_v10  ;;  %v10879_v27 = vpop.f32.mrb[57].mxu0  ;;  %2812 = vmatmul.mubr.bf16.gmra.mrb[140].mxu0 %v10005_v12  ;;  %v9219_v10 = vld [vmem:[%s13152_s2 + $0x274] ss:$8 sps:$4 sm:$0xff]   ;;  %v9220_v12 = vld [vmem:[%s13152_s2 + $0x280] ss:$8 sps:$4 sm:$0xff]  }
 0x193   : > { %v10881_v55 = vpop.f32.mrb[58].mxu0 }
 0x194   : > { %v1754_v62 = vpack.c.bf16 %v10881_v55, %v10874_v20  ;;  %v10885_v0 = vpop.f32.mrb[59].mxu0  ;;  %v9288_v20 = vld [vmem:[%s13152_s2 + $0x3e4] ss:$8 sps:$4 sm:$0xff]   ;;  %v9286_v55 = vld [vmem:[%s13152_s2 + $0x3e0] ss:$8 sps:$4 sm:$0xff]  }
 0x195   : > { %1434 = vmatpush1.bf16.msra.mxu1 %v9199_v19  ;;  %v1755_v17 = vpack.c.bf16 %v10885_v0, %v10879_v27  ;;  %v9217_v19 = vld [vmem:[%s13152_s2 + $0x270] ss:$8 sps:$4 sm:$0xff]   ;;  %v9285_v27 = vld [vmem:[%s13152_s2 + $0x3d4] ss:$8 sps:$4 sm:$0xff]  }
 0x196   : > { %1435 = vmatprep.subr.bf16.mxu1 %v9204_v22  ;;  %v9222_v22 = vld [vmem:[%s13152_s2 + $0x284] ss:$8 sps:$4 sm:$0xff]  }
 0x198   : > { %1224 = vmatmul.mubr.bf16.gmra.mrb[12].mxu1 %v717_v14 }
 0x199   : > { %1436 = vmatpush1.bf16.msra.mxu1 %v9202_v15  ;;  %7711 = vmatprep.mubr.msk.bf16.mxu1 %vm521_vm0, %v1235_v33  ;;  %v10908_v34 = vpop.f32.mrb[60].mxu0  ;;  %v9213_v33 = vld [vmem:[%s13152_s2 + $0x254] ss:$8 sps:$4 sm:$0xff]  }
 0x19a   : > { %1437 = vmatprep.subr.bf16.mxu1 %v9207_v29  ;;  %v10913_v16 = vpop.f32.mrb[61].mxu0  ;;  %v9225_v15 = vld [vmem:[%s13152_s2 + $0x294] ss:$8 sps:$4 sm:$0xff]   ;;  %v9223_v29 = vld [vmem:[%s13152_s2 + $0x290] ss:$8 sps:$4 sm:$0xff]  }
 0x19b   : > { %v10915_v11 = vpop.f32.mrb[62].mxu0 }
 0x19c   : > { %v1756_v13 = vpack.c.bf16 %v10915_v11, %v10908_v34  ;;  %v10919_v14 = vpop.f32.mrb[63].mxu0  ;;  %v9294_v34 = vld [vmem:[%s13152_s2 + $0x404] ss:$8 sps:$4 sm:$0xff]   ;;  %v9292_v11 = vld [vmem:[%s13152_s2 + $0x400] ss:$8 sps:$4 sm:$0xff]  }
 0x19d   : > { %1438 = vmatpush1.bf16.msra.mxu1 %v9205_v37  ;;  %v1757_v30 = vpack.c.bf16 %v10919_v14, %v10913_v16  ;;  %v9228_v37 = vld [vmem:[%s13152_s2 + $0x2a4] ss:$8 sps:$4 sm:$0xff]   ;;  %v9291_v16 = vld [vmem:[%s13152_s2 + $0x3f4] ss:$8 sps:$4 sm:$0xff]  }
 0x19e   : > { %1439 = vmatprep.subr.bf16.mxu1 %v9210_v54  ;;  %v9226_v54 = vld [vmem:[%s13152_s2 + $0x2a0] ss:$8 sps:$4 sm:$0xff]  }
 0x1a1   : > { %1440 = vmatpush1.bf16.msra.mxu1 %v9208_v31  ;;  %v10932_v51 = vpop.f32.mrb[64].mxu0  ;;  %v9231_v31 = vld [vmem:[%s13152_s2 + $0x2b4] ss:$8 sps:$4 sm:$0xff]  }
 0x1a2   : > { %1441 = vmatprep.subr.bf16.mxu1 %v9213_v33  ;;  %v10937_v49 = vpop.f32.mrb[65].mxu0  ;;  %v9229_v33 = vld [vmem:[%s13152_s2 + $0x2b0] ss:$8 sps:$4 sm:$0xff]  }
 0x1a3   : > { %v10939_v56 = vpop.f32.mrb[66].mxu0 }
 0x1a4   : > { %v2028_v60 = vpack.c.bf16 %v10939_v56, %v10932_v51  ;;  %v10943_v59 = vpop.f32.mrb[67].mxu0  ;;  %v9316_v51 = vld [vmem:[%s13152_s2 + $0x480] ss:$8 sps:$4 sm:$0xff]  }
 0x1a5   : > { %1442 = vmatpush1.bf16.msra.mxu1 %v9211_v45  ;;  %v2029_v8 = vpack.c.bf16 %v10943_v59, %v10937_v49  ;;  %v9234_v45 = vld [vmem:[%s13152_s2 + $0x2c4] ss:$8 sps:$4 sm:$0xff]  }
 0x1a6   : > { %1443 = vmatprep.subr.bf16.mxu1 %v9216_v46 }
 0x1a9   : > { %1444 = vmatpush1.bf16.msra.mxu1 %v9214_v1  ;;  %v10993_v35 = vpop.f32.mrb[68].mxu0  ;;  %v9235_v1 = vld [vmem:[%s13152_s2 + $0x2d0] ss:$8 sps:$4 sm:$0xff]  }
 0x1aa   : > { %1445 = vmatprep.subr.bf16.mxu1 %v9219_v10  ;;  %v10998_v38 = vpop.f32.mrb[69].mxu0 }
 0x1ab   : > { %v11000_v43 = vpop.f32.mrb[70].mxu0 }
 0x1ac   : > { %v11007_v46 = vpop.f32.mrb[71].mxu0 }
 0x1ad   : > { %1446 = vmatpush1.bf16.msra.mxu1 %v9217_v19  ;;  %v2031_v10 = vpack.c.bf16 %v11007_v46, %v10998_v38 }
 0x1ae   : > { %1447 = vmatprep.subr.bf16.mxu1 %v9222_v22 }
 0x1b1   : > { %1448 = vmatpush1.bf16.msra.mxu1 %v9220_v12  ;;  %v9241_v12 = vld [vmem:[%s13152_s2 + $0x2f0] ss:$8 sps:$4 sm:$0xff]  }
 0x1b2   : > { %1449 = vmatprep.subr.bf16.mxu1 %v9225_v15 }
 0x1b5   : > { %1450 = vmatpush1.bf16.msra.mxu1 %v9223_v29 }
 0x1b6   : > { %1939 = vmatprep.subr.bf16.mxu1 %v9228_v37 }
 0x1b8   : > { %1456 = vmatmul.mubr.bf16.vlgmr.msra.gmra.mrb[0].mxu1 %v1234_v2  ;;  %v9237_v2 = vld [vmem:[%s13152_s2 + $0x2d4] ss:$8 sps:$4 sm:$0xff]  }
 0x1b9   : > { %1940 = vmatpush1.bf16.msra.mxu1 %v9226_v54  ;;  %7712 = vmatprep.mubr.msk.bf16.mxu1 %vm521_vm0, %v1237_v47  ;;  %v2030_v47 = vpack.c.bf16 %v11000_v43, %v10993_v35  ;;  %v9247_v54 = vld [vmem:[%s13152_s2 + $0x310] ss:$8 sps:$4 sm:$0xff]   ;;  %v9324_v35 = vld [vmem:[%s13152_s2 + $0x4a4] ss:$8 sps:$4 sm:$0xff]   ;;  %v9322_v43 = vld [vmem:[%s13152_s2 + $0x4a0] ss:$8 sps:$4 sm:$0xff]  }
 0x1ba   : > { %1941 = vmatprep.subr.bf16.mxu1 %v9231_v31 }
 0x1bd   : > { %1942 = vmatpush1.bf16.msra.mxu1 %v9229_v33 }
 0x1be   : > { %1943 = vmatprep.subr.bf16.mxu1 %v9234_v45  ;;  %v9253_v45 = vld [vmem:[%s13152_s2 + $0x330] ss:$8 sps:$4 sm:$0xff]  }
 0x1c0   : > { %1466 = vmatmul.mubr.bf16.gmra.mrb[4].mxu1 %v1236_v42  ;;  %v11024_v42 = vpop.f32.mrb[72].mxu0 }
 0x1c1   : > { %1944 = vmatpush1.bf16.msra.mxu1 %v9232_v28  ;;  %7713 = vmatprep.mubr.msk.bf16.mxu1 %vm521_vm0, %v1239_v9  ;;  %v11029_v6 = vpop.f32.mrb[73].mxu0 }
 0x1c2   : > { %1945 = vmatprep.subr.bf16.mxu1 %v9237_v2  ;;  %v11031_v9 = vpop.f32.mrb[74].mxu0  ;;  %v9258_v2 = vld [vmem:[%s13152_s2 + $0x344] ss:$8 sps:$4 sm:$0xff]  }
 0x1c3   : > { %v2032_v19 = vpack.c.bf16 %v11031_v9, %v11024_v42  ;;  %v11038_v22 = vpop.f32.mrb[75].mxu0  ;;  %v9330_v42 = vld [vmem:[%s13152_s2 + $0x4c4] ss:$8 sps:$4 sm:$0xff]   ;;  %v9328_v9 = vld [vmem:[%s13152_s2 + $0x4c0] ss:$8 sps:$4 sm:$0xff]  }
 0x1c4   : > { %v2033_v15 = vpack.c.bf16 %v11038_v22, %v11029_v6  ;;  %v9327_v6 = vld [vmem:[%s13152_s2 + $0x4b4] ss:$8 sps:$4 sm:$0xff]  }
 0x1c5   : > { %1946 = vmatpush1.bf16.msra.mxu1 %v9235_v1 }
 0x1c6   : > { %1947 = vmatprep.subr.bf16.mxu1 %v9240_v4  ;;  %v9256_v4 = vld [vmem:[%s13152_s2 + $0x340] ss:$8 sps:$4 sm:$0xff]  }
 0x1c8   : > { %1476 = vmatmul.mubr.bf16.gmra.mrb[8].mxu1 %v1238_v5  ;;  %v11055_v5 = vpop.f32.mrb[76].mxu0 }
 0x1c9   : > { %1948 = vmatpush1.bf16.msra.mxu1 %v9238_v40  ;;  %7714 = vmatprep.mubr.msk.bf16.mxu1 %vm521_vm0, %v1241_v32  ;;  %v11060_v26 = vpop.f32.mrb[77].mxu0  ;;  %v9261_v40 = vld [vmem:[%s13152_s2 + $0x354] ss:$8 sps:$4 sm:$0xff]  }
 0x1ca   : > { %1949 = vmatprep.subr.bf16.mxu1 %v9243_v61  ;;  %v11062_v32 = vpop.f32.mrb[78].mxu0  ;;  %v9259_v61 = vld [vmem:[%s13152_s2 + $0x350] ss:$8 sps:$4 sm:$0xff]  }
 0x1cb   : > { %v2034_v29 = vpack.c.bf16 %v11062_v32, %v11055_v5  ;;  %v11069_v37 = vpop.f32.mrb[79].mxu0  ;;  %v9336_v5 = vld [vmem:[%s13152_s2 + $0x4e4] ss:$8 sps:$4 sm:$0xff]   ;;  %v9334_v32 = vld [vmem:[%s13152_s2 + $0x4e0] ss:$8 sps:$4 sm:$0xff]  }
 0x1cc   : > { %v2035_v31 = vpack.c.bf16 %v11069_v37, %v11060_v26  ;;  %v9333_v26 = vld [vmem:[%s13152_s2 + $0x4d4] ss:$8 sps:$4 sm:$0xff]  }
 0x1cd   : > { %1950 = vmatpush1.bf16.msra.mxu1 %v9241_v12  ;;  %v9264_v12 = vld [vmem:[%s13152_s2 + $0x364] ss:$8 sps:$4 sm:$0xff]  }
 0x1ce   : > { %1951 = vmatprep.subr.bf16.mxu1 %v9246_v58  ;;  %v9262_v58 = vld [vmem:[%s13152_s2 + $0x360] ss:$8 sps:$4 sm:$0xff]  }
 0x1d0   : > { %1486 = vmatmul.mubr.bf16.gmra.mrb[12].mxu1 %v1240_v25  ;;  %v11086_v25 = vpop.f32.mrb[80].mxu0 }
 0x1d1   : > { %1952 = vmatpush1.bf16.msra.mxu1 %v9244_v63  ;;  %7839 = vmatprep.mubr.msk.bf16.mxu1 %vm521_vm0, %v1751_v53  ;;  %v11091_v18 = vpop.f32.mrb[81].mxu0  ;;  %v9267_v63 = vld [vmem:[%s13152_s2 + $0x374] ss:$8 sps:$4 sm:$0xff]  }
 0x1d2   : > { %1953 = vmatprep.subr.bf16.mxu1 %v9249_v23  ;;  %v11093_v53 = vpop.f32.mrb[82].mxu0  ;;  %v9265_v23 = vld [vmem:[%s13152_s2 + $0x370] ss:$8 sps:$4 sm:$0xff]  }
 0x1d3   : > { %v2306_v33 = vpack.c.bf16 %v11093_v53, %v11086_v25  ;;  %v11100_v28 = vpop.f32.mrb[83].mxu0  ;;  %v9358_v25 = vld [vmem:[%s13152_s2 + $0x560] ss:$8 sps:$4 sm:$0xff]  }
 0x1d4   : > { %v2307_v1 = vpack.c.bf16 %v11100_v28, %v11091_v18  ;;  %v11153_v52 = vpop.f32.mrb[84].mxu0  ;;  %v9339_v18 = vld [vmem:[%s13152_s2 + $0x4f4] ss:$8 sps:$4 sm:$0xff]  }
 0x1d5   : > { %1954 = vmatpush1.bf16.msra.mxu1 %v9247_v54  ;;  %v9270_v54 = vld [vmem:[%s13152_s2 + $0x384] ss:$8 sps:$4 sm:$0xff]   ;;  %v11158_v7 = vpop.f32.mrb[85].mxu0 }
 0x1d6   : > { %1955 = vmatprep.subr.bf16.mxu1 %v9252_v21  ;;  %v9268_v21 = vld [vmem:[%s13152_s2 + $0x380] ss:$8 sps:$4 sm:$0xff]   ;;  %v11160_v50 = vpop.f32.mrb[86].mxu0 }
 0x1d9   : > { %1956 = vmatpush1.bf16.msra.mxu1 %v9250_v24  ;;  %v9273_v24 = vld [vmem:[%s13152_s2 + $0x394] ss:$8 sps:$4 sm:$0xff]  }
 0x1da   : > { %1957 = vmatprep.subr.bf16.mxu1 %v9255_v44  ;;  %v9271_v44 = vld [vmem:[%s13152_s2 + $0x390] ss:$8 sps:$4 sm:$0xff]  }
 0x1dd   : > { %1958 = vmatpush1.bf16.msra.mxu1 %v9253_v45  ;;  %v9276_v45 = vld [vmem:[%s13152_s2 + $0x3a4] ss:$8 sps:$4 sm:$0xff]  }
 0x1de   : > { %1959 = vmatprep.subr.bf16.mxu1 %v9258_v2  ;;  %v11167_v2 = vpop.f32.mrb[87].mxu0 }
 0x1e1   : > { %1960 = vmatpush1.bf16.msra.mxu1 %v9256_v4  ;;  %v9277_v4 = vld [vmem:[%s13152_s2 + $0x3b0] ss:$8 sps:$4 sm:$0xff]  }
 0x1e2   : > { %1961 = vmatprep.subr.bf16.mxu1 %v9261_v40  ;;  %v2309_v40 = vpack.c.bf16 %v11167_v2, %v11158_v7 }
 0x1e5   : > { %1962 = vmatpush1.bf16.msra.mxu1 %v9259_v61 }
 0x1e6   : > { %1963 = vmatprep.subr.bf16.mxu1 %v9264_v12 }
 0x1e9   : > { %1964 = vmatpush1.bf16.msra.mxu1 %v9262_v58  ;;  %v9283_v58 = vld [vmem:[%s13152_s2 + $0x3d0] ss:$8 sps:$4 sm:$0xff]  }
 0x1ea   : > { %1965 = vmatprep.subr.bf16.mxu1 %v9267_v63 }
 0x1ed   : > { %1966 = vmatpush1.bf16.msra.mxu1 %v9265_v23 }
 0x1ee   : > { %2217 = vmatprep.subr.bf16.mxu1 %v9270_v54 }
 0x1f0   : > { %1972 = vmatmul.mubr.bf16.vlgmr.msra.gmra.mrb[0].mxu1 %v1750_v39  ;;  %v9279_v39 = vld [vmem:[%s13152_s2 + $0x3b4] ss:$8 sps:$4 sm:$0xff]  }
 0x1f1   : > { %2218 = vmatpush1.bf16.msra.mxu1 %v9268_v21  ;;  %7840 = vmatprep.mubr.msk.bf16.mxu1 %vm521_vm0, %v1753_v3  ;;  %v2308_v3 = vpack.c.bf16 %v11160_v50, %v11153_v52  ;;  %v9289_v21 = vld [vmem:[%s13152_s2 + $0x3f0] ss:$8 sps:$4 sm:$0xff]   ;;  %v9364_v50 = vld [vmem:[%s13152_s2 + $0x580] ss:$8 sps:$4 sm:$0xff]  }
 0x1f2   : > { %2219 = vmatprep.subr.bf16.mxu1 %v9273_v24 }
 0x1f5   : > { %2220 = vmatpush1.bf16.msra.mxu1 %v9271_v44 }
 0x1f6   : > { %2221 = vmatprep.subr.bf16.mxu1 %v9276_v45  ;;  %v9300_v45 = vld [vmem:[%s13152_s2 + $0x424] ss:$8 sps:$4 sm:$0xff]  }
 0x1f8   : > { %1982 = vmatmul.mubr.bf16.gmra.mrb[4].mxu1 %v1752_v48  ;;  %v11184_v48 = vpop.f32.mrb[88].mxu0 }
 0x1f9   : > { %2222 = vmatpush1.bf16.msra.mxu1 %v9274_v36  ;;  %7841 = vmatprep.mubr.msk.bf16.mxu1 %vm521_vm0, %v1755_v17  ;;  %v11189_v0 = vpop.f32.mrb[89].mxu0 }
 0x1fa   : > { %2223 = vmatprep.subr.bf16.mxu1 %v9279_v39  ;;  %v11191_v17 = vpop.f32.mrb[90].mxu0 }
 0x1fb   : > { %v2310_v61 = vpack.c.bf16 %v11191_v17, %v11184_v48  ;;  %v11198_v12 = vpop.f32.mrb[91].mxu0  ;;  %v9370_v17 = vld [vmem:[%s13152_s2 + $0x5a0] ss:$8 sps:$4 sm:$0xff]  }
 0x1fc   : > { %v2311_v63 = vpack.c.bf16 %v11198_v12, %v11189_v0  ;;  %v9369_v0 = vld [vmem:[%s13152_s2 + $0x594] ss:$8 sps:$4 sm:$0xff]  }
 0x1fd   : > { %2224 = vmatpush1.bf16.msra.mxu1 %v9277_v4 }
 0x1fe   : > { %2225 = vmatprep.subr.bf16.mxu1 %v9282_v57  ;;  %v9298_v57 = vld [vmem:[%s13152_s2 + $0x420] ss:$8 sps:$4 sm:$0xff]  }
 0x200   : > { %1992 = vmatmul.mubr.bf16.gmra.mrb[8].mxu1 %v1754_v62  ;;  %v11215_v62 = vpop.f32.mrb[92].mxu0 }
 0x201   : > { %2226 = vmatpush1.bf16.msra.mxu1 %v9280_v41  ;;  %7842 = vmatprep.mubr.msk.bf16.mxu1 %vm521_vm0, %v1757_v30  ;;  %v11220_v14 = vpop.f32.mrb[93].mxu0  ;;  %v9303_v41 = vld [vmem:[%s13152_s2 + $0x434] ss:$8 sps:$4 sm:$0xff]  }
 0x202   : > { %2227 = vmatprep.subr.bf16.mxu1 %v9285_v27  ;;  %v11222_v30 = vpop.f32.mrb[94].mxu0  ;;  %v9301_v27 = vld [vmem:[%s13152_s2 + $0x430] ss:$8 sps:$4 sm:$0xff]  }
 0x203   : > { %v2312_v23 = vpack.c.bf16 %v11222_v30, %v11215_v62  ;;  %v11229_v54 = vpop.f32.mrb[95].mxu0  ;;  %v9376_v62 = vld [vmem:[%s13152_s2 + $0x5c0] ss:$8 sps:$4 sm:$0xff]  }
 0x204   : > { %v2313_v24 = vpack.c.bf16 %v11229_v54, %v11220_v14  ;;  %v11249_v49 = vpop.f32.mrb[96].mxu0  ;;  %v9375_v14 = vld [vmem:[%s13152_s2 + $0x5b4] ss:$8 sps:$4 sm:$0xff]  }
 0x205   : > { %2228 = vmatpush1.bf16.msra.mxu1 %v9283_v58  ;;  %v11251_v59 = vpop.f32.mrb[97].mxu0  ;;  %v9306_v58 = vld [vmem:[%s13152_s2 + $0x444] ss:$8 sps:$4 sm:$0xff]  }
 0x206   : > { %2229 = vmatprep.subr.bf16.mxu1 %v9288_v20  ;;  %v11256_v44 = vpop.f32.mrb[98].mxu0  ;;  %v9304_v20 = vld [vmem:[%s13152_s2 + $0x440] ss:$8 sps:$4 sm:$0xff]  }
 0x207   : > { %v2822_v36 = vpack.c.bf16 %v11256_v44, %v11249_v49  ;;  %v11263_v39 = vpop.f32.mrb[99].mxu0  ;;  %v9402_v49 = vld [vmem:[%s13152_s2 + $0x644] ss:$8 sps:$4 sm:$0xff]  }
 0x208   : > { %2002 = vmatmul.mubr.bf16.gmra.mrb[12].mxu1 %v1756_v13  ;;  %v9297_v13 = vld [vmem:[%s13152_s2 + $0x414] ss:$8 sps:$4 sm:$0xff]   ;;  %v2823_v4 = vpack.c.bf16 %v11263_v39, %v11251_v59  ;;  %v11313_v56 = vpop.f32.mrb[100].mxu0 }
 0x209   : > { %2230 = vmatpush1.bf16.msra.mxu1 %v9286_v55  ;;  %7899 = vmatprep.mubr.msk.bf16.mxu1 %vm521_vm0, %v2029_v8  ;;  %v9295_v8 = vld [vmem:[%s13152_s2 + $0x410] ss:$8 sps:$4 sm:$0xff]   ;;  %v9309_v55 = vld [vmem:[%s13152_s2 + $0x454] ss:$8 sps:$4 sm:$0xff]   ;;  %v11318_v38 = vpop.f32.mrb[101].mxu0 }
 0x20a   : > { %2231 = vmatprep.subr.bf16.mxu1 %v9291_v16  ;;  %v9307_v16 = vld [vmem:[%s13152_s2 + $0x450] ss:$8 sps:$4 sm:$0xff]   ;;  %v11320_v46 = vpop.f32.mrb[102].mxu0 }
 0x20d   : > { %2232 = vmatpush1.bf16.msra.mxu1 %v9289_v21  ;;  %v9312_v21 = vld [vmem:[%s13152_s2 + $0x464] ss:$8 sps:$4 sm:$0xff]  }
 0x20e   : > { %2233 = vmatprep.subr.bf16.mxu1 %v9294_v34  ;;  %v9310_v34 = vld [vmem:[%s13152_s2 + $0x460] ss:$8 sps:$4 sm:$0xff]  }
 0x211   : > { %2234 = vmatpush1.bf16.msra.mxu1 %v9292_v11  ;;  %v9315_v11 = vld [vmem:[%s13152_s2 + $0x474] ss:$8 sps:$4 sm:$0xff]  }
 0x212   : > { %2235 = vmatprep.subr.bf16.mxu1 %v9297_v13  ;;  %v9313_v13 = vld [vmem:[%s13152_s2 + $0x470] ss:$8 sps:$4 sm:$0xff]  }
 0x215   : > { %2236 = vmatpush1.bf16.msra.mxu1 %v9295_v8  ;;  %v9318_v8 = vld [vmem:[%s13152_s2 + $0x484] ss:$8 sps:$4 sm:$0xff]  }
 0x216   : > { %2237 = vmatprep.subr.bf16.mxu1 %v9300_v45  ;;  %v11327_v45 = vpop.f32.mrb[103].mxu0 }
 0x219   : > { %2238 = vmatpush1.bf16.msra.mxu1 %v9298_v57  ;;  %v9319_v57 = vld [vmem:[%s13152_s2 + $0x490] ss:$8 sps:$4 sm:$0xff]  }
 0x21a   : > { %2239 = vmatprep.subr.bf16.mxu1 %v9303_v41  ;;  %v2825_v41 = vpack.c.bf16 %v11327_v45, %v11318_v38  ;;  %v9400_v38 = vld [vmem:[%s13152_s2 + $0x640] ss:$8 sps:$4 sm:$0xff]   ;;  %v9405_v45 = vld [vmem:[%s13152_s2 + $0x654] ss:$8 sps:$4 sm:$0xff]  }
 0x21d   : > { %2240 = vmatpush1.bf16.msra.mxu1 %v9301_v27 }
 0x21e   : > { %2241 = vmatprep.subr.bf16.mxu1 %v9306_v58 }
 0x221   : > { %2242 = vmatpush1.bf16.msra.mxu1 %v9304_v20  ;;  %v9325_v20 = vld [vmem:[%s13152_s2 + $0x4b0] ss:$8 sps:$4 sm:$0xff]  }
 0x222   : > { %2243 = vmatprep.subr.bf16.mxu1 %v9309_v55 }
 0x225   : > { %2244 = vmatpush1.bf16.msra.mxu1 %v9307_v16 }
 0x226   : > { %2495 = vmatprep.subr.bf16.mxu1 %v9312_v21 }
 0x228   : > { %2250 = vmatmul.mubr.bf16.vlgmr.msra.gmra.mrb[0].mxu1 %v2028_v60  ;;  %v9321_v60 = vld [vmem:[%s13152_s2 + $0x494] ss:$8 sps:$4 sm:$0xff]  }
 0x229   : > { %2496 = vmatpush1.bf16.msra.mxu1 %v9310_v34  ;;  %7900 = vmatprep.mubr.msk.bf16.mxu1 %vm521_vm0, %v2031_v10  ;;  %v2824_v10 = vpack.c.bf16 %v11320_v46, %v11313_v56  ;;  %v9331_v34 = vld [vmem:[%s13152_s2 + $0x4d0] ss:$8 sps:$4 sm:$0xff]   ;;  %v9483_v56 = vld [vmem:[%s13154_s4 + $0x14] ss:$8 sps:$4 sm:$0xff]   ;;  %v9408_v46 = vld [vmem:[%s13152_s2 + $0x664] ss:$8 sps:$4 sm:$0xff]  }
 0x22a   : > { %2497 = vmatprep.subr.bf16.mxu1 %v9315_v11 }
 0x22d   : > { %2498 = vmatpush1.bf16.msra.mxu1 %v9313_v13 }
 0x22e   : > { %2499 = vmatprep.subr.bf16.mxu1 %v9318_v8  ;;  %v9337_v8 = vld [vmem:[%s13152_s2 + $0x4f0] ss:$8 sps:$4 sm:$0xff]  }
 0x230   : > { %2260 = vmatmul.mubr.bf16.gmra.mrb[4].mxu1 %v2030_v47  ;;  %v11344_v47 = vpop.f32.mrb[104].mxu0 }
 0x231   : > { %2500 = vmatpush1.bf16.msra.mxu1 %v9316_v51  ;;  %7901 = vmatprep.mubr.msk.bf16.mxu1 %vm521_vm0, %v2033_v15  ;;  %v11349_v22 = vpop.f32.mrb[105].mxu0 }
 0x232   : > { %2501 = vmatprep.subr.bf16.mxu1 %v9321_v60  ;;  %v11351_v15 = vpop.f32.mrb[106].mxu0  ;;  %v9342_v60 = vld [vmem:[%s13152_s2 + $0x504] ss:$8 sps:$4 sm:$0xff]  }
 0x233   : > { %v2826_v27 = vpack.c.bf16 %v11351_v15, %v11344_v47  ;;  %v11358_v58 = vpop.f32.mrb[107].mxu0  ;;  %v9414_v47 = vld [vmem:[%s13152_s2 + $0x684] ss:$8 sps:$4 sm:$0xff]   ;;  %v9487_v15 = vld [vmem:[%s13154_s4 + $0x30] ss:$8 sps:$4 sm:$0xff]  }
 0x234   : > { %v2827_v55 = vpack.c.bf16 %v11358_v58, %v11349_v22  ;;  %v9486_v22 = vld [vmem:[%s13154_s4 + $0x24] ss:$8 sps:$4 sm:$0xff]   ;;  %v9406_v58 = vld [vmem:[%s13152_s2 + $0x660] ss:$8 sps:$4 sm:$0xff]  }
 0x235   : > { %2502 = vmatpush1.bf16.msra.mxu1 %v9319_v57 }
 0x236   : > { %2503 = vmatprep.subr.bf16.mxu1 %v9324_v35  ;;  %v9340_v35 = vld [vmem:[%s13152_s2 + $0x500] ss:$8 sps:$4 sm:$0xff]  }
 0x238   : > { %2270 = vmatmul.mubr.bf16.gmra.mrb[8].mxu1 %v2032_v19  ;;  %v11375_v19 = vpop.f32.mrb[108].mxu0 }
 0x239   : > { %2504 = vmatpush1.bf16.msra.mxu1 %v9322_v43  ;;  %7902 = vmatprep.mubr.msk.bf16.mxu1 %vm521_vm0, %v2035_v31  ;;  %v11380_v37 = vpop.f32.mrb[109].mxu0  ;;  %v9345_v43 = vld [vmem:[%s13152_s2 + $0x514] ss:$8 sps:$4 sm:$0xff]  }
 0x23a   : > { %2505 = vmatprep.subr.bf16.mxu1 %v9327_v6  ;;  %v11382_v31 = vpop.f32.mrb[110].mxu0  ;;  %v9343_v6 = vld [vmem:[%s13152_s2 + $0x510] ss:$8 sps:$4 sm:$0xff]  }
 0x23b   : > { %v2828_v16 = vpack.c.bf16 %v11382_v31, %v11375_v19  ;;  %v11389_v21 = vpop.f32.mrb[111].mxu0  ;;  %v9418_v19 = vld [vmem:[%s13152_s2 + $0x6a0] ss:$8 sps:$4 sm:$0xff]   ;;  %v9423_v31 = vld [vmem:[%s13152_s2 + $0x6b4] ss:$8 sps:$4 sm:$0xff]  }
 0x23c   : > { %v2829_v11 = vpack.c.bf16 %v11389_v21, %v11380_v37  ;;  %v9412_v37 = vld [vmem:[%s13152_s2 + $0x680] ss:$8 sps:$4 sm:$0xff]   ;;  %v9417_v21 = vld [vmem:[%s13152_s2 + $0x694] ss:$8 sps:$4 sm:$0xff]  }
 0x23d   : > { %2506 = vmatpush1.bf16.msra.mxu1 %v9325_v20  ;;  %v9348_v20 = vld [vmem:[%s13152_s2 + $0x524] ss:$8 sps:$4 sm:$0xff]  }
 0x23e   : > { %2507 = vmatprep.subr.bf16.mxu1 %v9330_v42  ;;  %v9346_v42 = vld [vmem:[%s13152_s2 + $0x520] ss:$8 sps:$4 sm:$0xff]  }
 0x240   : > { %2280 = vmatmul.mubr.bf16.gmra.mrb[12].mxu1 %v2034_v29  ;;  %v11406_v29 = vpop.f32.mrb[112].mxu0 }
 0x241   : > { %2508 = vmatpush1.bf16.msra.mxu1 %v9328_v9  ;;  %7959 = vmatprep.mubr.msk.bf16.mxu1 %vm521_vm0, %v2307_v1  ;;  %v11411_v28 = vpop.f32.mrb[113].mxu0  ;;  %v9351_v9 = vld [vmem:[%s13152_s2 + $0x534] ss:$8 sps:$4 sm:$0xff]  }
 0x242   : > { %2509 = vmatprep.subr.bf16.mxu1 %v9333_v26  ;;  %v11413_v1 = vpop.f32.mrb[114].mxu0  ;;  %v9349_v26 = vld [vmem:[%s13152_s2 + $0x530] ss:$8 sps:$4 sm:$0xff]  }
 0x243   : > { %v3100_v13 = vpack.c.bf16 %v11413_v1, %v11406_v29  ;;  %v11420_v51 = vpop.f32.mrb[115].mxu0  ;;  %v9442_v29 = vld [vmem:[%s13152_s2 + $0x720] ss:$8 sps:$4 sm:$0xff]   ;;  %v9447_v1 = vld [vmem:[%s13152_s2 + $0x734] ss:$8 sps:$4 sm:$0xff]  }
 0x244   : > { %v3101_v57 = vpack.c.bf16 %v11420_v51, %v11411_v28  ;;  %v9426_v28 = vld [vmem:[%s13152_s2 + $0x6c4] ss:$8 sps:$4 sm:$0xff]   ;;  %v9424_v51 = vld [vmem:[%s13152_s2 + $0x6c0] ss:$8 sps:$4 sm:$0xff]  }
 0x245   : > { %2510 = vmatpush1.bf16.msra.mxu1 %v9331_v34  ;;  %v9354_v34 = vld [vmem:[%s13152_s2 + $0x544] ss:$8 sps:$4 sm:$0xff]  }
 0x246   : > { %2511 = vmatprep.subr.bf16.mxu1 %v9336_v5  ;;  %v9352_v5 = vld [vmem:[%s13152_s2 + $0x540] ss:$8 sps:$4 sm:$0xff]  }
 0x249   : > { %2512 = vmatpush1.bf16.msra.mxu1 %v9334_v32  ;;  %v9357_v32 = vld [vmem:[%s13152_s2 + $0x554] ss:$8 sps:$4 sm:$0xff]  }
 0x24a   : > { %2513 = vmatprep.subr.bf16.mxu1 %v9339_v18  ;;  %v9355_v18 = vld [vmem:[%s13152_s2 + $0x550] ss:$8 sps:$4 sm:$0xff]  }
 0x24d   : > { %2514 = vmatpush1.bf16.msra.mxu1 %v9337_v8  ;;  %v9360_v8 = vld [vmem:[%s13152_s2 + $0x564] ss:$8 sps:$4 sm:$0xff]  }
 0x24e   : > { %2515 = vmatprep.subr.bf16.mxu1 %v9342_v60  ;;  %v11470_v60 = vpop.f32.mrb[116].mxu0 }
 0x24f   : > { %v11475_v53 = vpop.f32.mrb[117].mxu0 }
 0x250   : > { %v11480_v7 = vpop.f32.mrb[118].mxu0 }
 0x251   : > { %2516 = vmatpush1.bf16.msra.mxu1 %v9340_v35  ;;  %v3102_v2 = vpack.c.bf16 %v11480_v7, %v11470_v60  ;;  %v9448_v60 = vld [vmem:[%s13152_s2 + $0x740] ss:$8 sps:$4 sm:$0xff]   ;;  %v9453_v7 = vld [vmem:[%s13152_s2 + $0x754] ss:$8 sps:$4 sm:$0xff]  }
 0x252   : > { %2517 = vmatprep.subr.bf16.mxu1 %v9345_v43  ;;  %v9361_v43 = vld [vmem:[%s13152_s2 + $0x570] ss:$8 sps:$4 sm:$0xff]  }
 0x255   : > { %2518 = vmatpush1.bf16.msra.mxu1 %v9343_v6  ;;  %v9366_v6 = vld [vmem:[%s13152_s2 + $0x584] ss:$8 sps:$4 sm:$0xff]  }
 0x256   : > { %2519 = vmatprep.subr.bf16.mxu1 %v9348_v20 }
 0x259   : > { %2520 = vmatpush1.bf16.msra.mxu1 %v9346_v42 }
 0x25a   : > { %2521 = vmatprep.subr.bf16.mxu1 %v9351_v9  ;;  %v9367_v9 = vld [vmem:[%s13152_s2 + $0x590] ss:$8 sps:$4 sm:$0xff]  }
 0x25d   : > { %2522 = vmatpush1.bf16.msra.mxu1 %v9349_v26  ;;  %v9372_v26 = vld [vmem:[%s13152_s2 + $0x5a4] ss:$8 sps:$4 sm:$0xff]  }
 0x25e   : > { %3011 = vmatprep.subr.bf16.mxu1 %v9354_v34 }
 0x260   : > { %2528 = vmatmul.mubr.bf16.vlgmr.msra.gmra.mrb[0].mxu1 %v2306_v33  ;;  %v9363_v33 = vld [vmem:[%s13152_s2 + $0x574] ss:$8 sps:$4 sm:$0xff]  }
 0x261   : > { %3012 = vmatpush1.bf16.msra.mxu1 %v9352_v5  ;;  %7960 = vmatprep.mubr.msk.bf16.mxu1 %vm521_vm0, %v2309_v40  ;;  %v11484_v40 = vpop.f32.mrb[119].mxu0 }
 0x262   : > { %3013 = vmatprep.subr.bf16.mxu1 %v9357_v32  ;;  %v3103_v35 = vpack.c.bf16 %v11484_v40, %v11475_v53  ;;  %v11501_v52 = vpop.f32.mrb[120].mxu0  ;;  %v9373_v32 = vld [vmem:[%s13152_s2 + $0x5b0] ss:$8 sps:$4 sm:$0xff]   ;;  %v9450_v53 = vld [vmem:[%s13152_s2 + $0x744] ss:$8 sps:$4 sm:$0xff]  }
 0x263   : > { %v9456_v40 = vld [vmem:[%s13152_s2 + $0x764] ss:$8 sps:$4 sm:$0xff]  }
 0x265   : > { %3014 = vmatpush1.bf16.msra.mxu1 %v9355_v18  ;;  %v9378_v18 = vld [vmem:[%s13152_s2 + $0x5c4] ss:$8 sps:$4 sm:$0xff]  }
 0x266   : > { %3015 = vmatprep.subr.bf16.mxu1 %v9360_v8 }
 0x268   : > { %2538 = vmatmul.mubr.bf16.gmra.mrb[4].mxu1 %v2308_v3  ;;  %v11506_v3 = vpop.f32.mrb[121].mxu0 }
 0x269   : > { %3016 = vmatpush1.bf16.msra.mxu1 %v9358_v25  ;;  %7961 = vmatprep.mubr.msk.bf16.mxu1 %vm521_vm0, %v2311_v63  ;;  %v11511_v12 = vpop.f32.mrb[122].mxu0  ;;  %v9379_v25 = vld [vmem:[%s13152_s2 + $0x5d0] ss:$8 sps:$4 sm:$0xff]  }
 0x26a   : > { %3017 = vmatprep.subr.bf16.mxu1 %v9363_v33  ;;  %v3104_v63 = vpack.c.bf16 %v11511_v12, %v11501_v52  ;;  %v11515_v20 = vpop.f32.mrb[123].mxu0  ;;  %v9459_v52 = vld [vmem:[%s13152_s2 + $0x774] ss:$8 sps:$4 sm:$0xff]   ;;  %v9462_v12 = vld [vmem:[%s13152_s2 + $0x784] ss:$8 sps:$4 sm:$0xff]  }
 0x26b   : > { %v3105_v42 = vpack.c.bf16 %v11515_v20, %v11506_v3  ;;  %v11532_v48 = vpop.f32.mrb[124].mxu0  ;;  %v9457_v3 = vld [vmem:[%s13152_s2 + $0x770] ss:$8 sps:$4 sm:$0xff]   ;;  %v9465_v20 = vld [vmem:[%s13152_s2 + $0x794] ss:$8 sps:$4 sm:$0xff]  }
 0x26d   : > { %3018 = vmatpush1.bf16.msra.mxu1 %v9361_v43  ;;  %v9384_v43 = vld [vmem:[%s13152_s2 + $0x5e4] ss:$8 sps:$4 sm:$0xff]  }
 0x26e   : > { %3019 = vmatprep.subr.bf16.mxu1 %v9366_v6  ;;  %v9382_v6 = vld [vmem:[%s13152_s2 + $0x5e0] ss:$8 sps:$4 sm:$0xff]  }
 0x270   : > { %2548 = vmatmul.mubr.bf16.gmra.mrb[8].mxu1 %v2310_v61  ;;  %v11537_v61 = vpop.f32.mrb[125].mxu0 }
 0x271   : > { %3020 = vmatpush1.bf16.msra.mxu1 %v9364_v50  ;;  %7962 = vmatprep.mubr.msk.bf16.mxu1 %vm521_vm0, %v2313_v24  ;;  %v11542_v54 = vpop.f32.mrb[126].mxu0 }
 0x272   : > { %3021 = vmatprep.subr.bf16.mxu1 %v9369_v0  ;;  %v3106_v24 = vpack.c.bf16 %v11542_v54, %v11532_v48  ;;  %v11546_v34 = vpop.f32.mrb[127].mxu0  ;;  %v9387_v0 = vld [vmem:[%s13152_s2 + $0x5f4] ss:$8 sps:$4 sm:$0xff]   ;;  %v9468_v48 = vld [vmem:[%s13152_s2 + $0x7a4] ss:$8 sps:$4 sm:$0xff]  }
 0x273   : > { %v3107_v5 = vpack.c.bf16 %v11546_v34, %v11537_v61  ;;  %v11566_v30 = vpop.f32.mrb[128].mxu0  ;;  %v9466_v61 = vld [vmem:[%s13152_s2 + $0x7a0] ss:$8 sps:$4 sm:$0xff]   ;;  %v9471_v54 = vld [vmem:[%s13152_s2 + $0x7b4] ss:$8 sps:$4 sm:$0xff]  }
 0x274   : > { %v11571_v59 = vpop.f32.mrb[129].mxu0  ;;  %v9474_v34 = vld [vmem:[%s13152_s2 + $0x7c4] ss:$8 sps:$4 sm:$0xff]  }
 0x275   : > { %3022 = vmatpush1.bf16.msra.mxu1 %v9367_v9  ;;  %v11573_v39 = vpop.f32.mrb[130].mxu0 }
 0x276   : > { %3023 = vmatprep.subr.bf16.mxu1 %v9372_v26  ;;  %v11577_v8 = vpop.f32.mrb[131].mxu0 }
 0x277   : > { %v3379_v33 = vpack.c.bf16 %v11577_v8, %v11571_v59  ;;  %v11590_v50 = vpop.f32.mrb[132].mxu0  ;;  %v9477_v59 = vld [vmem:[%s13152_s2 + $0x7d4] ss:$8 sps:$4 sm:$0xff]   ;;  %v9475_v8 = vld [vmem:[%s13152_s2 + $0x7d0] ss:$8 sps:$4 sm:$0xff]  }
 0x278   : > { %2558 = vmatmul.mubr.bf16.gmra.mrb[12].mxu1 %v2312_v23  ;;  %v9381_v23 = vld [vmem:[%s13152_s2 + $0x5d4] ss:$8 sps:$4 sm:$0xff]   ;;  %v11595_v9 = vpop.f32.mrb[133].mxu0 }
 0x279   : > { %3024 = vmatpush1.bf16.msra.mxu1 %v9370_v17  ;;  %8087 = vmatprep.mubr.msk.bf16.mxu1 %vm521_vm0, %v2823_v4  ;;  %v11597_v26 = vpop.f32.mrb[134].mxu0  ;;  %v9388_v17 = vld [vmem:[%s13152_s2 + $0x600] ss:$8 sps:$4 sm:$0xff]   ;;  %v9391_v4 = vld [vmem:[%s13152_s2 + $0x610] ss:$8 sps:$4 sm:$0xff]  }
 0x27a   : > { %3025 = vmatprep.subr.bf16.mxu1 %v9375_v14  ;;  %v11601_v14 = vpop.f32.mrb[135].mxu0 }
 0x27d   : > { %3026 = vmatpush1.bf16.msra.mxu1 %v9373_v32  ;;  %v9385_v32 = vld [vmem:[%s13152_s2 + $0x5f0] ss:$8 sps:$4 sm:$0xff]  }
 0x27e   : > { %3027 = vmatprep.subr.bf16.mxu1 %v9378_v18 }
 0x281   : > { %3028 = vmatpush1.bf16.msra.mxu1 %v9376_v62  ;;  %v11608_v62 = vpop.f32.mrb[136].mxu0 }
 0x282   : > { %3029 = vmatprep.subr.bf16.mxu1 %v9381_v23  ;;  %v9390_v23 = vld [vmem:[%s13152_s2 + $0x604] ss:$8 sps:$4 sm:$0xff]  }
 0x285   : > { %3030 = vmatpush1.bf16.msra.mxu1 %v9379_v25  ;;  %v11613_v25 = vpop.f32.mrb[137].mxu0 }
 0x286   : > { %3031 = vmatprep.subr.bf16.mxu1 %v9384_v43  ;;  %v11615_v43 = vpop.f32.mrb[138].mxu0 }
 0x287   : > { %v11625_v18 = vpop.f32.mrb[139].mxu0 }
 0x289   : > { %3032 = vmatpush1.bf16.msra.mxu1 %v9382_v6  ;;  %v11644_v6 = vpop.f32.mrb[140].mxu0 }
 0x28a   : > { %3033 = vmatprep.subr.bf16.mxu1 %v9387_v0  ;;  %v9393_v0 = vld [vmem:[%s13152_s2 + $0x614] ss:$8 sps:$4 sm:$0xff]  }
 0x28d   : > { %3034 = vmatpush1.bf16.msra.mxu1 %v9385_v32  ;;  %v9396_v32 = vld [vmem:[%s13152_s2 + $0x624] ss:$8 sps:$4 sm:$0xff]  }
 0x28e   : > { %3035 = vmatprep.subr.bf16.mxu1 %v9390_v23  ;;  %v9394_v23 = vld [vmem:[%s13152_s2 + $0x620] ss:$8 sps:$4 sm:$0xff]  }
 0x291   : > { %3036 = vmatpush1.bf16.msra.mxu1 %v9388_v17  ;;  %v9399_v17 = vld [vmem:[%s13152_s2 + $0x634] ss:$8 sps:$4 sm:$0xff]  }
 0x292   : > { %3037 = vmatprep.subr.bf16.mxu1 %v9393_v0  ;;  %v11653_v0 = vpop.f32.mrb[141].mxu0 }
 0x293   : > { %v11658_v44 = vpop.f32.mrb[142].mxu0 }
 0x295   : > { %3038 = vmatpush1.bf16.msra.mxu1 %v9391_v4  ;;  %v9397_v4 = vld [vmem:[%s13152_s2 + $0x630] ss:$8 sps:$4 sm:$0xff]  }
 0x296   : > { %3289 = vmatprep.subr.bf16.mxu1 %v9396_v32  ;;  %v11662_v32 = vpop.f32.mrb[143].mxu0 }
 0x298   : > { %3044 = vmatmul.mubr.bf16.vlgmr.msra.gmra.mrb[0].mxu1 %v2822_v36  ;;  %v3384_v36 = vpack.c.bf16 %v11658_v44, %v11644_v6  ;;  %v3726_v6 = vld [vmem:[%s13154_s4 + $0x60] sm:$0x33] }
 0x299   : > { %3290 = vmatpush1.bf16.msra.mxu1 %v9394_v23  ;;  %8088 = vmatprep.mubr.msk.bf16.mxu1 %vm521_vm0, %v2825_v41  ;;  %v3385_v23 = vpack.c.bf16 %v11662_v32, %v11653_v0  ;;  %v9478_v41 = vld [vmem:[%s13154_s4] ss:$8 sps:$4 sm:$0xff]   ;;  %v8224_v0 = vcombine.high %v3726_v6, %v3726_v6  ;;  %v8223_v44 = vcombine.low %v3726_v6, %v3726_v6 }
 0x29a   : > { %3291 = vmatprep.subr.bf16.mxu1 %v9399_v17  ;;  %v9480_v17 = vld [vmem:[%s13154_s4 + $0x4] ss:$8 sps:$4 sm:$0xff]   ;;  %v9510_v32 = vld [vmem:[%s13154_s4 + $0x318] ss:$8 sps:$4 sm:$0xff]  }
 0x29b   : > { %3803 = vmatprep.subr.bf16.mxu0 %v9480_v17  ;;  %v9420_v17 = vld [vmem:[%s13152_s2 + $0x6a4] ss:$8 sps:$4 sm:$0xff]  }
 0x29c   : > { %3804 = vmatpush1.bf16.msra.mxu0 %v9478_v41  ;;  %v9415_v41 = vld [vmem:[%s13152_s2 + $0x690] ss:$8 sps:$4 sm:$0xff]  }
 0x29d   : > { %3292 = vmatpush1.bf16.msra.mxu1 %v9397_v4  ;;  %v9403_v4 = vld [vmem:[%s13152_s2 + $0x650] ss:$8 sps:$4 sm:$0xff]   ;;  %3805 = vmatprep.subr.bf16.mxu0 %v9483_v56  ;;  %v9432_v56 = vld [vmem:[%s13152_s2 + $0x6e4] ss:$8 sps:$4 sm:$0xff]  }
 0x29e   : > { %3293 = vmatprep.subr.bf16.mxu1 %v9402_v49  ;;  %v9484_v49 = vld [vmem:[%s13154_s4 + $0x20] ss:$8 sps:$4 sm:$0xff]  }
 0x2a0   : > { %3054 = vmatmul.mubr.bf16.gmra.mrb[4].mxu1 %v2824_v10  ;;  %v9481_v10 = vld [vmem:[%s13154_s4 + $0x10] ss:$8 sps:$4 sm:$0xff]  }
 0x2a1   : > { %3294 = vmatpush1.bf16.msra.mxu1 %v9400_v38  ;;  %8089 = vmatprep.mubr.msk.bf16.mxu1 %vm521_vm0, %v2827_v55  ;;  %v9411_v55 = vld [vmem:[%s13152_s2 + $0x674] ss:$8 sps:$4 sm:$0xff]  }
 0x2a2   : > { %3295 = vmatprep.subr.bf16.mxu1 %v9405_v45  ;;  %3806 = vmatpush1.bf16.msra.mxu0 %v9481_v10  ;;  %v9489_v38 = vld [vmem:[%s13154_s4 + $0x34] ss:$8 sps:$4 sm:$0xff]   ;;  %v9409_v45 = vld [vmem:[%s13152_s2 + $0x670] ss:$8 sps:$4 sm:$0xff]  }
 0x2a3   : > { %3807 = vmatprep.subr.bf16.mxu0 %v9486_v22  ;;  %v9435_v10 = vld [vmem:[%s13152_s2 + $0x6f4] ss:$8 sps:$4 sm:$0xff]   ;;  %v9433_v22 = vld [vmem:[%s13152_s2 + $0x6f0] ss:$8 sps:$4 sm:$0xff]  }
 0x2a5   : > { %3296 = vmatpush1.bf16.msra.mxu1 %v9403_v4  ;;  %v9427_v4 = vld [vmem:[%s13152_s2 + $0x6d0] ss:$8 sps:$4 sm:$0xff]  }
 0x2a6   : > { %3297 = vmatprep.subr.bf16.mxu1 %v9408_v46  ;;  %3808 = vmatpush1.bf16.msra.mxu0 %v9484_v49  ;;  %v9430_v46 = vld [vmem:[%s13152_s2 + $0x6e0] ss:$8 sps:$4 sm:$0xff]   ;;  %v9441_v49 = vld [vmem:[%s13152_s2 + $0x714] ss:$8 sps:$4 sm:$0xff]  }
 0x2a7   : > { %3809 = vmatprep.subr.bf16.mxu0 %v9489_v38  ;;  %v9439_v38 = vld [vmem:[%s13152_s2 + $0x710] ss:$8 sps:$4 sm:$0xff]  }
 0x2a8   : > { %3064 = vmatmul.mubr.bf16.gmra.mrb[8].mxu1 %v2826_v27  ;;  %v9492_v27 = vld [vmem:[%s13154_s4 + $0x44] ss:$8 sps:$4 sm:$0xff]  }
 0x2a9   : > { %3298 = vmatpush1.bf16.msra.mxu1 %v9406_v58  ;;  %8090 = vmatprep.mubr.msk.bf16.mxu1 %vm521_vm0, %v2829_v11  ;;  %v9490_v11 = vld [vmem:[%s13154_s4 + $0x40] ss:$8 sps:$4 sm:$0xff]   ;;  %v9438_v58 = vld [vmem:[%s13152_s2 + $0x704] ss:$8 sps:$4 sm:$0xff]  }
 0x2aa   : > { %3299 = vmatprep.subr.bf16.mxu1 %v9411_v55  ;;  %3810 = vmatpush1.bf16.msra.mxu0 %v9487_v15  ;;  %v9436_v55 = vld [vmem:[%s13152_s2 + $0x700] ss:$8 sps:$4 sm:$0xff]   ;;  %v13161_v15 = vpack.c.bf16 %v11597_v26, %v11590_v50  ;;  %v9493_v50 = vld [vmem:[%s13154_s4 + $0x50] ss:$8 sps:$4 sm:$0xff]   ;;  %v9501_v26 = vld [vmem:[%s13154_s4 + $0x2ec] ss:$8 sps:$4 sm:$0xff]  }
 0x2ab   : > { %3811 = vmatprep.subr.bf16.mxu0 %v9492_v27  ;;  %v13162_v27 = vpack.c.bf16 %v11625_v18, %v11613_v25  ;;  %v9504_v18 = vld [vmem:[%s13154_s4 + $0x2fc] ss:$8 sps:$4 sm:$0xff]   ;;  %v9509_v25 = vld [vmem:[%s13154_s4 + $0x30c] ss:$8 sps:$4 sm:$0xff]  }
 0x2ad   : > { %3300 = vmatpush1.bf16.msra.mxu1 %v9409_v45  ;;  %v9444_v45 = vld [vmem:[%s13152_s2 + $0x724] ss:$8 sps:$4 sm:$0xff]  }
 0x2ae   : > { %3301 = vmatprep.subr.bf16.mxu1 %v9414_v47  ;;  %3812 = vmatpush1.bf16.msra.mxu0 %v9490_v11  ;;  %v13160_v47 = vpack.c.bf16 %v11601_v14, %v11595_v9  ;;  %v9495_v9 = vld [vmem:[%s13154_s4 + $0x54] ss:$8 sps:$4 sm:$0xff]   ;;  %v9499_v14 = vld [vmem:[%s13154_s4 + $0x2e8] ss:$8 sps:$4 sm:$0xff]  }
 0x2af   : > { %3813 = vmatprep.subr.bf16.mxu0 %v9495_v9  ;;  %v9513_v11 = vld [vmem:[%s13154_s4 + $0x328] ss:$8 sps:$4 sm:$0xff]  }
 0x2b0   : > { %3074 = vmatmul.mubr.bf16.gmra.mrb[12].mxu1 %v2828_v16  ;;  %v9421_v16 = vld [vmem:[%s13152_s2 + $0x6b0] ss:$8 sps:$4 sm:$0xff]  }
 0x2b1   : > { %3302 = vmatpush1.bf16.msra.mxu1 %v9412_v37  ;;  %8147 = vmatprep.mubr.msk.bf16.mxu1 %vm521_vm0, %v3101_v57  ;;  %v9429_v57 = vld [vmem:[%s13152_s2 + $0x6d4] ss:$8 sps:$4 sm:$0xff]   ;;  %v13163_v37 = vpack.c.bf16 %v11615_v43, %v11608_v62  ;;  %v9502_v62 = vld [vmem:[%s13154_s4 + $0x2f8] ss:$8 sps:$4 sm:$0xff]   ;;  %v9507_v43 = vld [vmem:[%s13154_s4 + $0x308] ss:$8 sps:$4 sm:$0xff]  }
 0x2b2   : > { %3303 = vmatprep.subr.bf16.mxu1 %v9417_v21  ;;  %3814 = vmatpush1.bf16.msra.mxu0 %v9493_v50  ;;  %v9515_v21 = vld [vmem:[%s13154_s4 + $0x32c] ss:$8 sps:$4 sm:$0xff]  }
 0x2b3   : > { %8225 = vmatprep.subr.msk.bf16.mxu0 %vm3796_vm1, %v8224_v0 }
 0x2b5   : > { %3304 = vmatpush1.bf16.msra.mxu1 %v9415_v41  ;;  %v8413_v41 = vld [vmem:[%s13154_s4 + $0x338] sm:$0x33] }
 0x2b6   : > { %3305 = vmatprep.subr.bf16.mxu1 %v9420_v17  ;;  %v9518_v17 = vld [vmem:[%s13154_s4 + $0x6c] ss:$8 sps:$4 sm:$0xff]  }
 0x2b9   : > { %3306 = vmatpush1.bf16.msra.mxu1 %v9418_v19  ;;  %v8427_v19 = vcombine.high %v8413_v41, %v8413_v41 }
 0x2ba   : > { %3307 = vmatprep.subr.bf16.mxu1 %v9423_v31  ;;  %v8426_v31 = vcombine.low %v8413_v41, %v8413_v41 }
 0x2bd   : > { %3308 = vmatpush1.bf16.msra.mxu1 %v9421_v16  ;;  %v10014_v16 = vmov 0  }
 0x2be   : > { %3309 = vmatprep.subr.bf16.mxu1 %v9426_v28  ;;  %3835 = vmatprep.mubr.bf16.mxu0 %v10014_v16  ;;  %v4843_v28 = vsel %vm3796_vm1, %v8426_v31, 0 }
 0x2c1   : > { %3310 = vmatpush1.bf16.msra.mxu1 %v9424_v51  ;;  %v9526_v51 = vld [vmem:[%s13154_s4 + $0x3ac] ss:$8 sps:$4 sm:$0xff]  }
 0x2c2   : > { %3311 = vmatprep.subr.bf16.mxu1 %v9429_v57  ;;  %v3658_v57 = vlaneseq }
 0x2c5   : > { %3312 = vmatpush1.bf16.msra.mxu1 %v9427_v4  ;;  %v11982_v4 = vshrl.u32 %v3658_v57, 7 }
 0x2c6   : > { %3313 = vmatprep.subr.bf16.mxu1 %v9432_v56 }
 0x2c7   : > { %v3660_v56 = vsub.s32 0, %v11982_v4 }
 0x2c9   : > { %3314 = vmatpush1.bf16.msra.mxu1 %v9430_v46  ;;  %v3656_v46 = vld [vmem:[%s13153_s3] sm:$0x3] }
 0x2ca   : > { %3315 = vmatprep.subr.bf16.mxu1 %v9435_v10  ;;  %v3664_v10 = vsub.s32 1, %v11982_v4 }
 0x2cd   : > { %3316 = vmatpush1.bf16.msra.mxu1 %v9433_v22  ;;  %v3661_v22 = vrot.slane %v3656_v46, %v3660_v56 }
 0x2ce   : > { %3567 = vmatprep.subr.bf16.mxu1 %v9438_v58  ;;  %v3665_v58 = vrot.slane %v3656_v46, %v3664_v10 }
 0x2d0   : > { %3322 = vmatmul.mubr.bf16.vlgmr.msra.gmra.mrb[0].mxu1 %v3100_v13  ;;  %v9445_v13 = vld [vmem:[%s13152_s2 + $0x730] ss:$8 sps:$4 sm:$0xff]  }
 0x2d1   : > { %3568 = vmatpush1.bf16.msra.mxu1 %v9436_v55  ;;  %8148 = vmatprep.mubr.msk.bf16.mxu1 %vm521_vm0, %v3103_v35  ;;  %v9454_v35 = vld [vmem:[%s13152_s2 + $0x760] ss:$8 sps:$4 sm:$0xff]  }
 0x2d2   : > { %3569 = vmatprep.subr.bf16.mxu1 %v9441_v49 }
 0x2d5   : > { %3570 = vmatpush1.bf16.msra.mxu1 %v9439_v38 }
 0x2d6   : > { %3571 = vmatprep.subr.bf16.mxu1 %v9444_v45 }
 0x2d8   : > { %3332 = vmatmul.mubr.bf16.gmra.mrb[4].mxu1 %v3102_v2  ;;  %v9451_v2 = vld [vmem:[%s13152_s2 + $0x750] ss:$8 sps:$4 sm:$0xff]  }
 0x2d9   : > { %3572 = vmatpush1.bf16.msra.mxu1 %v9442_v29  ;;  %8149 = vmatprep.mubr.msk.bf16.mxu1 %vm521_vm0, %v3105_v42  ;;  %v9463_v42 = vld [vmem:[%s13152_s2 + $0x790] ss:$8 sps:$4 sm:$0xff]  }
 0x2da   : > { %3573 = vmatprep.subr.bf16.mxu1 %v9447_v1 }
 0x2dd   : > { %3574 = vmatpush1.bf16.msra.mxu1 %v9445_v13 }
 0x2de   : > { %3575 = vmatprep.subr.bf16.mxu1 %v9450_v53 }
 0x2e0   : > { %3342 = vmatmul.mubr.bf16.gmra.mrb[8].mxu1 %v3104_v63  ;;  %v9460_v63 = vld [vmem:[%s13152_s2 + $0x780] ss:$8 sps:$4 sm:$0xff]  }
 0x2e1   : > { %3576 = vmatpush1.bf16.msra.mxu1 %v9448_v60  ;;  %8150 = vmatprep.mubr.msk.bf16.mxu1 %vm521_vm0, %v3107_v5  ;;  %v9472_v5 = vld [vmem:[%s13152_s2 + $0x7c0] ss:$8 sps:$4 sm:$0xff]  }
 0x2e2   : > { %3577 = vmatprep.subr.bf16.mxu1 %v9453_v7 }
 0x2e5   : > { %3578 = vmatpush1.bf16.msra.mxu1 %v9451_v2 }
 0x2e6   : > { %3579 = vmatprep.subr.bf16.mxu1 %v9456_v40 }
 0x2e8   : > { %3352 = vmatmul.mubr.bf16.gmra.mrb[12].mxu1 %v3106_v24  ;;  %v9469_v24 = vld [vmem:[%s13152_s2 + $0x7b0] ss:$8 sps:$4 sm:$0xff]  }
 0x2e9   : > { %3580 = vmatpush1.bf16.msra.mxu1 %v9454_v35  ;;  %8207 = vmatprep.mubr.msk.bf16.mxu1 %vm521_vm0, %v3379_v33  ;;  %v13159_v33 = vpack.c.bf16 %v11573_v39, %v11566_v30  ;;  %v9498_v30 = vld [vmem:[%s13154_s4 + $0x2dc] ss:$8 sps:$4 sm:$0xff]   ;;  %v9496_v39 = vld [vmem:[%s13154_s4 + $0x2d8] ss:$8 sps:$4 sm:$0xff]  }
 0x2ea   : > { %3581 = vmatprep.subr.bf16.mxu1 %v9459_v52 }
 0x2ed   : > { %3582 = vmatpush1.bf16.msra.mxu1 %v9457_v3 }
 0x2ee   : > { %3583 = vmatprep.subr.bf16.mxu1 %v9462_v12 }
 0x2f1   : > { %3584 = vmatpush1.bf16.msra.mxu1 %v9460_v63 }
 0x2f2   : > { %3585 = vmatprep.subr.bf16.mxu1 %v9465_v20 }
 0x2f5   : > { %3586 = vmatpush1.bf16.msra.mxu1 %v9463_v42 }
 0x2f6   : > { %3587 = vmatprep.subr.bf16.mxu1 %v9468_v48 }
 0x2f9   : > { %3588 = vmatpush1.bf16.msra.mxu1 %v9466_v61 }
 0x2fa   : > { %3589 = vmatprep.subr.bf16.mxu1 %v9471_v54 }
 0x2fd   : > { %3590 = vmatpush1.bf16.msra.mxu1 %v9469_v24 }
 0x2fe   : > { %3591 = vmatprep.subr.bf16.mxu1 %v9474_v34 }
 0x301   : > { %3592 = vmatpush1.bf16.msra.mxu1 %v9472_v5 }
 0x302   : > { %3593 = vmatprep.subr.bf16.mxu1 %v9477_v59 }
 0x305   : > { %3594 = vmatpush1.bf16.msra.mxu1 %v9475_v8 }
 0x306   : > { %4848 = vmatprep.subr.bf16.mxu1 %v9498_v30 }
 0x308   : > { %3600 = vmatmul.mubr.bf16.vlgmr.msra.gmra.mrb[0].mxu1 %v13159_v33 }
 0x309   : > { %8208 = vmatprep.mubr.msk.bf16.mxu1 %vm521_vm0, %v13160_v47  ;;  %4849 = vmatpush1.bf16.msra.mxu1 %v9496_v39 }
 0x30a   : > { %4850 = vmatprep.subr.bf16.mxu1 %v9501_v26 }
 0x30d   : > { %4851 = vmatpush1.bf16.msra.mxu1 %v9499_v14 }
 0x30e   : > { %4852 = vmatprep.subr.bf16.mxu1 %v9504_v18 }
 0x310   : > { %3610 = vmatmul.mubr.bf16.gmra.mrb[4].mxu1 %v13161_v15 }
 0x311   : > { %8209 = vmatprep.mubr.msk.bf16.mxu1 %vm521_vm0, %v13162_v27  ;;  %4853 = vmatpush1.bf16.msra.mxu1 %v9502_v62 }
 0x312   : > { %4854 = vmatprep.subr.bf16.mxu1 %v9509_v25 }
 0x315   : > { %4855 = vmatpush1.bf16.msra.mxu1 %v9507_v43 }
 0x318   : > { %3620 = vmatmul.mubr.bf16.gmra.mrb[8].mxu1 %v13163_v37 }
 0x319   : > { %8210 = vmatprep.mubr.msk.bf16.mxu1 %vm521_vm0, %v3385_v23  ;;  %v3798_v23 = vsel %vm3796_vm1, %v8223_v44, 0 }
 0x31a   : > { %3816 = vmatpush1.bf16.msra.mxu0 %v3798_v23 }
 0x31b   : > { %3953 = vmatprep.subr.bf16.mxu0 %v9518_v17  ;;  %v9523_v17 = vld [vmem:[%s13154_s4 + $0x7c] ss:$8 sps:$4 sm:$0xff]  }
 0x320   : > { %3630 = vmatmul.mubr.bf16.gmra.mrb[12].mxu1 %v3384_v36  ;;  %v9512_v36 = vld [vmem:[%s13154_s4 + $0x31c] ss:$8 sps:$4 sm:$0xff]  }
 0x321   : > { %4856 = vmatprep.subr.bf16.mxu1 %v9512_v36  ;;  %4880 = vmatprep.mubr.bf16.mxu1 %v10014_v16 }
 0x322   : > { %4857 = vmatpush1.bf16.msra.mxu1 %v9510_v32  ;;  %v9516_v32 = vld [vmem:[%s13154_s4 + $0x68] ss:$8 sps:$4 sm:$0xff]  }
 0x323   : > { %4858 = vmatprep.subr.bf16.mxu1 %v9515_v21 }
 0x326   : > { %4859 = vmatpush1.bf16.msra.mxu1 %v9513_v11 }
 0x327   : > { %8428 = vmatprep.subr.msk.bf16.mxu1 %vm3796_vm1, %v8427_v19 }
 0x32a   : > { %4861 = vmatpush1.bf16.msra.mxu1 %v4843_v28 }
 0x32b   : > { %5147 = vmatprep.subr.bf16.mxu1 %v9526_v51 }
 0x3db   : > { %v3601_v55 = vpop.f32.mrb[0].mxu1 }
 0x3dc   : > { %v3668_v49 = vadd.f32 %v3661_v22, %v3601_v55  ;;  %v3603_v38 = vpop.f32.mrb[1].mxu1 }
 0x3dd   : > { %v3669_v45 = vadd.f32 %v3665_v58, %v3603_v38  ;;  %v3605_v29 = vpop.f32.mrb[2].mxu1  ;;  %v9524_v38 = vld [vmem:[%s13154_s4 + $0x3a8] ss:$8 sps:$4 sm:$0xff]  }
 0x3de   : > { %v3684_v1 = vmax.f32 %v3668_v49, 0.0  ;;  %v3670_v13 = vadd.f32 %v3661_v22, %v3605_v29  ;;  %v3607_v53 = vpop.f32.mrb[3].mxu1  ;;  %v9521_v49 = vld [vmem:[%s13154_s4 + $0x78] ss:$8 sps:$4 sm:$0xff]   ;;  %v9529_v29 = vld [vmem:[%s13154_s4 + $0x8c] ss:$8 sps:$4 sm:$0xff]  }
 0x3df   : > { %v3685_v60 = vmax.f32 %v3669_v45, 0.0  ;;  %v3671_v7 = vadd.f32 %v3665_v58, %v3607_v53 }
 0x3e0   : > { %v3686_v2 = vmax.f32 %v3670_v13, 0.0 }
 0x3e1   : > { %v3700_v40 = vmax.f32 %v3684_v1, %v3685_v60  ;;  %v3687_v35 = vmax.f32 %v3671_v7, 0.0  ;;  %v9532_v1 = vld [vmem:[%s13154_s4 + $0x3bc] ss:$8 sps:$4 sm:$0xff]   ;;  %v9527_v60 = vld [vmem:[%s13154_s4 + $0x88] ss:$8 sps:$4 sm:$0xff]  }
 0x3e2   : > { %v9530_v7 = vld [vmem:[%s13154_s4 + $0x3b8] ss:$8 sps:$4 sm:$0xff]  }
 0x3e3   : > { %v3701_v52 = vmax.f32 %v3686_v2, %v3687_v35  ;;  %v3611_v3 = vpop.f32.mrb[4].mxu1  ;;  %v9538_v35 = vld [vmem:[%s13154_s4 + $0x3cc] ss:$8 sps:$4 sm:$0xff]  }
 0x3e4   : > { %v3672_v12 = vadd.f32 %v3661_v22, %v3611_v3  ;;  %v3613_v63 = vpop.f32.mrb[5].mxu1  ;;  %v9536_v3 = vld [vmem:[%s13154_s4 + $0x3c8] ss:$8 sps:$4 sm:$0xff]  }
 0x3e5   : > { %v3673_v20 = vadd.f32 %v3665_v58, %v3613_v63  ;;  %v3615_v42 = vpop.f32.mrb[6].mxu1  ;;  %v9544_v63 = vld [vmem:[%s13154_s4 + $0x3dc] ss:$8 sps:$4 sm:$0xff]  }
 0x3e6   : > { %v3688_v48 = vmax.f32 %v3672_v12, 0.0  ;;  %v3674_v61 = vadd.f32 %v3661_v22, %v3615_v42  ;;  %v3617_v54 = vpop.f32.mrb[7].mxu1  ;;  %v9541_v12 = vld [vmem:[%s13154_s4 + $0xac] ss:$8 sps:$4 sm:$0xff]   ;;  %v9542_v42 = vld [vmem:[%s13154_s4 + $0x3d8] ss:$8 sps:$4 sm:$0xff]  }
 0x3e7   : > { %v3689_v24 = vmax.f32 %v3673_v20, 0.0  ;;  %v3675_v34 = vadd.f32 %v3665_v58, %v3617_v54  ;;  %v9539_v20 = vld [vmem:[%s13154_s4 + $0xa8] ss:$8 sps:$4 sm:$0xff]  }
 0x3e8   : > { %v3690_v5 = vmax.f32 %v3674_v61, 0.0  ;;  %v9550_v61 = vld [vmem:[%s13154_s4 + $0x3ec] ss:$8 sps:$4 sm:$0xff]  }
 0x3e9   : > { %v3702_v59 = vmax.f32 %v3688_v48, %v3689_v24  ;;  %v3691_v8 = vmax.f32 %v3675_v34, 0.0  ;;  %v9547_v48 = vld [vmem:[%s13154_s4 + $0xbc] ss:$8 sps:$4 sm:$0xff]   ;;  %v8239_v54 = vld [vmem:[%s13154_s4 + $0xc8] sm:$0x33] }
 0x3ea   : > { %v9545_v24 = vld [vmem:[%s13154_s4 + $0xb8] ss:$8 sps:$4 sm:$0xff]   ;;  %v9548_v34 = vld [vmem:[%s13154_s4 + $0x3e8] ss:$8 sps:$4 sm:$0xff]  }
 0x3eb   : > { %v3703_v33 = vmax.f32 %v3690_v5, %v3691_v8  ;;  %v3621_v47 = vpop.f32.mrb[8].mxu1  ;;  %v8253_v5 = vcombine.high %v8239_v54, %v8239_v54  ;;  %v8252_v8 = vcombine.low %v8239_v54, %v8239_v54  ;;  %v9607_v54 = vld [vmem:[%s13154_s4 + $0x158] ss:$8 sps:$4 sm:$0xff]  }
 0x3ec   : > { %v3676_v15 = vadd.f32 %v3661_v22, %v3621_v47  ;;  %v3623_v27 = vpop.f32.mrb[9].mxu1  ;;  %v9552_v47 = vld [vmem:[%s13154_s4 + $0x3f8] ss:$8 sps:$4 sm:$0xff]  }
 0x3ed   : > { %v3677_v37 = vadd.f32 %v3665_v58, %v3623_v27  ;;  %v3625_v30 = vpop.f32.mrb[10].mxu1  ;;  %v9558_v27 = vld [vmem:[%s13154_s4 + $0xd4] ss:$8 sps:$4 sm:$0xff]  }
 0x3ee   : > { %v3692_v39 = vmax.f32 %v3676_v15, 0.0  ;;  %v3678_v50 = vadd.f32 %v3661_v22, %v3625_v30  ;;  %v3627_v9 = vpop.f32.mrb[11].mxu1  ;;  %v3948_v15 = vsel %vm3796_vm1, %v8252_v8, 0  ;;  %v9616_v8 = vld [vmem:[%s13154_s4 + $0x568] ss:$8 sps:$4 sm:$0xff]  }
 0x3ef   : > { %v3693_v26 = vmax.f32 %v3677_v37, 0.0  ;;  %v3679_v14 = vadd.f32 %v3665_v58, %v3627_v9 }
 0x3f0   : > { %v3694_v18 = vmax.f32 %v3678_v50, 0.0 }
 0x3f1   : > { %v3704_v62 = vmax.f32 %v3692_v39, %v3693_v26  ;;  %v3695_v25 = vmax.f32 %v3679_v14, 0.0  ;;  %v9556_v39 = vld [vmem:[%s13154_s4 + $0xd0] ss:$8 sps:$4 sm:$0xff]   ;;  %v9563_v26 = vld [vmem:[%s13154_s4 + $0xe4] ss:$8 sps:$4 sm:$0xff]  }
 0x3f2   : > { %v9566_v14 = vld [vmem:[%s13154_s4 + $0x47c] ss:$8 sps:$4 sm:$0xff]  }
 0x3f3   : > { %v3708_v43 = vmax.f32 %v3700_v40, %v3704_v62  ;;  %v3705_v6 = vmax.f32 %v3694_v18, %v3695_v25  ;;  %v3631_v0 = vpop.f32.mrb[12].mxu1  ;;  %v9535_v40 = vld [vmem:[%s13154_s4 + $0x9c] ss:$8 sps:$4 sm:$0xff]   ;;  %v9561_v18 = vld [vmem:[%s13154_s4 + $0xe0] ss:$8 sps:$4 sm:$0xff]  }
 0x3f4   : > { %v3680_v44 = vadd.f32 %v3661_v22, %v3631_v0  ;;  %v3633_v36 = vpop.f32.mrb[13].mxu1  ;;  %v9564_v62 = vld [vmem:[%s13154_s4 + $0x478] ss:$8 sps:$4 sm:$0xff]  }
 0x3f5   : > { %v11996_v23 = vpack.c.bf16 %v3708_v43, %v3708_v43  ;;  %v11998_v21 = vmax.f32 %v3701_v52, %v3705_v6  ;;  %v3681_v11 = vadd.f32 %v3665_v58, %v3633_v36  ;;  %v3635_v41 = vpop.f32.mrb[14].mxu1  ;;  %v9533_v52 = vld [vmem:[%s13154_s4 + $0x98] ss:$8 sps:$4 sm:$0xff]   ;;  %v9569_v43 = vld [vmem:[%s13154_s4 + $0xf4] ss:$8 sps:$4 sm:$0xff]  }
 0x3f6   : > { %v3696_v19 = vmax.f32 %v3680_v44, 0.0  ;;  %v3682_v31 = vadd.f32 %v3661_v22, %v3635_v41  ;;  %v3637_v28 = vpop.f32.mrb[15].mxu1  ;;  %v9572_v6 = vld [vmem:[%s13154_s4 + $0x48c] ss:$8 sps:$4 sm:$0xff]   ;;  %v9567_v0 = vld [vmem:[%s13154_s4 + $0xf0] ss:$8 sps:$4 sm:$0xff]  }
 0x3f7   : > { %v12004_v51 = vshrl.u32 %v11996_v23, 16  ;;  %v3697_v57 = vmax.f32 %v3681_v11, 0.0  ;;  %v3683_v46 = vadd.f32 %v3665_v58, %v3637_v28  ;;  %8226 = vmatmul.mubr.msk.bf16.vlgmr.msra.gmra.mrb[144].mxu0 %vm3792_vm2, %v11996_v23  ;;  %v12092_v50 = vpack.c.bf16 %v11998_v21, %v11998_v21  ;;  %v9570_v44 = vld [vmem:[%s13154_s4 + $0x488] ss:$8 sps:$4 sm:$0xff]   ;;  %v9575_v36 = vld [vmem:[%s13154_s4 + $0x104] ss:$8 sps:$4 sm:$0xff]  }
 0x3f8   : > { %v3698_v55 = vmax.f32 %v3682_v31, 0.0  ;;  %3954 = vmatpush1.bf16.msra.mxu0 %v9516_v32  ;;  %3985 = vmatprep.mubr.bf16.mxu0 %v10014_v16  ;;  %v9578_v32 = vld [vmem:[%s13154_s4 + $0x49c] ss:$8 sps:$4 sm:$0xff]   ;;  %v9573_v21 = vld [vmem:[%s13154_s4 + $0x100] ss:$8 sps:$4 sm:$0xff]  }
 0x3f9   : > { %v3706_v22 = vmax.f32 %v3696_v19, %v3697_v57  ;;  %v3699_v45 = vmax.f32 %v3683_v46, 0.0  ;;  %3955 = vmatprep.subr.bf16.mxu0 %v9523_v17  ;;  %v4773_v58 = vrot.slane %v12004_v51, 3  ;;  %v12111_v25 = vshrl.u32 %v12092_v50, 16  ;;  %v9576_v11 = vld [vmem:[%s13154_s4 + $0x498] ss:$8 sps:$4 sm:$0xff]  }
 0x3fa   : > { %v9581_v41 = vld [vmem:[%s13154_s4 + $0x114] ss:$8 sps:$4 sm:$0xff]   ;;  %v9579_v19 = vld [vmem:[%s13154_s4 + $0x110] ss:$8 sps:$4 sm:$0xff]   ;;  %v9587_v28 = vld [vmem:[%s13154_s4 + $0x124] ss:$8 sps:$4 sm:$0xff]  }
 0x3fb   : > { %v12022_v13 = vmax.f32 %v3702_v59, %v3706_v22  ;;  %v3707_v53 = vmax.f32 %v3698_v55, %v3699_v45  ;;  %8429 = vmatmul.mubr.msk.bf16.vlgmr.msra.gmra.mrb[16].mxu1 %vm3792_vm2, %v4773_v58  ;;  %v9554_v59 = vld [vmem:[%s13154_s4 + $0x3fc] ss:$8 sps:$4 sm:$0xff]   ;;  %v9584_v17 = vld [vmem:[%s13154_s4 + $0x4ac] ss:$8 sps:$4 sm:$0xff]   ;;  %v9582_v31 = vld [vmem:[%s13154_s4 + $0x4a8] ss:$8 sps:$4 sm:$0xff]  }
 0x3fc   : > { %3956 = vmatpush1.bf16.msra.mxu0 %v9521_v49  ;;  %5148 = vmatpush1.bf16.msra.mxu1 %v9524_v38  ;;  %v9590_v57 = vld [vmem:[%s13154_s4 + $0x4bc] ss:$8 sps:$4 sm:$0xff]   ;;  %v8268_v46 = vld [vmem:[%s13154_s4 + $0x130] sm:$0x33]  ;;  %v9585_v55 = vld [vmem:[%s13154_s4 + $0x120] ss:$8 sps:$4 sm:$0xff]  }
 0x3fd   : > { %v12031_v2 = vmax.f32 %v3703_v33, %v3707_v53  ;;  %3957 = vmatprep.subr.bf16.mxu0 %v9529_v29  ;;  %5149 = vmatprep.subr.bf16.mxu1 %v9532_v1  ;;  %v8471_v33 = vld [vmem:[%s13154_s4 + $0x408] sm:$0x33]  ;;  %v9588_v49 = vld [vmem:[%s13154_s4 + $0x4b8] ss:$8 sps:$4 sm:$0xff]   ;;  %v8282_v38 = vcombine.high %v8268_v46, %v8268_v46  ;;  %v8281_v45 = vcombine.low %v8268_v46, %v8268_v46  ;;  %v9598_v53 = vld [vmem:[%s13154_s4 + $0x13c] ss:$8 sps:$4 sm:$0xff]  }
 0x3fe   : > { %5179 = vmatprep.mubr.bf16.mxu1 %v10014_v16  ;;  %v8485_v37 = vcombine.high %v8471_v33, %v8471_v33  ;;  %v8484_v30 = vcombine.low %v8471_v33, %v8471_v33  ;;  %v9594_v22 = vld [vmem:[%s13154_s4 + $0x4cc] ss:$8 sps:$4 sm:$0xff]   ;;  %v8529_v58 = vld [vmem:[%s13154_s4 + $0x4d8] sm:$0x33]  ;;  %v9592_v29 = vld [vmem:[%s13154_s4 + $0x4c8] ss:$8 sps:$4 sm:$0xff]  }
 0x3ff   : > { %v4098_v1 = vsel %vm3796_vm1, %v8281_v45, 0  ;;  %v9621_v33 = vld [vmem:[%s13154_s4 + $0x17c] ss:$8 sps:$4 sm:$0xff]  }
 0x400   : > { %3958 = vmatpush1.bf16.msra.mxu0 %v9527_v60  ;;  %5150 = vmatpush1.bf16.msra.mxu1 %v9530_v7  ;;  %v5142_v9 = vsel %vm3796_vm1, %v8484_v30, 0  ;;  %v8543_v60 = vcombine.high %v8529_v58, %v8529_v58  ;;  %v8542_v7 = vcombine.low %v8529_v58, %v8529_v58  ;;  %v9630_v30 = vld [vmem:[%s13154_s4 + $0x58c] ss:$8 sps:$4 sm:$0xff]   ;;  %v9658_v45 = vld [vmem:[%s13154_s4 + $0x63c] ss:$8 sps:$4 sm:$0xff]  }
 0x401   : > { %3959 = vmatprep.subr.bf16.mxu0 %v9535_v40  ;;  %5151 = vmatprep.subr.bf16.mxu1 %v9538_v35  ;;  %v9596_v40 = vld [vmem:[%s13154_s4 + $0x138] ss:$8 sps:$4 sm:$0xff]   ;;  %v4028_v35 = vrot.slane %v11996_v23, 1  ;;  %v9649_v46 = vld [vmem:[%s13154_s4 + $0x1c4] ss:$8 sps:$4 sm:$0xff]  }
 0x402   : > { %v9653_v58 = vld [vmem:[%s13154_s4 + $0x1d0] ss:$8 sps:$4 sm:$0xff]  }
 0x404   : > { %3960 = vmatpush1.bf16.msra.mxu0 %v9533_v52  ;;  %5152 = vmatpush1.bf16.msra.mxu1 %v9536_v3  ;;  %v5441_v52 = vsel %vm3796_vm1, %v8542_v7, 0  ;;  %v9603_v3 = vld [vmem:[%s13154_s4 + $0x14c] ss:$8 sps:$4 sm:$0xff]   ;;  %v9662_v7 = vld [vmem:[%s13154_s4 + $0x648] ss:$8 sps:$4 sm:$0xff]  }
 0x405   : > { %3961 = vmatprep.subr.bf16.mxu0 %v9541_v12  ;;  %5153 = vmatprep.subr.bf16.mxu1 %v9544_v63  ;;  %v9606_v12 = vld [vmem:[%s13154_s4 + $0x54c] ss:$8 sps:$4 sm:$0xff]   ;;  %v9601_v63 = vld [vmem:[%s13154_s4 + $0x148] ss:$8 sps:$4 sm:$0xff]  }
 0x408   : > { %3962 = vmatpush1.bf16.msra.mxu0 %v9539_v20  ;;  %5154 = vmatpush1.bf16.msra.mxu1 %v9542_v42  ;;  %v9604_v20 = vld [vmem:[%s13154_s4 + $0x548] ss:$8 sps:$4 sm:$0xff]   ;;  %v5371_v42 = vrot.slane %v12111_v25, 1 }
 0x409   : > { %3963 = vmatprep.subr.bf16.mxu0 %v9547_v48  ;;  %5155 = vmatprep.subr.bf16.mxu1 %v9550_v61  ;;  %v9609_v48 = vld [vmem:[%s13154_s4 + $0x15c] ss:$8 sps:$4 sm:$0xff]  }
 0x40a   : > { %v9612_v61 = vld [vmem:[%s13154_s4 + $0x55c] ss:$8 sps:$4 sm:$0xff]  }
 0x40c   : > { %3964 = vmatpush1.bf16.msra.mxu0 %v9545_v24  ;;  %5156 = vmatpush1.bf16.msra.mxu1 %v9548_v34  ;;  %v9610_v24 = vld [vmem:[%s13154_s4 + $0x558] ss:$8 sps:$4 sm:$0xff]   ;;  %v9615_v34 = vld [vmem:[%s13154_s4 + $0x16c] ss:$8 sps:$4 sm:$0xff]  }
 0x40d   : > { %8254 = vmatprep.subr.msk.bf16.mxu0 %vm3796_vm1, %v8253_v5  ;;  %5157 = vmatprep.subr.bf16.mxu1 %v9554_v59  ;;  %v9618_v5 = vld [vmem:[%s13154_s4 + $0x56c] ss:$8 sps:$4 sm:$0xff]   ;;  %v9613_v59 = vld [vmem:[%s13154_s4 + $0x168] ss:$8 sps:$4 sm:$0xff]  }
 0x410   : > { %3966 = vmatpush1.bf16.msra.mxu0 %v3948_v15  ;;  %5158 = vmatpush1.bf16.msra.mxu1 %v9552_v47  ;;  %v9624_v47 = vld [vmem:[%s13154_s4 + $0x57c] ss:$8 sps:$4 sm:$0xff]   ;;  %v9619_v15 = vld [vmem:[%s13154_s4 + $0x178] ss:$8 sps:$4 sm:$0xff]  }
 0x411   : > { %4103 = vmatprep.subr.bf16.mxu0 %v9558_v27  ;;  %8486 = vmatprep.subr.msk.bf16.mxu1 %vm3796_vm1, %v8485_v37  ;;  %v9622_v27 = vld [vmem:[%s13154_s4 + $0x578] ss:$8 sps:$4 sm:$0xff]   ;;  %v9627_v37 = vld [vmem:[%s13154_s4 + $0x18c] ss:$8 sps:$4 sm:$0xff]  }
 0x413   : > { %8255 = vmatmul.mubr.msk.bf16.vlgmr.msra.gmra.mrb[148].mxu0 %vm3792_vm2, %v12004_v51 }
 0x414   : > { %4104 = vmatpush1.bf16.msra.mxu0 %v9556_v39  ;;  %5160 = vmatpush1.bf16.msra.mxu1 %v5142_v9  ;;  %v8297_v39 = vld [vmem:[%s13154_s4 + $0x198] sm:$0x33]  ;;  %v9625_v9 = vld [vmem:[%s13154_s4 + $0x188] ss:$8 sps:$4 sm:$0xff]  }
 0x415   : > { %4105 = vmatprep.subr.bf16.mxu0 %v9563_v26  ;;  %5446 = vmatprep.subr.bf16.mxu1 %v9566_v14  ;;  %v9628_v26 = vld [vmem:[%s13154_s4 + $0x588] ss:$8 sps:$4 sm:$0xff]   ;;  %v8311_v14 = vcombine.high %v8297_v39, %v8297_v39 }
 0x416   : > { %4135 = vmatprep.mubr.bf16.mxu0 %v10014_v16 }
 0x417   : > { %8487 = vmatmul.mubr.msk.bf16.vlgmr.msra.gmra.mrb[20].mxu1 %vm3792_vm2, %v12111_v25 }
 0x418   : > { %4106 = vmatpush1.bf16.msra.mxu0 %v9561_v18  ;;  %5447 = vmatpush1.bf16.msra.mxu1 %v9564_v62  ;;  %v9634_v18 = vld [vmem:[%s13154_s4 + $0x59c] ss:$8 sps:$4 sm:$0xff]   ;;  %v8310_v62 = vcombine.low %v8297_v39, %v8297_v39  ;;  %v9689_v39 = vld [vmem:[%s13154_s4 + $0x22c] ss:$8 sps:$4 sm:$0xff]  }
 0x419   : > { %4107 = vmatprep.subr.bf16.mxu0 %v9569_v43  ;;  %5448 = vmatprep.subr.bf16.mxu1 %v9572_v6  ;;  %v8587_v43 = vld [vmem:[%s13154_s4 + $0x5a8] sm:$0x33]  ;;  %v9632_v6 = vld [vmem:[%s13154_s4 + $0x598] ss:$8 sps:$4 sm:$0xff]  }
 0x41a   : > { %5478 = vmatprep.mubr.bf16.mxu1 %v10014_v16 }
 0x41c   : > { %4108 = vmatpush1.bf16.msra.mxu0 %v9567_v0  ;;  %5449 = vmatpush1.bf16.msra.mxu1 %v9570_v44  ;;  %v4247_v0 = vsel %vm3796_vm1, %v8310_v62, 0  ;;  %v9638_v44 = vld [vmem:[%s13154_s4 + $0x1a4] ss:$8 sps:$4 sm:$0xff]   ;;  %v9693_v62 = vld [vmem:[%s13154_s4 + $0x238] ss:$8 sps:$4 sm:$0xff]  }
 0x41d   : > { %4109 = vmatprep.subr.bf16.mxu0 %v9575_v36  ;;  %5450 = vmatprep.subr.bf16.mxu1 %v9578_v32  ;;  %v8601_v36 = vcombine.high %v8587_v43, %v8587_v43  ;;  %v8600_v32 = vcombine.low %v8587_v43, %v8587_v43  ;;  %v9696_v43 = vld [vmem:[%s13154_s4 + $0x708] ss:$8 sps:$4 sm:$0xff]  }
 0x420   : > { %4110 = vmatpush1.bf16.msra.mxu0 %v9573_v21  ;;  %5451 = vmatpush1.bf16.msra.mxu1 %v9576_v11  ;;  %v9636_v21 = vld [vmem:[%s13154_s4 + $0x1a0] ss:$8 sps:$4 sm:$0xff]   ;;  %v4177_v11 = vrot.slane %v12004_v51, 1 }
 0x421   : > { %4111 = vmatprep.subr.bf16.mxu0 %v9581_v41  ;;  %5452 = vmatprep.subr.bf16.mxu1 %v9584_v17  ;;  %v5739_v41 = vsel %vm3796_vm1, %v8600_v32, 0  ;;  %v9643_v17 = vld [vmem:[%s13154_s4 + $0x1b4] ss:$8 sps:$4 sm:$0xff]  }
 0x422   : > { %v9707_v32 = vld [vmem:[%s13154_s4 + $0x25c] ss:$8 sps:$4 sm:$0xff]  }
 0x424   : > { %4112 = vmatpush1.bf16.msra.mxu0 %v9579_v19  ;;  %5453 = vmatpush1.bf16.msra.mxu1 %v9582_v31  ;;  %v9646_v19 = vld [vmem:[%s13154_s4 + $0x61c] ss:$8 sps:$4 sm:$0xff]   ;;  %v9641_v31 = vld [vmem:[%s13154_s4 + $0x1b0] ss:$8 sps:$4 sm:$0xff]  }
 0x425   : > { %4113 = vmatprep.subr.bf16.mxu0 %v9587_v28  ;;  %5454 = vmatprep.subr.bf16.mxu1 %v9590_v57  ;;  %v9644_v28 = vld [vmem:[%s13154_s4 + $0x618] ss:$8 sps:$4 sm:$0xff]   ;;  %v5669_v57 = vrot.slane %v12111_v25, 2 }
 0x428   : > { %4114 = vmatpush1.bf16.msra.mxu0 %v9585_v55  ;;  %5455 = vmatpush1.bf16.msra.mxu1 %v9588_v49  ;;  %v9652_v55 = vld [vmem:[%s13154_s4 + $0x62c] ss:$8 sps:$4 sm:$0xff]   ;;  %v9647_v49 = vld [vmem:[%s13154_s4 + $0x1c0] ss:$8 sps:$4 sm:$0xff]  }
 0x429   : > { %8283 = vmatprep.subr.msk.bf16.mxu0 %vm3796_vm1, %v8282_v38  ;;  %5456 = vmatprep.subr.bf16.mxu1 %v9594_v22  ;;  %v9650_v38 = vld [vmem:[%s13154_s4 + $0x628] ss:$8 sps:$4 sm:$0xff]   ;;  %v9655_v22 = vld [vmem:[%s13154_s4 + $0x1d4] ss:$8 sps:$4 sm:$0xff]  }
 0x42c   : > { %4116 = vmatpush1.bf16.msra.mxu0 %v4098_v1  ;;  %5457 = vmatpush1.bf16.msra.mxu1 %v9592_v29  ;;  %v9656_v29 = vld [vmem:[%s13154_s4 + $0x638] ss:$8 sps:$4 sm:$0xff]   ;;  %v9661_v1 = vld [vmem:[%s13154_s4 + $0x1e4] ss:$8 sps:$4 sm:$0xff]  }
 0x42d   : > { %4252 = vmatprep.subr.bf16.mxu0 %v9598_v53  ;;  %8544 = vmatprep.subr.msk.bf16.mxu1 %vm3796_vm1, %v8543_v60  ;;  %v9664_v53 = vld [vmem:[%s13154_s4 + $0x64c] ss:$8 sps:$4 sm:$0xff]   ;;  %v9659_v60 = vld [vmem:[%s13154_s4 + $0x1e0] ss:$8 sps:$4 sm:$0xff]  }
 0x42f   : > { %8284 = vmatmul.mubr.msk.bf16.vlgmr.msra.gmra.mrb[152].mxu0 %vm3792_vm2, %v4028_v35  ;;  %v9670_v35 = vld [vmem:[%s13154_s4 + $0x65c] ss:$8 sps:$4 sm:$0xff]  }
 0x430   : > { %4253 = vmatpush1.bf16.msra.mxu0 %v9596_v40  ;;  %5459 = vmatpush1.bf16.msra.mxu1 %v5441_v52  ;;  %v9667_v40 = vld [vmem:[%s13154_s4 + $0x1f4] ss:$8 sps:$4 sm:$0xff]   ;;  %v8326_v52 = vld [vmem:[%s13154_s4 + $0x200] sm:$0x33] }
 0x431   : > { %4254 = vmatprep.subr.bf16.mxu0 %v9603_v3  ;;  %5744 = vmatprep.subr.bf16.mxu1 %v9606_v12  ;;  %v9665_v3 = vld [vmem:[%s13154_s4 + $0x1f0] ss:$8 sps:$4 sm:$0xff]  }
 0x432   : > { %4284 = vmatprep.mubr.bf16.mxu0 %v10014_v16  ;;  %v9668_v12 = vld [vmem:[%s13154_s4 + $0x658] ss:$8 sps:$4 sm:$0xff]  }
 0x433   : > { %8545 = vmatmul.mubr.msk.bf16.vlgmr.msra.gmra.mrb[24].mxu1 %vm3792_vm2, %v5371_v42  ;;  %v8339_v42 = vcombine.low %v8326_v52, %v8326_v52 }
 0x434   : > { %4255 = vmatpush1.bf16.msra.mxu0 %v9601_v63  ;;  %5745 = vmatpush1.bf16.msra.mxu1 %v9604_v20  ;;  %v8340_v63 = vcombine.high %v8326_v52, %v8326_v52  ;;  %v9674_v20 = vld [vmem:[%s13154_s4 + $0x66c] ss:$8 sps:$4 sm:$0xff]   ;;  %v9727_v52 = vld [vmem:[%s13154_s4 + $0x290] ss:$8 sps:$4 sm:$0xff]  }
 0x435   : > { %4256 = vmatprep.subr.bf16.mxu0 %v9609_v48  ;;  %5746 = vmatprep.subr.bf16.mxu1 %v9612_v61  ;;  %v8645_v48 = vld [vmem:[%s13154_s4 + $0x678] sm:$0x33]  ;;  %v9672_v61 = vld [vmem:[%s13154_s4 + $0x668] ss:$8 sps:$4 sm:$0xff]  }
 0x436   : > { %5776 = vmatprep.mubr.bf16.mxu1 %v10014_v16 }
 0x438   : > { %4257 = vmatpush1.bf16.msra.mxu0 %v9607_v54  ;;  %5747 = vmatpush1.bf16.msra.mxu1 %v9610_v24  ;;  %v4396_v54 = vsel %vm3796_vm1, %v8339_v42, 0  ;;  %v9678_v24 = vld [vmem:[%s13154_s4 + $0x20c] ss:$8 sps:$4 sm:$0xff]   ;;  %v9736_v42 = vld [vmem:[%s13154_s4 + $0x7d8] ss:$8 sps:$4 sm:$0xff]  }
 0x439   : > { %4258 = vmatprep.subr.bf16.mxu0 %v9615_v34  ;;  %5748 = vmatprep.subr.bf16.mxu1 %v9618_v5  ;;  %v8659_v34 = vcombine.high %v8645_v48, %v8645_v48  ;;  %v8658_v5 = vcombine.low %v8645_v48, %v8645_v48  ;;  %v9741_v48 = vld [vmem:[%s13154_s4 + $0x2b4] ss:$8 sps:$4 sm:$0xff]  }
 0x43c   : > { %4259 = vmatpush1.bf16.msra.mxu0 %v9613_v59  ;;  %5749 = vmatpush1.bf16.msra.mxu1 %v9616_v8  ;;  %v9676_v59 = vld [vmem:[%s13154_s4 + $0x208] ss:$8 sps:$4 sm:$0xff]   ;;  %v4326_v8 = vrot.slane %v11996_v23, 2 }
 0x43d   : > { %4260 = vmatprep.subr.bf16.mxu0 %v9621_v33  ;;  %5750 = vmatprep.subr.bf16.mxu1 %v9624_v47  ;;  %v6037_v33 = vsel %vm3796_vm1, %v8658_v5, 0  ;;  %v9683_v47 = vld [vmem:[%s13154_s4 + $0x21c] ss:$8 sps:$4 sm:$0xff]  }
 0x43e   : > { %v9750_v5 = vld [vmem:[%s13154_s4 + $0x7fc] ss:$8 sps:$4 sm:$0xff]  }
 0x440   : > { %4261 = vmatpush1.bf16.msra.mxu0 %v9619_v15  ;;  %5751 = vmatpush1.bf16.msra.mxu1 %v9622_v27  ;;  %v9686_v15 = vld [vmem:[%s13154_s4 + $0x6ec] ss:$8 sps:$4 sm:$0xff]   ;;  %v9681_v27 = vld [vmem:[%s13154_s4 + $0x218] ss:$8 sps:$4 sm:$0xff]  }
 0x441   : > { %4262 = vmatprep.subr.bf16.mxu0 %v9627_v37  ;;  %5752 = vmatprep.subr.bf16.mxu1 %v9630_v30  ;;  %v9684_v37 = vld [vmem:[%s13154_s4 + $0x6e8] ss:$8 sps:$4 sm:$0xff]   ;;  %v5967_v30 = vrot.slane %v12111_v25, 3  ;;  %v9690_v25 = vld [vmem:[%s13154_s4 + $0x6f8] ss:$8 sps:$4 sm:$0xff]  }
 0x444   : > { %4263 = vmatpush1.bf16.msra.mxu0 %v9625_v9  ;;  %5753 = vmatpush1.bf16.msra.mxu1 %v9628_v26  ;;  %v9692_v9 = vld [vmem:[%s13154_s4 + $0x6fc] ss:$8 sps:$4 sm:$0xff]   ;;  %v9687_v26 = vld [vmem:[%s13154_s4 + $0x228] ss:$8 sps:$4 sm:$0xff]  }
 0x445   : > { %8312 = vmatprep.subr.msk.bf16.mxu0 %vm3796_vm1, %v8311_v14  ;;  %5754 = vmatprep.subr.bf16.mxu1 %v9634_v18  ;;  %v9695_v14 = vld [vmem:[%s13154_s4 + $0x23c] ss:$8 sps:$4 sm:$0xff]   ;;  %v9698_v18 = vld [vmem:[%s13154_s4 + $0x70c] ss:$8 sps:$4 sm:$0xff]  }
 0x448   : > { %4265 = vmatpush1.bf16.msra.mxu0 %v4247_v0  ;;  %5755 = vmatpush1.bf16.msra.mxu1 %v9632_v6  ;;  %v9701_v6 = vld [vmem:[%s13154_s4 + $0x24c] ss:$8 sps:$4 sm:$0xff]   ;;  %v9704_v0 = vld [vmem:[%s13154_s4 + $0x71c] ss:$8 sps:$4 sm:$0xff]  }
 0x449   : > { %4401 = vmatprep.subr.bf16.mxu0 %v9638_v44  ;;  %8602 = vmatprep.subr.msk.bf16.mxu1 %vm3796_vm1, %v8601_v36  ;;  %v9699_v44 = vld [vmem:[%s13154_s4 + $0x248] ss:$8 sps:$4 sm:$0xff]   ;;  %v9702_v36 = vld [vmem:[%s13154_s4 + $0x718] ss:$8 sps:$4 sm:$0xff]  }
 0x44b   : > { %8313 = vmatmul.mubr.msk.bf16.vlgmr.msra.gmra.mrb[156].mxu0 %vm3792_vm2, %v4177_v11  ;;  %v8355_v11 = vld [vmem:[%s13154_s4 + $0x268] sm:$0x33] }
 0x44c   : > { %4402 = vmatpush1.bf16.msra.mxu0 %v9636_v21  ;;  %5757 = vmatpush1.bf16.msra.mxu1 %v5739_v41  ;;  %v9710_v21 = vld [vmem:[%s13154_s4 + $0x72c] ss:$8 sps:$4 sm:$0xff]   ;;  %v9705_v41 = vld [vmem:[%s13154_s4 + $0x258] ss:$8 sps:$4 sm:$0xff]  }
 0x44d   : > { %4403 = vmatprep.subr.bf16.mxu0 %v9643_v17  ;;  %6042 = vmatprep.subr.bf16.mxu1 %v9646_v19  ;;  %v9708_v17 = vld [vmem:[%s13154_s4 + $0x728] ss:$8 sps:$4 sm:$0xff]   ;;  %v8369_v19 = vcombine.high %v8355_v11, %v8355_v11 }
 0x44e   : > { %4433 = vmatprep.mubr.bf16.mxu0 %v10014_v16 }
 0x44f   : > { %8603 = vmatmul.mubr.msk.bf16.vlgmr.msra.gmra.mrb[28].mxu1 %vm3792_vm2, %v5669_v57  ;;  %v8703_v57 = vld [vmem:[%s13154_s4 + $0x748] sm:$0x33] }
 0x450   : > { %4404 = vmatpush1.bf16.msra.mxu0 %v9641_v31  ;;  %6043 = vmatpush1.bf16.msra.mxu1 %v9644_v28  ;;  %v9714_v31 = vld [vmem:[%s13154_s4 + $0x73c] ss:$8 sps:$4 sm:$0xff]   ;;  %v8368_v28 = vcombine.low %v8355_v11, %v8355_v11  ;;  %v9770_v11 = vld [vmem:[%s13154_s4 + $0x898] ss:$8 sps:$4 sm:$0xff]  }
 0x451   : > { %4405 = vmatprep.subr.bf16.mxu0 %v9649_v46  ;;  %6044 = vmatprep.subr.bf16.mxu1 %v9652_v55  ;;  %v9712_v46 = vld [vmem:[%s13154_s4 + $0x738] ss:$8 sps:$4 sm:$0xff]  }
 0x452   : > { %6074 = vmatprep.mubr.bf16.mxu1 %v10014_v16  ;;  %v4545_v55 = vsel %vm3796_vm1, %v8368_v28, 0  ;;  %v9781_v28 = vld [vmem:[%s13154_s4 + $0x384] ss:$8 sps:$4 sm:$0xff]  }
 0x454   : > { %4406 = vmatpush1.bf16.msra.mxu0 %v9647_v49  ;;  %6045 = vmatpush1.bf16.msra.mxu1 %v9650_v38  ;;  %v9718_v49 = vld [vmem:[%s13154_s4 + $0x274] ss:$8 sps:$4 sm:$0xff]   ;;  %v8717_v38 = vcombine.high %v8703_v57, %v8703_v57 }
 0x455   : > { %4407 = vmatprep.subr.bf16.mxu0 %v9655_v22  ;;  %6046 = vmatprep.subr.bf16.mxu1 %v9658_v45  ;;  %v8716_v22 = vcombine.low %v8703_v57, %v8703_v57  ;;  %v9716_v45 = vld [vmem:[%s13154_s4 + $0x270] ss:$8 sps:$4 sm:$0xff]   ;;  %v9784_v57 = vld [vmem:[%s13154_s4 + $0x8bc] ss:$8 sps:$4 sm:$0xff]  }
 0x458   : > { %4408 = vmatpush1.bf16.msra.mxu0 %v9653_v58  ;;  %6047 = vmatpush1.bf16.msra.mxu1 %v9656_v29  ;;  %v12451_v58 = vpack.c.bf16 %v12022_v13, %v12022_v13  ;;  %v4475_v29 = vrot.slane %v12004_v51, 2  ;;  %v9721_v51 = vld [vmem:[%s13154_s4 + $0x280] ss:$8 sps:$4 sm:$0xff]  }
 0x459   : > { %4409 = vmatprep.subr.bf16.mxu0 %v9661_v1  ;;  %6048 = vmatprep.subr.bf16.mxu1 %v9664_v53  ;;  %v6336_v1 = vsel %vm3796_vm1, %v8716_v22, 0  ;;  %v9723_v53 = vld [vmem:[%s13154_s4 + $0x284] ss:$8 sps:$4 sm:$0xff]   ;;  %v9724_v13 = vld [vmem:[%s13154_s4 + $0x7b8] ss:$8 sps:$4 sm:$0xff]  }
 0x45a   : > { %v8442_v22 = vld [vmem:[%s13154_s4 + $0x3a0] sm:$0x33] }
 0x45c   : > { %4410 = vmatpush1.bf16.msra.mxu0 %v9659_v60  ;;  %6049 = vmatpush1.bf16.msra.mxu1 %v9662_v7  ;;  %v9726_v60 = vld [vmem:[%s13154_s4 + $0x7bc] ss:$8 sps:$4 sm:$0xff]   ;;  %v12470_v7 = vshrl.u32 %v12451_v58, 16 }
 0x45d   : > { %4411 = vmatprep.subr.bf16.mxu0 %v9667_v40  ;;  %6050 = vmatprep.subr.bf16.mxu1 %v9670_v35  ;;  %v9729_v40 = vld [vmem:[%s13154_s4 + $0x294] ss:$8 sps:$4 sm:$0xff]  }
 0x45e   : > { %v9732_v35 = vld [vmem:[%s13154_s4 + $0x7cc] ss:$8 sps:$4 sm:$0xff]  }
 0x460   : > { %4412 = vmatpush1.bf16.msra.mxu0 %v9665_v3  ;;  %6051 = vmatpush1.bf16.msra.mxu1 %v9668_v12  ;;  %v9730_v3 = vld [vmem:[%s13154_s4 + $0x7c8] ss:$8 sps:$4 sm:$0xff]   ;;  %v9735_v12 = vld [vmem:[%s13154_s4 + $0x2a4] ss:$8 sps:$4 sm:$0xff]  }
 0x461   : > { %8341 = vmatprep.subr.msk.bf16.mxu0 %vm3796_vm1, %v8340_v63  ;;  %6052 = vmatprep.subr.bf16.mxu1 %v9674_v20  ;;  %v9738_v63 = vld [vmem:[%s13154_s4 + $0x7dc] ss:$8 sps:$4 sm:$0xff]   ;;  %v9733_v20 = vld [vmem:[%s13154_s4 + $0x2a0] ss:$8 sps:$4 sm:$0xff]  }
 0x464   : > { %4414 = vmatpush1.bf16.msra.mxu0 %v4396_v54  ;;  %6053 = vmatpush1.bf16.msra.mxu1 %v9672_v61  ;;  %v9744_v61 = vld [vmem:[%s13154_s4 + $0x7ec] ss:$8 sps:$4 sm:$0xff]   ;;  %v9739_v54 = vld [vmem:[%s13154_s4 + $0x2b0] ss:$8 sps:$4 sm:$0xff]  }
 0x465   : > { %4550 = vmatprep.subr.bf16.mxu0 %v9678_v24  ;;  %8660 = vmatprep.subr.msk.bf16.mxu1 %vm3796_vm1, %v8659_v34  ;;  %v9742_v24 = vld [vmem:[%s13154_s4 + $0x7e8] ss:$8 sps:$4 sm:$0xff]   ;;  %v9747_v34 = vld [vmem:[%s13154_s4 + $0x2c4] ss:$8 sps:$4 sm:$0xff]  }
 0x467   : > { %8342 = vmatmul.mubr.msk.bf16.vlgmr.msra.gmra.mrb[160].mxu0 %vm3792_vm2, %v4326_v8  ;;  %v9745_v8 = vld [vmem:[%s13154_s4 + $0x2c0] ss:$8 sps:$4 sm:$0xff]  }
 0x468   : > { %4551 = vmatpush1.bf16.msra.mxu0 %v9676_v59  ;;  %6055 = vmatpush1.bf16.msra.mxu1 %v6037_v33  ;;  %v8384_v59 = vld [vmem:[%s13154_s4 + $0x2d0] sm:$0x33]  ;;  %v9748_v33 = vld [vmem:[%s13154_s4 + $0x7f8] ss:$8 sps:$4 sm:$0xff]  }
 0x469   : > { %4552 = vmatprep.subr.bf16.mxu0 %v9683_v47  ;;  %6341 = vmatprep.subr.bf16.mxu1 %v9686_v15  ;;  %v8398_v47 = vcombine.high %v8384_v59, %v8384_v59  ;;  %v9754_v15 = vld [vmem:[%s13154_s4 + $0x80c] ss:$8 sps:$4 sm:$0xff]  }
 0x46a   : > { %4582 = vmatprep.mubr.bf16.mxu0 %v10014_v16 }
 0x46b   : > { %8661 = vmatmul.mubr.msk.bf16.vlgmr.msra.gmra.mrb[32].mxu1 %vm3792_vm2, %v5967_v30  ;;  %v9752_v30 = vld [vmem:[%s13154_s4 + $0x808] ss:$8 sps:$4 sm:$0xff]  }
 0x46c   : > { %4553 = vmatpush1.bf16.msra.mxu0 %v9681_v27  ;;  %6342 = vmatpush1.bf16.msra.mxu1 %v9684_v37  ;;  %v8397_v27 = vcombine.low %v8384_v59, %v8384_v59  ;;  %v8761_v37 = vld [vmem:[%s13154_s4 + $0x818] sm:$0x33]  ;;  %v9810_v59 = vld [vmem:[%s13154_s4 + $0x968] ss:$8 sps:$4 sm:$0xff]  }
 0x46d   : > { %4554 = vmatprep.subr.bf16.mxu0 %v9689_v39  ;;  %6343 = vmatprep.subr.bf16.mxu1 %v9692_v9  ;;  %v9758_v9 = vld [vmem:[%s13154_s4 + $0x344] ss:$8 sps:$4 sm:$0xff]  }
 0x46e   : > { %6373 = vmatprep.mubr.bf16.mxu1 %v10014_v16  ;;  %v4694_v39 = vsel %vm3796_vm1, %v8397_v27, 0  ;;  %v9813_v27 = vld [vmem:[%s13154_s4 + $0x440] ss:$8 sps:$4 sm:$0xff]  }
 0x470   : > { %4555 = vmatpush1.bf16.msra.mxu0 %v9687_v26  ;;  %6344 = vmatpush1.bf16.msra.mxu1 %v9690_v25  ;;  %v8775_v26 = vcombine.high %v8761_v37, %v8761_v37  ;;  %v8774_v25 = vcombine.low %v8761_v37, %v8761_v37  ;;  %v9816_v37 = vld [vmem:[%s13154_s4 + $0x978] ss:$8 sps:$4 sm:$0xff]  }
 0x471   : > { %4556 = vmatprep.subr.bf16.mxu0 %v9695_v14  ;;  %6345 = vmatprep.subr.bf16.mxu1 %v9698_v18  ;;  %v9756_v14 = vld [vmem:[%s13154_s4 + $0x340] ss:$8 sps:$4 sm:$0xff]   ;;  %v4624_v18 = vrot.slane %v11996_v23, 3  ;;  %v9761_v23 = vld [vmem:[%s13154_s4 + $0x350] ss:$8 sps:$4 sm:$0xff]  }
 0x474   : > { %4557 = vmatpush1.bf16.msra.mxu0 %v9693_v62  ;;  %6346 = vmatpush1.bf16.msra.mxu1 %v9696_v43  ;;  %v6635_v62 = vsel %vm3796_vm1, %v8774_v25, 0  ;;  %v9763_v43 = vld [vmem:[%s13154_s4 + $0x354] ss:$8 sps:$4 sm:$0xff]   ;;  %v9822_v25 = vld [vmem:[%s13154_s4 + $0x988] ss:$8 sps:$4 sm:$0xff]  }
 0x475   : > { %4558 = vmatprep.subr.bf16.mxu0 %v9701_v6  ;;  %6347 = vmatprep.subr.bf16.mxu1 %v9704_v0  ;;  %v9766_v6 = vld [vmem:[%s13154_s4 + $0x88c] ss:$8 sps:$4 sm:$0xff]   ;;  %v9764_v0 = vld [vmem:[%s13154_s4 + $0x888] ss:$8 sps:$4 sm:$0xff]  }
 0x478   : > { %4559 = vmatpush1.bf16.msra.mxu0 %v9699_v44  ;;  %6348 = vmatpush1.bf16.msra.mxu1 %v9702_v36  ;;  %v6565_v44 = vrot.slane %v12470_v7, 1  ;;  %v9769_v36 = vld [vmem:[%s13154_s4 + $0x364] ss:$8 sps:$4 sm:$0xff]  }
 0x479   : > { %4560 = vmatprep.subr.bf16.mxu0 %v9707_v32  ;;  %6349 = vmatprep.subr.bf16.mxu1 %v9710_v21  ;;  %v9772_v32 = vld [vmem:[%s13154_s4 + $0x89c] ss:$8 sps:$4 sm:$0xff]   ;;  %v9767_v21 = vld [vmem:[%s13154_s4 + $0x360] ss:$8 sps:$4 sm:$0xff]  }
 0x47c   : > { %4561 = vmatpush1.bf16.msra.mxu0 %v9705_v41  ;;  %6350 = vmatpush1.bf16.msra.mxu1 %v9708_v17  ;;  %v9775_v41 = vld [vmem:[%s13154_s4 + $0x374] ss:$8 sps:$4 sm:$0xff]  }
 0x47d   : > { %8370 = vmatprep.subr.msk.bf16.mxu0 %vm3796_vm1, %v8369_v19  ;;  %6351 = vmatprep.subr.bf16.mxu1 %v9714_v31  ;;  %v9778_v17 = vld [vmem:[%s13154_s4 + $0x8ac] ss:$8 sps:$4 sm:$0xff]   ;;  %v9773_v19 = vld [vmem:[%s13154_s4 + $0x370] ss:$8 sps:$4 sm:$0xff]  }
 0x47e   : > { %v9776_v31 = vld [vmem:[%s13154_s4 + $0x8a8] ss:$8 sps:$4 sm:$0xff]  }
 0x480   : > { %4563 = vmatpush1.bf16.msra.mxu0 %v4545_v55  ;;  %6352 = vmatpush1.bf16.msra.mxu1 %v9712_v46  ;;  %v9779_v46 = vld [vmem:[%s13154_s4 + $0x380] ss:$8 sps:$4 sm:$0xff]  }
 0x481   : > { %4699 = vmatprep.subr.bf16.mxu0 %v9718_v49  ;;  %8718 = vmatprep.subr.msk.bf16.mxu1 %vm3796_vm1, %v8717_v38  ;;  %v9782_v55 = vld [vmem:[%s13154_s4 + $0x8b8] ss:$8 sps:$4 sm:$0xff]   ;;  %v9787_v49 = vld [vmem:[%s13154_s4 + $0x394] ss:$8 sps:$4 sm:$0xff]  }
 0x482   : > { %v9790_v38 = vld [vmem:[%s13154_s4 + $0x8cc] ss:$8 sps:$4 sm:$0xff]  }
 0x483   : > { %8371 = vmatmul.mubr.msk.bf16.vlgmr.msra.gmra.mrb[164].mxu0 %vm3792_vm2, %v4475_v29  ;;  %v9788_v29 = vld [vmem:[%s13154_s4 + $0x8c8] ss:$8 sps:$4 sm:$0xff]  }
 0x484   : > { %4700 = vmatpush1.bf16.msra.mxu0 %v9716_v45  ;;  %6354 = vmatpush1.bf16.msra.mxu1 %v6336_v1  ;;  %v9785_v45 = vld [vmem:[%s13154_s4 + $0x390] ss:$8 sps:$4 sm:$0xff]   ;;  %v8456_v1 = vcombine.high %v8442_v22, %v8442_v22 }
 0x485   : > { %4701 = vmatprep.subr.bf16.mxu0 %v9723_v53  ;;  %6640 = vmatprep.subr.bf16.mxu1 %v9726_v60  ;;  %v9794_v53 = vld [vmem:[%s13154_s4 + $0x8dc] ss:$8 sps:$4 sm:$0xff]   ;;  %v8455_v60 = vcombine.low %v8442_v22, %v8442_v22 }
 0x486   : > { %4731 = vmatprep.mubr.bf16.mxu0 %v10014_v16 }
 0x487   : > { %8719 = vmatmul.mubr.msk.bf16.vlgmr.msra.gmra.mrb[36].mxu1 %vm3792_vm2, %v12470_v7 }
 0x488   : > { %4702 = vmatpush1.bf16.msra.mxu0 %v9721_v51  ;;  %6641 = vmatpush1.bf16.msra.mxu1 %v9724_v13  ;;  %v8819_v51 = vld [vmem:[%s13154_s4 + $0x8e8] sm:$0x33]  ;;  %v9792_v13 = vld [vmem:[%s13154_s4 + $0x8d8] ss:$8 sps:$4 sm:$0xff]  }
 0x489   : > { %4703 = vmatprep.subr.bf16.mxu0 %v9729_v40  ;;  %6642 = vmatprep.subr.bf16.mxu1 %v9732_v35  ;;  %v4992_v40 = vsel %vm3796_vm1, %v8455_v60, 0  ;;  %v9798_v35 = vld [vmem:[%s13154_s4 + $0x414] ss:$8 sps:$4 sm:$0xff]  }
 0x48a   : > { %6672 = vmatprep.mubr.bf16.mxu1 %v10014_v16 }
 0x48c   : > { %4704 = vmatpush1.bf16.msra.mxu0 %v9727_v52  ;;  %6643 = vmatpush1.bf16.msra.mxu1 %v9730_v3  ;;  %v8833_v52 = vcombine.high %v8819_v51, %v8819_v51  ;;  %v8832_v3 = vcombine.low %v8819_v51, %v8819_v51 }
 0x48d   : > { %4705 = vmatprep.subr.bf16.mxu0 %v9735_v12  ;;  %6644 = vmatprep.subr.bf16.mxu1 %v9738_v63  ;;  %v9796_v12 = vld [vmem:[%s13154_s4 + $0x410] ss:$8 sps:$4 sm:$0xff]  }
 0x48e   : > { %v6933_v63 = vsel %vm3796_vm1, %v8832_v3, 0  ;;  %v9841_v3 = vld [vmem:[%s13154_s4 + $0x4f0] ss:$8 sps:$4 sm:$0xff]  }
 0x490   : > { %4706 = vmatpush1.bf16.msra.mxu0 %v9733_v20  ;;  %6645 = vmatpush1.bf16.msra.mxu1 %v9736_v42  ;;  %v9803_v20 = vld [vmem:[%s13154_s4 + $0x424] ss:$8 sps:$4 sm:$0xff]  }
 0x491   : > { %4707 = vmatprep.subr.bf16.mxu0 %v9741_v48  ;;  %6646 = vmatprep.subr.bf16.mxu1 %v9744_v61  ;;  %v9806_v42 = vld [vmem:[%s13154_s4 + $0x95c] ss:$8 sps:$4 sm:$0xff]   ;;  %v9801_v48 = vld [vmem:[%s13154_s4 + $0x420] ss:$8 sps:$4 sm:$0xff]  }
 0x492   : > { %v9804_v61 = vld [vmem:[%s13154_s4 + $0x958] ss:$8 sps:$4 sm:$0xff]  }
 0x494   : > { %4708 = vmatpush1.bf16.msra.mxu0 %v9739_v54  ;;  %6647 = vmatpush1.bf16.msra.mxu1 %v9742_v24  ;;  %v6863_v54 = vrot.slane %v12470_v7, 2  ;;  %v9809_v24 = vld [vmem:[%s13154_s4 + $0x434] ss:$8 sps:$4 sm:$0xff]  }
 0x495   : > { %4709 = vmatprep.subr.bf16.mxu0 %v9747_v34  ;;  %6648 = vmatprep.subr.bf16.mxu1 %v9750_v5  ;;  %v9812_v34 = vld [vmem:[%s13154_s4 + $0x96c] ss:$8 sps:$4 sm:$0xff]   ;;  %v9807_v5 = vld [vmem:[%s13154_s4 + $0x430] ss:$8 sps:$4 sm:$0xff]  }
 0x498   : > { %4710 = vmatpush1.bf16.msra.mxu0 %v9745_v8  ;;  %6649 = vmatpush1.bf16.msra.mxu1 %v9748_v33  ;;  %v9815_v8 = vld [vmem:[%s13154_s4 + $0x444] ss:$8 sps:$4 sm:$0xff]  }
 0x499   : > { %8399 = vmatprep.subr.msk.bf16.mxu0 %vm3796_vm1, %v8398_v47  ;;  %6650 = vmatprep.subr.bf16.mxu1 %v9754_v15  ;;  %v9818_v33 = vld [vmem:[%s13154_s4 + $0x97c] ss:$8 sps:$4 sm:$0xff]   ;;  %v10015_v47 = vmov 1966171168  }
 0x49a   : > { %v3848_v15 = vunpack.c.l.s4 %v10015_v47  ;;  %v3712_v47 = vld [vmem:[%s13155_s5] sm:$0x3] }
 0x49c   : > { %4712 = vmatpush1.bf16.msra.mxu0 %v4694_v39  ;;  %6651 = vmatpush1.bf16.msra.mxu1 %v9752_v30  ;;  %v9821_v30 = vld [vmem:[%s13154_s4 + $0x454] ss:$8 sps:$4 sm:$0xff]  }
 0x49d   : > { %4997 = vmatprep.subr.bf16.mxu0 %v9758_v9  ;;  %8776 = vmatprep.subr.msk.bf16.mxu1 %vm3796_vm1, %v8775_v26  ;;  %v9824_v39 = vld [vmem:[%s13154_s4 + $0x98c] ss:$8 sps:$4 sm:$0xff]   ;;  %v3849_v9 = vunpack.c.0.s8 %v3848_v15  ;;  %v9819_v26 = vld [vmem:[%s13154_s4 + $0x450] ss:$8 sps:$4 sm:$0xff]  }
 0x49f   : > { %8400 = vmatmul.mubr.msk.bf16.vlgmr.msra.gmra.mrb[168].mxu0 %vm3792_vm2, %v4624_v18  ;;  %v9830_v18 = vld [vmem:[%s13154_s4 + $0x99c] ss:$8 sps:$4 sm:$0xff]  }
 0x4a0   : > { %4998 = vmatpush1.bf16.msra.mxu0 %v9756_v14  ;;  %6653 = vmatpush1.bf16.msra.mxu1 %v6635_v62  ;;  %v9827_v14 = vld [vmem:[%s13154_s4 + $0x464] ss:$8 sps:$4 sm:$0xff]   ;;  %v12695_v62 = vsub.s32 %v3849_v9, %v11982_v4 }
 0x4a1   : > { %4999 = vmatprep.subr.bf16.mxu0 %v9763_v43  ;;  %6938 = vmatprep.subr.bf16.mxu1 %v9766_v6  ;;  %v8500_v6 = vld [vmem:[%s13154_s4 + $0x470] sm:$0x33] }
 0x4a2   : > { %5029 = vmatprep.mubr.bf16.mxu0 %v10014_v16 }
 0x4a3   : > { %8777 = vmatmul.mubr.msk.bf16.vlgmr.msra.gmra.mrb[40].mxu1 %vm3792_vm2, %v6565_v44 }
 0x4a4   : > { %5000 = vmatpush1.bf16.msra.mxu0 %v9761_v23  ;;  %6939 = vmatpush1.bf16.msra.mxu1 %v9764_v0 }
 0x4a5   : > { %5001 = vmatprep.subr.bf16.mxu0 %v9769_v36  ;;  %6940 = vmatprep.subr.bf16.mxu1 %v9772_v32  ;;  %v9825_v36 = vld [vmem:[%s13154_s4 + $0x460] ss:$8 sps:$4 sm:$0xff]  }
 0x4a6   : > { %6970 = vmatprep.mubr.bf16.mxu1 %v10014_v16  ;;  %v9828_v32 = vld [vmem:[%s13154_s4 + $0x998] ss:$8 sps:$4 sm:$0xff]  }
 0x4a8   : > { %5002 = vmatpush1.bf16.msra.mxu0 %v9767_v21  ;;  %6941 = vmatpush1.bf16.msra.mxu1 %v9770_v11  ;;  %v8514_v11 = vcombine.high %v8500_v6, %v8500_v6 }
 0x4a9   : > { %5003 = vmatprep.subr.bf16.mxu0 %v9775_v41  ;;  %6942 = vmatprep.subr.bf16.mxu1 %v9778_v17  ;;  %v9834_v41 = vld [vmem:[%s13154_s4 + $0x9ac] ss:$8 sps:$4 sm:$0xff]   ;;  %v8513_v17 = vcombine.low %v8500_v6, %v8500_v6 }
 0x4ac   : > { %5004 = vmatpush1.bf16.msra.mxu0 %v9773_v19  ;;  %6943 = vmatpush1.bf16.msra.mxu1 %v9776_v31 }
 0x4ad   : > { %5005 = vmatprep.subr.bf16.mxu0 %v9781_v28  ;;  %6944 = vmatprep.subr.bf16.mxu1 %v9784_v57  ;;  %v8877_v28 = vld [vmem:[%s13154_s4 + $0x9b8] sm:$0x33] }
 0x4b0   : > { %5006 = vmatpush1.bf16.msra.mxu0 %v9779_v46  ;;  %6945 = vmatpush1.bf16.msra.mxu1 %v9782_v55 }
 0x4b1   : > { %5007 = vmatprep.subr.bf16.mxu0 %v9787_v49  ;;  %6946 = vmatprep.subr.bf16.mxu1 %v9790_v38  ;;  %v9832_v38 = vld [vmem:[%s13154_s4 + $0x9a8] ss:$8 sps:$4 sm:$0xff]  }
 0x4b4   : > { %5008 = vmatpush1.bf16.msra.mxu0 %v9785_v45  ;;  %6947 = vmatpush1.bf16.msra.mxu1 %v9788_v29  ;;  %v5292_v45 = vsel %vm3796_vm1, %v8513_v17, 0  ;;  %v9838_v29 = vld [vmem:[%s13154_s4 + $0x4e4] ss:$8 sps:$4 sm:$0xff]   ;;  %v9866_v17 = vld [vmem:[%s13154_s4 + $0x5d4] ss:$8 sps:$4 sm:$0xff]  }
 0x4b5   : > { %8457 = vmatprep.subr.msk.bf16.mxu0 %vm3796_vm1, %v8456_v1  ;;  %6948 = vmatprep.subr.bf16.mxu1 %v9794_v53  ;;  %v8891_v1 = vcombine.high %v8877_v28, %v8877_v28  ;;  %v8890_v53 = vcombine.low %v8877_v28, %v8877_v28  ;;  %v9867_v28 = vld [vmem:[%s13154_s4 + $0x5e0] ss:$8 sps:$4 sm:$0xff]  }
 0x4b8   : > { %5010 = vmatpush1.bf16.msra.mxu0 %v4992_v40  ;;  %6949 = vmatpush1.bf16.msra.mxu1 %v9792_v13  ;;  %v9836_v13 = vld [vmem:[%s13154_s4 + $0x4e0] ss:$8 sps:$4 sm:$0xff]   ;;  %v5222_v40 = vrot.slane %v12092_v50, 1 }
 0x4b9   : > { %5297 = vmatprep.subr.bf16.mxu0 %v9798_v35  ;;  %8834 = vmatprep.subr.msk.bf16.mxu1 %vm3796_vm1, %v8833_v52  ;;  %v7231_v35 = vsel %vm3796_vm1, %v8890_v53, 0  ;;  %v9843_v52 = vld [vmem:[%s13154_s4 + $0x4f4] ss:$8 sps:$4 sm:$0xff]  }
 0x4bb   : > { %8458 = vmatmul.mubr.msk.bf16.vlgmr.msra.gmra.mrb[172].mxu0 %vm3792_vm2, %v12092_v50 }
 0x4bc   : > { %5298 = vmatpush1.bf16.msra.mxu0 %v9796_v12  ;;  %6951 = vmatpush1.bf16.msra.mxu1 %v6933_v63  ;;  %v7161_v12 = vrot.slane %v12470_v7, 3  ;;  %v9846_v63 = vld [vmem:[%s13154_s4 + $0x504] ss:$8 sps:$4 sm:$0xff]   ;;  %v9847_v7 = vld [vmem:[%s13154_s4 + $0x510] ss:$8 sps:$4 sm:$0xff]  }
 0x4bd   : > { %5299 = vmatprep.subr.bf16.mxu0 %v9803_v20  ;;  %7236 = vmatprep.subr.bf16.mxu1 %v9806_v42  ;;  %v9844_v20 = vld [vmem:[%s13154_s4 + $0x500] ss:$8 sps:$4 sm:$0xff]   ;;  %v9849_v42 = vld [vmem:[%s13154_s4 + $0x514] ss:$8 sps:$4 sm:$0xff]  }
 0x4be   : > { %5329 = vmatprep.mubr.bf16.mxu0 %v10014_v16 }
 0x4bf   : > { %8835 = vmatmul.mubr.msk.bf16.vlgmr.msra.gmra.mrb[44].mxu1 %vm3792_vm2, %v6863_v54  ;;  %v9855_v54 = vld [vmem:[%s13154_s4 + $0x534] ss:$8 sps:$4 sm:$0xff]  }
 0x4c0   : > { %5300 = vmatpush1.bf16.msra.mxu0 %v9801_v48  ;;  %7237 = vmatpush1.bf16.msra.mxu1 %v9804_v61  ;;  %v9852_v48 = vld [vmem:[%s13154_s4 + $0x524] ss:$8 sps:$4 sm:$0xff]   ;;  %v9850_v61 = vld [vmem:[%s13154_s4 + $0x520] ss:$8 sps:$4 sm:$0xff]  }
 0x4c1   : > { %5301 = vmatprep.subr.bf16.mxu0 %v9809_v24  ;;  %7238 = vmatprep.subr.bf16.mxu1 %v9812_v34  ;;  %v8558_v34 = vld [vmem:[%s13154_s4 + $0x540] sm:$0x33] }
 0x4c2   : > { %7268 = vmatprep.mubr.bf16.mxu1 %v10014_v16 }
 0x4c4   : > { %5302 = vmatpush1.bf16.msra.mxu0 %v9807_v5  ;;  %7239 = vmatpush1.bf16.msra.mxu1 %v9810_v59 }
 0x4c5   : > { %5303 = vmatprep.subr.bf16.mxu0 %v9815_v8  ;;  %7240 = vmatprep.subr.bf16.mxu1 %v9818_v33  ;;  %v9853_v33 = vld [vmem:[%s13154_s4 + $0x530] ss:$8 sps:$4 sm:$0xff]  }
 0x4c8   : > { %5304 = vmatpush1.bf16.msra.mxu0 %v9813_v27  ;;  %7241 = vmatpush1.bf16.msra.mxu1 %v9816_v37  ;;  %v8572_v27 = vcombine.high %v8558_v34, %v8558_v34  ;;  %v8571_v37 = vcombine.low %v8558_v34, %v8558_v34  ;;  %v9878_v34 = vld [vmem:[%s13154_s4 + $0x680] ss:$8 sps:$4 sm:$0xff]  }
 0x4c9   : > { %5305 = vmatprep.subr.bf16.mxu0 %v9821_v30  ;;  %7242 = vmatprep.subr.bf16.mxu1 %v9824_v39 }
 0x4ca   : > { %v3837_v43 = vpop.f32.mrb[144].mxu0  ;;  %v5590_v6 = vsel %vm3796_vm1, %v8571_v37, 0  ;;  %v9890_v37 = vld [vmem:[%s13154_s4 + $0x6c0] ss:$8 sps:$4 sm:$0xff]  }
 0x4cb   : > { %v3839_v23 = vpop.f32.mrb[145].mxu0 }
 0x4cc   : > { %v3846_v0 = vcombine.low %v3837_v43, %v3839_v23  ;;  %5306 = vmatpush1.bf16.msra.mxu0 %v9819_v26  ;;  %7243 = vmatpush1.bf16.msra.mxu1 %v9822_v25  ;;  %v3841_v44 = vpop.f32.mrb[146].mxu0  ;;  %v9860_v23 = vld [vmem:[%s13154_s4 + $0x5b4] ss:$8 sps:$4 sm:$0xff]  }
 0x4cd   : > { %v3842_v21 = vpop.f32.mrb[147].mxu0  ;;  %5307 = vmatprep.subr.bf16.mxu0 %v9827_v14  ;;  %7244 = vmatprep.subr.bf16.mxu1 %v9830_v18 }
 0x4ce   : > { %v12710_v19 = vrot.slane %v3846_v0, %v12695_v62  ;;  %v4882_v31 = vpop.f32.mrb[16].mxu1  ;;  %v5520_v21 = vrot.slane %v12092_v50, 2 }
 0x4cf   : > { %v4884_v57 = vpop.f32.mrb[17].mxu1 }
 0x4d0   : > { %v3860_v46 = vrot.slane %v12710_v19, %v12695_v62  ;;  %v4891_v55 = vcombine.low %v4882_v31, %v4884_v57  ;;  %5308 = vmatpush1.bf16.msra.mxu0 %v9825_v36  ;;  %7245 = vmatpush1.bf16.msra.mxu1 %v9828_v32  ;;  %v4886_v49 = vpop.f32.mrb[18].mxu1  ;;  %v9858_v32 = vld [vmem:[%s13154_s4 + $0x5b0] ss:$8 sps:$4 sm:$0xff]   ;;  %v9869_v31 = vld [vmem:[%s13154_s4 + $0x5e4] ss:$8 sps:$4 sm:$0xff]  }
 0x4d1   : > { %v4887_v22 = vpop.f32.mrb[19].mxu1  ;;  %8515 = vmatprep.subr.msk.bf16.mxu0 %vm3796_vm1, %v8514_v11  ;;  %7246 = vmatprep.subr.bf16.mxu1 %v9834_v41  ;;  %v9863_v11 = vld [vmem:[%s13154_s4 + $0x5c4] ss:$8 sps:$4 sm:$0xff]   ;;  %v9861_v41 = vld [vmem:[%s13154_s4 + $0x5c0] ss:$8 sps:$4 sm:$0xff]  }
 0x4d2   : > { %v12726_v60 = vrot.slane %v4891_v55, %v12695_v62  ;;  %v3862_v26 = vadd.f32 %v3860_v46, %v3712_v47  ;;  %v9864_v19 = vld [vmem:[%s13154_s4 + $0x5d0] ss:$8 sps:$4 sm:$0xff]   ;;  %v9872_v57 = vld [vmem:[%s13154_s4 + $0x5f4] ss:$8 sps:$4 sm:$0xff]   ;;  %v9875_v55 = vld [vmem:[%s13154_s4 + $0x604] ss:$8 sps:$4 sm:$0xff]  }
 0x4d3   : > { %v9870_v46 = vld [vmem:[%s13154_s4 + $0x5f0] ss:$8 sps:$4 sm:$0xff]   ;;  %v9889_v47 = vld [vmem:[%s13154_s4 + $0x6b4] ss:$8 sps:$4 sm:$0xff]  }
 0x4d4   : > { %v4905_v51 = vrot.slane %v12726_v60, %v12695_v62  ;;  %5310 = vmatpush1.bf16.msra.mxu0 %v5292_v45  ;;  %7247 = vmatpush1.bf16.msra.mxu1 %v9832_v38  ;;  %v8616_v38 = vld [vmem:[%s13154_s4 + $0x610] sm:$0x33]  ;;  %v9966_v60 = vld [vmem:[%s13154_s4 + $0x9e4] ss:$8 sps:$4 sm:$0xff]  }
 0x4d5   : > { %5595 = vmatprep.subr.bf16.mxu0 %v9838_v29  ;;  %8892 = vmatprep.subr.msk.bf16.mxu1 %vm3796_vm1, %v8891_v1  ;;  %v9873_v1 = vld [vmem:[%s13154_s4 + $0x600] ss:$8 sps:$4 sm:$0xff]  }
 0x4d7   : > { %8516 = vmatmul.mubr.msk.bf16.vlgmr.msra.gmra.mrb[176].mxu0 %vm3792_vm2, %v5222_v40  ;;  %v8629_v40 = vcombine.low %v8616_v38, %v8616_v38 }
 0x4d8   : > { %5596 = vmatpush1.bf16.msra.mxu0 %v9836_v13  ;;  %7249 = vmatpush1.bf16.msra.mxu1 %v7231_v35  ;;  %v8630_v13 = vcombine.high %v8616_v38, %v8616_v38  ;;  %v9903_v38 = vld [vmem:[%s13154_s4 + $0x764] ss:$8 sps:$4 sm:$0xff]  }
 0x4d9   : > { %5597 = vmatprep.subr.bf16.mxu0 %v9843_v52  ;;  %5627 = vmatprep.mubr.bf16.mxu0 %v10014_v16 }
 0x4db   : > { %8893 = vmatmul.mubr.msk.bf16.vlgmr.msra.gmra.mrb[48].mxu1 %vm3792_vm2, %v7161_v12 }
 0x4dc   : > { %5598 = vmatpush1.bf16.msra.mxu0 %v9841_v3 }
 0x4dd   : > { %5599 = vmatprep.subr.bf16.mxu0 %v9846_v63 }
 0x4e0   : > { %5600 = vmatpush1.bf16.msra.mxu0 %v9844_v20 }
 0x4e1   : > { %5601 = vmatprep.subr.bf16.mxu0 %v9849_v42 }
 0x4e4   : > { %5602 = vmatpush1.bf16.msra.mxu0 %v9847_v7  ;;  %v5888_v7 = vsel %vm3796_vm1, %v8629_v40, 0  ;;  %v9910_v40 = vld [vmem:[%s13154_s4 + $0x790] ss:$8 sps:$4 sm:$0xff]  }
 0x4e5   : > { %5603 = vmatprep.subr.bf16.mxu0 %v9852_v48  ;;  %v9880_v48 = vld [vmem:[%s13154_s4 + $0x684] ss:$8 sps:$4 sm:$0xff]  }
 0x4e6   : > { %v3987_v24 = vpop.f32.mrb[148].mxu0 }
 0x4e7   : > { %v3989_v5 = vpop.f32.mrb[149].mxu0 }
 0x4e8   : > { %v3996_v59 = vcombine.low %v3987_v24, %v3989_v5  ;;  %v3991_v8 = vpop.f32.mrb[150].mxu0  ;;  %5604 = vmatpush1.bf16.msra.mxu0 %v9850_v61  ;;  %v5818_v5 = vrot.slane %v12092_v50, 3  ;;  %v9884_v50 = vld [vmem:[%s13154_s4 + $0x6a0] ss:$8 sps:$4 sm:$0xff]  }
 0x4e9   : > { %v3992_v15 = vpop.f32.mrb[151].mxu0  ;;  %5605 = vmatprep.subr.bf16.mxu0 %v9855_v54  ;;  %v9881_v8 = vld [vmem:[%s13154_s4 + $0x690] ss:$8 sps:$4 sm:$0xff]  }
 0x4ea   : > { %v4003_v30 = vrot.slane %v3996_v59, %v12695_v62  ;;  %v5181_v39 = vpop.f32.mrb[20].mxu1  ;;  %v9883_v59 = vld [vmem:[%s13154_s4 + $0x694] ss:$8 sps:$4 sm:$0xff]   ;;  %v9887_v15 = vld [vmem:[%s13154_s4 + $0x6b0] ss:$8 sps:$4 sm:$0xff]  }
 0x4eb   : > { %v5183_v9 = vpop.f32.mrb[21].mxu1 }
 0x4ec   : > { %v4010_v25 = vrot.slane %v4003_v30, %v12695_v62  ;;  %v5190_v14 = vcombine.low %v5181_v39, %v5183_v9  ;;  %v5185_v18 = vpop.f32.mrb[22].mxu1  ;;  %5606 = vmatpush1.bf16.msra.mxu0 %v9853_v33  ;;  %v9886_v33 = vld [vmem:[%s13154_s4 + $0x6a4] ss:$8 sps:$4 sm:$0xff]   ;;  %v9895_v30 = vld [vmem:[%s13154_s4 + $0x6d4] ss:$8 sps:$4 sm:$0xff]  }
 0x4ed   : > { %v5186_v43 = vpop.f32.mrb[23].mxu1  ;;  %8573 = vmatprep.subr.msk.bf16.mxu0 %vm3796_vm1, %v8572_v27  ;;  %v9892_v27 = vld [vmem:[%s13154_s4 + $0x6c4] ss:$8 sps:$4 sm:$0xff]   ;;  %v9893_v18 = vld [vmem:[%s13154_s4 + $0x6d0] ss:$8 sps:$4 sm:$0xff]  }
 0x4ee   : > { %v4012_v0 = vadd.f32 %v4010_v25, %v3862_v26  ;;  %v12784_v44 = vrot.slane %v5190_v14, %v12695_v62  ;;  %v8674_v9 = vld [vmem:[%s13154_s4 + $0x6e0] sm:$0x33] }
 0x4f0   : > { %v5204_v36 = vrot.slane %v12784_v44, %v12695_v62  ;;  %5608 = vmatpush1.bf16.msra.mxu0 %v5590_v6  ;;  %v8688_v6 = vcombine.high %v8674_v9, %v8674_v9 }
 0x4f1   : > { %5893 = vmatprep.subr.bf16.mxu0 %v9860_v23  ;;  %v8687_v23 = vcombine.low %v8674_v9, %v8674_v9  ;;  %v9918_v9 = vld [vmem:[%s13154_s4 + $0x820] ss:$8 sps:$4 sm:$0xff]  }
 0x4f3   : > { %8574 = vmatmul.mubr.msk.bf16.vlgmr.msra.gmra.mrb[180].mxu0 %vm3792_vm2, %v5520_v21 }
 0x4f4   : > { %5894 = vmatpush1.bf16.msra.mxu0 %v9858_v32  ;;  %5925 = vmatprep.mubr.bf16.mxu0 %v10014_v16 }
 0x4f5   : > { %5895 = vmatprep.subr.bf16.mxu0 %v9863_v11 }
 0x4f8   : > { %5896 = vmatpush1.bf16.msra.mxu0 %v9861_v41 }
 0x4f9   : > { %5897 = vmatprep.subr.bf16.mxu0 %v9866_v17 }
 0x4fc   : > { %5898 = vmatpush1.bf16.msra.mxu0 %v9864_v19 }
 0x4fd   : > { %5899 = vmatprep.subr.bf16.mxu0 %v9869_v31  ;;  %v6186_v31 = vsel %vm3796_vm1, %v8687_v23, 0  ;;  %v9927_v23 = vld [vmem:[%s13154_s4 + $0x850] ss:$8 sps:$4 sm:$0xff]  }
 0x500   : > { %5900 = vmatpush1.bf16.msra.mxu0 %v9867_v28  ;;  %v9900_v28 = vld [vmem:[%s13154_s4 + $0x754] ss:$8 sps:$4 sm:$0xff]  }
 0x501   : > { %5901 = vmatprep.subr.bf16.mxu0 %v9872_v57 }
 0x502   : > { %v4137_v49 = vpop.f32.mrb[152].mxu0 }
 0x503   : > { %v4139_v22 = vpop.f32.mrb[153].mxu0 }
 0x504   : > { %v4146_v45 = vcombine.low %v4137_v49, %v4139_v22  ;;  %v4141_v29 = vpop.f32.mrb[154].mxu0  ;;  %5902 = vmatpush1.bf16.msra.mxu0 %v9870_v46  ;;  %v9898_v49 = vld [vmem:[%s13154_s4 + $0x750] ss:$8 sps:$4 sm:$0xff]   ;;  %v9901_v22 = vld [vmem:[%s13154_s4 + $0x760] ss:$8 sps:$4 sm:$0xff]  }
 0x505   : > { %v4142_v53 = vpop.f32.mrb[155].mxu0  ;;  %5903 = vmatprep.subr.bf16.mxu0 %v9875_v55  ;;  %v9904_v29 = vld [vmem:[%s13154_s4 + $0x770] ss:$8 sps:$4 sm:$0xff]  }
 0x506   : > { %v4153_v35 = vrot.slane %v4146_v45, %v12695_v62  ;;  %v5480_v52 = vpop.f32.mrb[24].mxu1  ;;  %v9906_v45 = vld [vmem:[%s13154_s4 + $0x774] ss:$8 sps:$4 sm:$0xff]   ;;  %v9907_v53 = vld [vmem:[%s13154_s4 + $0x780] ss:$8 sps:$4 sm:$0xff]  }
 0x507   : > { %v5482_v3 = vpop.f32.mrb[25].mxu1 }
 0x508   : > { %v4160_v12 = vrot.slane %v4153_v35, %v12695_v62  ;;  %v5489_v63 = vcombine.low %v5480_v52, %v5482_v3  ;;  %v5484_v20 = vpop.f32.mrb[26].mxu1  ;;  %5904 = vmatpush1.bf16.msra.mxu0 %v9873_v1  ;;  %v9909_v1 = vld [vmem:[%s13154_s4 + $0x784] ss:$8 sps:$4 sm:$0xff]   ;;  %v8732_v3 = vld [vmem:[%s13154_s4 + $0x7b0] sm:$0x33] }
 0x509   : > { %v5485_v42 = vpop.f32.mrb[27].mxu1  ;;  %8631 = vmatprep.subr.msk.bf16.mxu0 %vm3796_vm1, %v8630_v13  ;;  %v9912_v13 = vld [vmem:[%s13154_s4 + $0x794] ss:$8 sps:$4 sm:$0xff]   ;;  %v9915_v35 = vld [vmem:[%s13154_s4 + $0x7a4] ss:$8 sps:$4 sm:$0xff]  }
 0x50a   : > { %v4162_v61 = vadd.f32 %v4160_v12, %v4012_v0  ;;  %v12835_v54 = vrot.slane %v5489_v63, %v12695_v62  ;;  %v9913_v42 = vld [vmem:[%s13154_s4 + $0x7a0] ss:$8 sps:$4 sm:$0xff]  }
 0x50c   : > { %v5503_v24 = vrot.slane %v12835_v54, %v12695_v62  ;;  %5906 = vmatpush1.bf16.msra.mxu0 %v5888_v7 }
 0x50d   : > { %6191 = vmatprep.subr.bf16.mxu0 %v9880_v48  ;;  %v8746_v48 = vcombine.high %v8732_v3, %v8732_v3 }
 0x50f   : > { %8632 = vmatmul.mubr.msk.bf16.vlgmr.msra.gmra.mrb[184].mxu0 %vm3792_vm2, %v5818_v5 }
 0x510   : > { %6192 = vmatpush1.bf16.msra.mxu0 %v9878_v34  ;;  %6223 = vmatprep.mubr.bf16.mxu0 %v10014_v16 }
 0x511   : > { %6193 = vmatprep.subr.bf16.mxu0 %v9883_v59 }
 0x514   : > { %6194 = vmatpush1.bf16.msra.mxu0 %v9881_v8 }
 0x515   : > { %6195 = vmatprep.subr.bf16.mxu0 %v9886_v33 }
 0x518   : > { %6196 = vmatpush1.bf16.msra.mxu0 %v9884_v50 }
 0x519   : > { %6197 = vmatprep.subr.bf16.mxu0 %v9889_v47 }
 0x51c   : > { %6198 = vmatpush1.bf16.msra.mxu0 %v9887_v15 }
 0x51d   : > { %6199 = vmatprep.subr.bf16.mxu0 %v9892_v27  ;;  %v9920_v27 = vld [vmem:[%s13154_s4 + $0x824] ss:$8 sps:$4 sm:$0xff]  }
 0x51e   : > { %v4286_v39 = vpop.f32.mrb[156].mxu0 }
 0x51f   : > { %v4288_v26 = vpop.f32.mrb[157].mxu0 }
 0x520   : > { %v4295_v25 = vcombine.low %v4286_v39, %v4288_v26  ;;  %v4290_v14 = vpop.f32.mrb[158].mxu0  ;;  %6200 = vmatpush1.bf16.msra.mxu0 %v9890_v37  ;;  %v6416_v26 = vrot.slane %v12451_v58, 1 }
 0x521   : > { %v4291_v43 = vpop.f32.mrb[159].mxu0  ;;  %6201 = vmatprep.subr.bf16.mxu0 %v9895_v30  ;;  %v9921_v14 = vld [vmem:[%s13154_s4 + $0x830] ss:$8 sps:$4 sm:$0xff]  }
 0x522   : > { %v4302_v0 = vrot.slane %v4295_v25, %v12695_v62  ;;  %v5778_v32 = vpop.f32.mrb[28].mxu1  ;;  %v9923_v25 = vld [vmem:[%s13154_s4 + $0x834] ss:$8 sps:$4 sm:$0xff]   ;;  %v9924_v43 = vld [vmem:[%s13154_s4 + $0x840] ss:$8 sps:$4 sm:$0xff]  }
 0x523   : > { %v5780_v21 = vpop.f32.mrb[29].mxu1 }
 0x524   : > { %v4309_v11 = vrot.slane %v4302_v0, %v12695_v62  ;;  %v5787_v41 = vcombine.low %v5778_v32, %v5780_v21  ;;  %v5782_v17 = vpop.f32.mrb[30].mxu1  ;;  %6202 = vmatpush1.bf16.msra.mxu0 %v9893_v18  ;;  %v9926_v18 = vld [vmem:[%s13154_s4 + $0x844] ss:$8 sps:$4 sm:$0xff]   ;;  %v9930_v32 = vld [vmem:[%s13154_s4 + $0x860] ss:$8 sps:$4 sm:$0xff]  }
 0x525   : > { %v5783_v19 = vpop.f32.mrb[31].mxu1  ;;  %8689 = vmatprep.subr.msk.bf16.mxu0 %vm3796_vm1, %v8688_v6  ;;  %v9929_v6 = vld [vmem:[%s13154_s4 + $0x854] ss:$8 sps:$4 sm:$0xff]   ;;  %v9932_v0 = vld [vmem:[%s13154_s4 + $0x864] ss:$8 sps:$4 sm:$0xff]  }
 0x526   : > { %v4311_v57 = vadd.f32 %v4309_v11, %v4162_v61  ;;  %v12886_v46 = vrot.slane %v5787_v41, %v12695_v62  ;;  %v8745_v61 = vcombine.low %v8732_v3, %v8732_v3  ;;  %v9935_v21 = vld [vmem:[%s13154_s4 + $0x874] ss:$8 sps:$4 sm:$0xff]   ;;  %v8790_v41 = vld [vmem:[%s13154_s4 + $0x880] sm:$0x33] }
 0x528   : > { %v5801_v55 = vrot.slane %v12886_v46, %v12695_v62  ;;  %6204 = vmatpush1.bf16.msra.mxu0 %v6186_v31  ;;  %v6486_v15 = vsel %vm3796_vm1, %v8745_v61, 0  ;;  %v9946_v61 = vld [vmem:[%s13154_s4 + $0x914] ss:$8 sps:$4 sm:$0xff]  }
 0x529   : > { %6491 = vmatprep.subr.bf16.mxu0 %v9900_v28  ;;  %v9933_v28 = vld [vmem:[%s13154_s4 + $0x870] ss:$8 sps:$4 sm:$0xff]  }
 0x52b   : > { %8690 = vmatmul.mubr.msk.bf16.vlgmr.msra.gmra.mrb[188].mxu0 %vm3792_vm2, %v12451_v58 }
 0x52c   : > { %6492 = vmatpush1.bf16.msra.mxu0 %v9898_v49  ;;  %6523 = vmatprep.mubr.bf16.mxu0 %v10014_v16  ;;  %v8804_v49 = vcombine.high %v8790_v41, %v8790_v41 }
 0x52d   : > { %6493 = vmatprep.subr.bf16.mxu0 %v9903_v38  ;;  %v8803_v38 = vcombine.low %v8790_v41, %v8790_v41 }
 0x530   : > { %6494 = vmatpush1.bf16.msra.mxu0 %v9901_v22 }
 0x531   : > { %6495 = vmatprep.subr.bf16.mxu0 %v9906_v45 }
 0x534   : > { %6496 = vmatpush1.bf16.msra.mxu0 %v9904_v29 }
 0x535   : > { %6497 = vmatprep.subr.bf16.mxu0 %v9909_v1 }
 0x538   : > { %6498 = vmatpush1.bf16.msra.mxu0 %v9907_v53 }
 0x539   : > { %6499 = vmatprep.subr.bf16.mxu0 %v9912_v13 }
 0x53a   : > { %v4435_v52 = vpop.f32.mrb[160].mxu0 }
 0x53b   : > { %v4437_v12 = vpop.f32.mrb[161].mxu0 }
 0x53c   : > { %v4444_v63 = vcombine.low %v4435_v52, %v4437_v12  ;;  %v4439_v20 = vpop.f32.mrb[162].mxu0  ;;  %6500 = vmatpush1.bf16.msra.mxu0 %v9910_v40  ;;  %v9940_v52 = vld [vmem:[%s13154_s4 + $0x8f4] ss:$8 sps:$4 sm:$0xff]  }
 0x53d   : > { %v4440_v7 = vpop.f32.mrb[163].mxu0  ;;  %6501 = vmatprep.subr.bf16.mxu0 %v9915_v35  ;;  %v6784_v35 = vsel %vm3796_vm1, %v8803_v38, 0  ;;  %v9938_v20 = vld [vmem:[%s13154_s4 + $0x8f0] ss:$8 sps:$4 sm:$0xff]   ;;  %v7012_v38 = vrot.slane %v12451_v58, 3 }
 0x53e   : > { %v4451_v34 = vrot.slane %v4444_v63, %v12695_v62  ;;  %v6076_v5 = vpop.f32.mrb[32].mxu1  ;;  %v9943_v7 = vld [vmem:[%s13154_s4 + $0x904] ss:$8 sps:$4 sm:$0xff]  }
 0x53f   : > { %v6078_v59 = vpop.f32.mrb[33].mxu1 }
 0x540   : > { %v4458_v8 = vrot.slane %v4451_v34, %v12695_v62  ;;  %v6085_v33 = vcombine.low %v6076_v5, %v6078_v59  ;;  %v6080_v50 = vpop.f32.mrb[34].mxu1  ;;  %6502 = vmatpush1.bf16.msra.mxu0 %v9913_v42  ;;  %v6714_v42 = vrot.slane %v12451_v58, 2  ;;  %v9944_v34 = vld [vmem:[%s13154_s4 + $0x910] ss:$8 sps:$4 sm:$0xff]   ;;  %v9949_v5 = vld [vmem:[%s13154_s4 + $0x924] ss:$8 sps:$4 sm:$0xff]  }
 0x541   : > { %v6081_v47 = vpop.f32.mrb[35].mxu1  ;;  %8747 = vmatprep.subr.msk.bf16.mxu0 %vm3796_vm1, %v8746_v48  ;;  %v9941_v48 = vld [vmem:[%s13154_s4 + $0x900] ss:$8 sps:$4 sm:$0xff]   ;;  %v9955_v50 = vld [vmem:[%s13154_s4 + $0x944] ss:$8 sps:$4 sm:$0xff]  }
 0x542   : > { %v4460_v37 = vadd.f32 %v4458_v8, %v4311_v57  ;;  %v12937_v30 = vrot.slane %v6085_v33, %v12695_v62  ;;  %v9947_v59 = vld [vmem:[%s13154_s4 + $0x920] ss:$8 sps:$4 sm:$0xff]   ;;  %v9952_v8 = vld [vmem:[%s13154_s4 + $0x934] ss:$8 sps:$4 sm:$0xff]   ;;  %v9950_v33 = vld [vmem:[%s13154_s4 + $0x930] ss:$8 sps:$4 sm:$0xff]  }
 0x543   : > { %v9964_v58 = vld [vmem:[%s13154_s4 + $0x9e0] ss:$8 sps:$4 sm:$0xff]  }
 0x544   : > { %v6099_v39 = vrot.slane %v12937_v30, %v12695_v62  ;;  %6504 = vmatpush1.bf16.msra.mxu0 %v6486_v15  ;;  %v8848_v15 = vld [vmem:[%s13154_s4 + $0x950] sm:$0x33] }
 0x545   : > { %6789 = vmatprep.subr.bf16.mxu0 %v9920_v27 }
 0x547   : > { %8748 = vmatmul.mubr.msk.bf16.vlgmr.msra.gmra.mrb[192].mxu0 %vm3792_vm2, %v6416_v26  ;;  %v9953_v26 = vld [vmem:[%s13154_s4 + $0x940] ss:$8 sps:$4 sm:$0xff]  }
 0x548   : > { %6790 = vmatpush1.bf16.msra.mxu0 %v9918_v9  ;;  %6821 = vmatprep.mubr.bf16.mxu0 %v10014_v16 }
 0x549   : > { %6791 = vmatprep.subr.bf16.mxu0 %v9923_v25 }
 0x54c   : > { %6792 = vmatpush1.bf16.msra.mxu0 %v9921_v14  ;;  %v8862_v14 = vcombine.high %v8848_v15, %v8848_v15 }
 0x54d   : > { %6793 = vmatprep.subr.bf16.mxu0 %v9926_v18  ;;  %v8861_v18 = vcombine.low %v8848_v15, %v8848_v15 }
 0x54f   : > { %v7082_v41 = vsel %vm3796_vm1, %v8861_v18, 0 }
 0x550   : > { %6794 = vmatpush1.bf16.msra.mxu0 %v9924_v43 }
 0x551   : > { %6795 = vmatprep.subr.bf16.mxu0 %v9929_v6 }
 0x554   : > { %6796 = vmatpush1.bf16.msra.mxu0 %v9927_v23 }
 0x555   : > { %6797 = vmatprep.subr.bf16.mxu0 %v9932_v0 }
 0x556   : > { %v4584_v11 = vpop.f32.mrb[164].mxu0 }
 0x557   : > { %v4586_v17 = vpop.f32.mrb[165].mxu0 }
 0x558   : > { %v4593_v19 = vcombine.low %v4584_v11, %v4586_v17  ;;  %v4588_v31 = vpop.f32.mrb[166].mxu0  ;;  %6798 = vmatpush1.bf16.msra.mxu0 %v9930_v32  ;;  %v9960_v17 = vld [vmem:[%s13154_s4 + $0x9c4] ss:$8 sps:$4 sm:$0xff]  }
 0x559   : > { %v4589_v57 = vpop.f32.mrb[167].mxu0  ;;  %6799 = vmatprep.subr.bf16.mxu0 %v9935_v21 }
 0x55a   : > { %v4600_v22 = vrot.slane %v4593_v19, %v12695_v62  ;;  %v6375_v45 = vpop.f32.mrb[36].mxu1  ;;  %v9958_v57 = vld [vmem:[%s13154_s4 + $0x9c0] ss:$8 sps:$4 sm:$0xff]  }
 0x55b   : > { %v6377_v29 = vpop.f32.mrb[37].mxu1 }
 0x55c   : > { %v4607_v1 = vrot.slane %v4600_v22, %v12695_v62  ;;  %v6384_v53 = vcombine.low %v6375_v45, %v6377_v29  ;;  %v6379_v13 = vpop.f32.mrb[38].mxu1  ;;  %6800 = vmatpush1.bf16.msra.mxu0 %v9933_v28  ;;  %v9963_v22 = vld [vmem:[%s13154_s4 + $0x9d4] ss:$8 sps:$4 sm:$0xff]   ;;  %v9961_v45 = vld [vmem:[%s13154_s4 + $0x9d0] ss:$8 sps:$4 sm:$0xff]  }
 0x55d   : > { %v6380_v40 = vpop.f32.mrb[39].mxu1  ;;  %8805 = vmatprep.subr.msk.bf16.mxu0 %vm3796_vm1, %v8804_v49  ;;  %v9972_v29 = vld [vmem:[%s13154_s4 + $0xa04] ss:$8 sps:$4 sm:$0xff]  }
 0x55e   : > { %v4609_v3 = vadd.f32 %v4607_v1, %v4460_v37  ;;  %v12988_v12 = vrot.slane %v6384_v53, %v12695_v62  ;;  %v9970_v1 = vld [vmem:[%s13154_s4 + $0xa00] ss:$8 sps:$4 sm:$0xff]   ;;  %v9975_v53 = vld [vmem:[%s13154_s4 + $0xa14] ss:$8 sps:$4 sm:$0xff]  }
 0x55f   : > { %v8906_v40 = vld [vmem:[%s13154_s4 + $0xa20] sm:$0x33] }
 0x560   : > { %v6398_v63 = vrot.slane %v12988_v12, %v12695_v62  ;;  %6802 = vmatpush1.bf16.msra.mxu0 %v6784_v35 }
 0x561   : > { %7087 = vmatprep.subr.bf16.mxu0 %v9940_v52 }
 0x563   : > { %8806 = vmatmul.mubr.msk.bf16.vlgmr.msra.gmra.mrb[196].mxu0 %vm3792_vm2, %v6714_v42 }
 0x564   : > { %7088 = vmatpush1.bf16.msra.mxu0 %v9938_v20  ;;  %7119 = vmatprep.mubr.bf16.mxu0 %v10014_v16  ;;  %v9973_v20 = vld [vmem:[%s13154_s4 + $0xa10] ss:$8 sps:$4 sm:$0xff]  }
 0x565   : > { %7089 = vmatprep.subr.bf16.mxu0 %v9943_v7  ;;  %v8920_v7 = vcombine.high %v8906_v40, %v8906_v40 }
 0x568   : > { %7090 = vmatpush1.bf16.msra.mxu0 %v9941_v48  ;;  %v8919_v48 = vcombine.low %v8906_v40, %v8906_v40 }
 0x569   : > { %7091 = vmatprep.subr.bf16.mxu0 %v9946_v61 }
 0x56c   : > { %7092 = vmatpush1.bf16.msra.mxu0 %v9944_v34 }
 0x56d   : > { %7093 = vmatprep.subr.bf16.mxu0 %v9949_v5 }
 0x570   : > { %7094 = vmatpush1.bf16.msra.mxu0 %v9947_v59 }
 0x571   : > { %7095 = vmatprep.subr.bf16.mxu0 %v9952_v8 }
 0x572   : > { %v4733_v47 = vpop.f32.mrb[168].mxu0 }
 0x573   : > { %v4735_v27 = vpop.f32.mrb[169].mxu0 }
 0x574   : > { %v4742_v37 = vcombine.low %v4733_v47, %v4735_v27  ;;  %v4737_v9 = vpop.f32.mrb[170].mxu0  ;;  %7096 = vmatpush1.bf16.msra.mxu0 %v9950_v33  ;;  %v7380_v47 = vsel %vm3796_vm1, %v8919_v48, 0 }
 0x575   : > { %v4738_v25 = vpop.f32.mrb[171].mxu0  ;;  %7097 = vmatprep.subr.bf16.mxu0 %v9955_v50 }
 0x576   : > { %v4749_v43 = vrot.slane %v4742_v37, %v12695_v62  ;;  %v6674_v6 = vpop.f32.mrb[40].mxu1 }
 0x577   : > { %v6676_v23 = vpop.f32.mrb[41].mxu1 }
 0x578   : > { %v4756_v0 = vrot.slane %v4749_v43, %v12695_v62  ;;  %v6683_v32 = vcombine.low %v6674_v6, %v6676_v23  ;;  %v6678_v21 = vpop.f32.mrb[42].mxu1  ;;  %7098 = vmatpush1.bf16.msra.mxu0 %v9953_v26  ;;  %v7296_v26 = vpack.c.bf16 %v12031_v2, %v12031_v2 }
 0x579   : > { %v6679_v11 = vpop.f32.mrb[43].mxu1  ;;  %8863 = vmatprep.subr.msk.bf16.mxu0 %vm3796_vm1, %v8862_v14 }
 0x57a   : > { %v4758_v19 = vadd.f32 %v4756_v0, %v4609_v3  ;;  %v13039_v31 = vrot.slane %v6683_v32, %v12695_v62 }
 0x57c   : > { %v6697_v28 = vrot.slane %v13039_v31, %v12695_v62  ;;  %7100 = vmatpush1.bf16.msra.mxu0 %v7082_v41  ;;  %v4907_v49 = vadd.f32 %v4905_v51, %v4758_v19  ;;  %v9969_v51 = vld [vmem:[%s13154_s4 + $0x9f4] ss:$8 sps:$4 sm:$0xff]  }
 0x57d   : > { %7385 = vmatprep.subr.bf16.mxu0 %v9960_v17 }
 0x57f   : > { %8864 = vmatmul.mubr.msk.bf16.vlgmr.msra.gmra.mrb[200].mxu0 %vm3792_vm2, %v7012_v38 }
 0x580   : > { %7386 = vmatpush1.bf16.msra.mxu0 %v9958_v57  ;;  %7417 = vmatprep.mubr.bf16.mxu0 %v10014_v16  ;;  %v9967_v16 = vld [vmem:[%s13154_s4 + $0x9f0] ss:$8 sps:$4 sm:$0xff]  }
 0x581   : > { %7387 = vmatprep.subr.bf16.mxu0 %v9963_v22 }
 0x584   : > { %7388 = vmatpush1.bf16.msra.mxu0 %v9961_v45 }
 0x585   : > { %7389 = vmatprep.subr.bf16.mxu0 %v9966_v60 }
 0x588   : > { %7390 = vmatpush1.bf16.msra.mxu0 %v9964_v58 }
 0x589   : > { %7391 = vmatprep.subr.bf16.mxu0 %v9969_v51 }
 0x58c   : > { %7392 = vmatpush1.bf16.msra.mxu0 %v9967_v16 }
 0x58d   : > { %7393 = vmatprep.subr.bf16.mxu0 %v9972_v29 }
 0x58e   : > { %v5031_v13 = vpop.f32.mrb[172].mxu0 }
 0x58f   : > { %v5033_v35 = vpop.f32.mrb[173].mxu0 }
 0x590   : > { %v5040_v52 = vcombine.low %v5031_v13, %v5033_v35  ;;  %v5035_v3 = vpop.f32.mrb[174].mxu0  ;;  %7394 = vmatpush1.bf16.msra.mxu0 %v9970_v1 }
 0x591   : > { %v5036_v42 = vpop.f32.mrb[175].mxu0  ;;  %7395 = vmatprep.subr.bf16.mxu0 %v9975_v53 }
 0x592   : > { %v5047_v61 = vrot.slane %v5040_v52, %v12695_v62  ;;  %v6972_v34 = vpop.f32.mrb[44].mxu1 }
 0x593   : > { %v6974_v5 = vpop.f32.mrb[45].mxu1 }
 0x594   : > { %v5054_v59 = vrot.slane %v5047_v61, %v12695_v62  ;;  %v6981_v8 = vcombine.low %v6972_v34, %v6974_v5  ;;  %v6976_v33 = vpop.f32.mrb[46].mxu1  ;;  %7396 = vmatpush1.bf16.msra.mxu0 %v9973_v20 }
 0x595   : > { %v6977_v50 = vpop.f32.mrb[47].mxu1  ;;  %8921 = vmatprep.subr.msk.bf16.mxu0 %vm3796_vm1, %v8920_v7 }
 0x596   : > { %v5056_v15 = vadd.f32 %v5054_v59, %v4907_v49  ;;  %v13090_v27 = vrot.slane %v6981_v8, %v12695_v62 }
 0x598   : > { %v6995_v37 = vrot.slane %v13090_v27, %v12695_v62  ;;  %7398 = vmatpush1.bf16.msra.mxu0 %v7380_v47  ;;  %v5206_v9 = vadd.f32 %v5204_v36, %v5056_v15 }
 0x59b   : > { %8922 = vmatmul.mubr.msk.bf16.vlgmr.msra.gmra.mrb[204].mxu0 %vm3792_vm2, %v7296_v26 }
 0x5aa   : > { %v5331_v25 = vpop.f32.mrb[176].mxu0 }
 0x5ab   : > { %v5333_v14 = vpop.f32.mrb[177].mxu0 }
 0x5ac   : > { %v5340_v18 = vcombine.low %v5331_v25, %v5333_v14  ;;  %v5335_v43 = vpop.f32.mrb[178].mxu0 }
 0x5ad   : > { %v5336_v6 = vpop.f32.mrb[179].mxu0 }
 0x5ae   : > { %v5347_v23 = vrot.slane %v5340_v18, %v12695_v62  ;;  %v7270_v0 = vpop.f32.mrb[48].mxu1 }
 0x5af   : > { %v7272_v32 = vpop.f32.mrb[49].mxu1 }
 0x5b0   : > { %v5354_v21 = vrot.slane %v5347_v23, %v12695_v62  ;;  %v7279_v11 = vcombine.low %v7270_v0, %v7272_v32  ;;  %v7274_v41 = vpop.f32.mrb[50].mxu1 }
 0x5b1   : > { %v7275_v44 = vpop.f32.mrb[51].mxu1 }
 0x5b2   : > { %v5356_v36 = vadd.f32 %v5354_v21, %v5206_v9  ;;  %v7286_v17 = vrot.slane %v7279_v11, %v12695_v62 }
 0x5b4   : > { %v7293_v2 = vrot.slane %v7286_v17, %v12695_v62  ;;  %v5505_v19 = vadd.f32 %v5503_v24, %v5356_v36 }
 0x5c6   : > { %v5629_v57 = vpop.f32.mrb[180].mxu0 }
 0x5c7   : > { %v5631_v49 = vpop.f32.mrb[181].mxu0 }
 0x5c8   : > { %v5638_v38 = vcombine.low %v5629_v57, %v5631_v49  ;;  %v5633_v22 = vpop.f32.mrb[182].mxu0 }
 0x5c9   : > { %v5634_v45 = vpop.f32.mrb[183].mxu0 }
 0x5ca   : > { %v5645_v60 = vrot.slane %v5638_v38, %v12695_v62 }
 0x5cc   : > { %v5652_v58 = vrot.slane %v5645_v60, %v12695_v62 }
 0x5ce   : > { %v5654_v51 = vadd.f32 %v5652_v58, %v5505_v19 }
 0x5d0   : > { %v5803_v16 = vadd.f32 %v5801_v55, %v5654_v51 }
 0x5e2   : > { %v5927_v29 = vpop.f32.mrb[184].mxu0 }
 0x5e3   : > { %v5929_v1 = vpop.f32.mrb[185].mxu0 }
 0x5e4   : > { %v5936_v53 = vcombine.low %v5927_v29, %v5929_v1  ;;  %v5931_v13 = vpop.f32.mrb[186].mxu0  ;;  %v7464_v29 = vld [vmem:[#allocation2] sm:$0x1] }
 0x5e5   : > { %v5932_v54 = vpop.f32.mrb[187].mxu0 }
 0x5e6   : > { %v5943_v24 = vrot.slane %v5936_v53, %v12695_v62 }
 0x5e8   : > { %v5950_v40 = vrot.slane %v5943_v24, %v12695_v62 }
 0x5ea   : > { %v5952_v35 = vadd.f32 %v5950_v40, %v5803_v16 }
 0x5ec   : > { %v6101_v52 = vadd.f32 %v6099_v39, %v5952_v35 }
 0x5fe   : > { %v6225_v3 = vpop.f32.mrb[188].mxu0 }
 0x5ff   : > { %v6227_v20 = vpop.f32.mrb[189].mxu0 }
 0x600   : > { %v6234_v42 = vcombine.low %v6225_v3, %v6227_v20  ;;  %v6229_v7 = vpop.f32.mrb[190].mxu0 }
 0x601   : > { %v6230_v46 = vpop.f32.mrb[191].mxu0 }
 0x602   : > { %v6241_v55 = vrot.slane %v6234_v42, %v12695_v62 }
 0x604   : > { %v6248_v48 = vrot.slane %v6241_v55, %v12695_v62 }
 0x606   : > { %v6250_v61 = vadd.f32 %v6248_v48, %v6101_v52 }
 0x608   : > { %v6400_v34 = vadd.f32 %v6398_v63, %v6250_v61 }
 0x61a   : > { %v6525_v5 = vpop.f32.mrb[192].mxu0 }
 0x61b   : > { %v6527_v59 = vpop.f32.mrb[193].mxu0 }
 0x61c   : > { %v6534_v8 = vcombine.low %v6525_v5, %v6527_v59  ;;  %v6529_v33 = vpop.f32.mrb[194].mxu0 }
 0x61d   : > { %v6530_v30 = vpop.f32.mrb[195].mxu0 }
 0x61e   : > { %v6541_v39 = vrot.slane %v6534_v8, %v12695_v62 }
 0x620   : > { %v6548_v50 = vrot.slane %v6541_v39, %v12695_v62 }
 0x622   : > { %v6550_v47 = vadd.f32 %v6548_v50, %v6400_v34 }
 0x624   : > { %v6699_v15 = vadd.f32 %v6697_v28, %v6550_v47 }
 0x636   : > { %v6823_v9 = vpop.f32.mrb[196].mxu0 }
 0x637   : > { %v6825_v26 = vpop.f32.mrb[197].mxu0 }
 0x638   : > { %v6832_v25 = vcombine.low %v6823_v9, %v6825_v26  ;;  %v6827_v14 = vpop.f32.mrb[198].mxu0 }
 0x639   : > { %v6828_v12 = vpop.f32.mrb[199].mxu0 }
 0x63a   : > { %v6839_v63 = vrot.slane %v6832_v25, %v12695_v62 }
 0x63c   : > { %v6846_v18 = vrot.slane %v6839_v63, %v12695_v62 }
 0x63e   : > { %v6848_v43 = vadd.f32 %v6846_v18, %v6699_v15 }
 0x640   : > { %v6997_v6 = vadd.f32 %v6995_v37, %v6848_v43  ;;  %v7445_v37 = vld [vmem:[%s13156_s6] sm:$0x3] }
 0x652   : > { %v7121_v23 = vpop.f32.mrb[200].mxu0 }
 0x653   : > { %v7123_v0 = vpop.f32.mrb[201].mxu0 }
 0x654   : > { %v7130_v32 = vcombine.low %v7121_v23, %v7123_v0  ;;  %v7125_v21 = vpop.f32.mrb[202].mxu0 }
 0x655   : > { %v7126_v31 = vpop.f32.mrb[203].mxu0 }
 0x656   : > { %v7137_v28 = vrot.slane %v7130_v32, %v12695_v62 }
 0x658   : > { %v7144_v11 = vrot.slane %v7137_v28, %v12695_v62 }
 0x65a   : > { %v7146_v41 = vadd.f32 %v7144_v11, %v6997_v6 }
 0x65c   : > { %v7295_v44 = vadd.f32 %v7293_v2, %v7146_v41 }
 0x66e   : > { %v7419_v36 = vpop.f32.mrb[204].mxu0 }
 0x66f   : > { %v7421_v17 = vpop.f32.mrb[205].mxu0 }
 0x670   : > { %v7428_v19 = vcombine.low %v7419_v36, %v7421_v17  ;;  %v7423_v57 = vpop.f32.mrb[206].mxu0 }
 0x671   : > { %v7424_v49 = vpop.f32.mrb[207].mxu0 }
 0x672   : > { %v7435_v38 = vrot.slane %v7428_v19, %v12695_v62 }
 0x674   : > { %v7442_v27 = vrot.slane %v7435_v38, %v12695_v62 }
 0x676   : > { %v7444_v22 = vadd.f32 %v7442_v27, %v7295_v44 }
 0x678   : > { %v7446_v45 = vmul.f32 %v7445_v37, %v7444_v22 }
 0x67a   : > { %v7451_v2 = vrot.slane %v7446_v45, %v3660_v56  ;;  %v7455_v60 = vrot.slane %v7446_v45, %v3664_v10 }
 0x67c   : > { %v7459_v58 = vsel %vm7458_vm3, %v7451_v2, 0.0  ;;  %v7460_v51 = vsel %vm7458_vm3, %v7455_v60, 0.0 }
 0x67d   : > { %v7461_v16 = vadd.f32 %v7460_v51, %v7459_v58 }
 0x67f   : > { %7462 = vadd.xlane.f32.xlu0 %v7461_v16 }
 0x70c   : > { %v7463_v62 = vpop.xlane.xlu0 %7462 }
 0x70d   : > { %v7465_v1 = vadd.f32 %v7464_v29, %v7463_v62 }
 0x70f   : > { %v7466_v53 = vsub.f32 0.0, %v7465_v1 }
 0x711   : > { %v7467_v13 = vmul.f32 1.442695, %v7466_v53 }
 0x713   : > { %9978 = vpow2.f32 %v7467_v13 }
 0x71d   : > { %v9979_v54 = vpop.eup %9978 }
 0x71e   : > { %v7469_v24 = vadd.f32 1.0, %v9979_v54 }
 0x720   : > { %9980 = vrcp.f32 %v7469_v24 }
 0x72a   : > { %v9981_v4 = vpop.eup %9980 }
 0x72b   : > { %7473 = vst.msk [vmem:[%s303_s15] sm:$0x1] %vm7472_vm4, %v9981_v4 }
 0x72c PF: > { %s20_s29 = sadd.s32 1, %s10012_s29  }
 0x72d   : > { %p17_p4 = scmp.ge.s32.totalorder %s20_s29, 4  }
 0x72f   :  { %19 = sbr.rel (!%p17_p4) target bundleno = 3 (0x3), region = 116 }

</bundles_post_ra>
